<compile_context>
chip_gen: v7x
topology: tpu7x:2x2x1
jax: 0.10.0
libtpu: 0.0.40
codegen_flags: <defaults>
</compile_context>

<pallas_src>
import functools

import jax
import jax.numpy as jnp
from jax.experimental import pallas as pl
from jax.experimental.pallas import tpu as pltpu

_SCALE_CLAMP = 4.135166556742356   # log(1000 / 16), detectron2 Box2BoxTransform
_LANE = 128


def _round_up(x, m):
    return ((x + m - 1) // m) * m


# -----------------------------------------------------------------------------
# Fused kernel: backbone 3x3 conv + ReLU + interior mask  ->  RPN 3x3 conv + ReLU
# -> objectness / anchor-delta 1x1 heads -> Box2BoxTransform decode + rescale/clip.
# One grid step = one (image, 128-row chunk) pair of the flattened padded grid.
# -----------------------------------------------------------------------------
def _fused_rpn_kernel(params_ref, patch_ref, mask_ref, w_bb_ref, b_bb_ref,
                      w_rpn_ref, b_rpn_ref, w_hd_ref, b_hd_ref, asz_ref,
                      acx_ref, acy_ref, out_ref, feats_scr, *, cr, wp, hf):
    n = pl.program_id(0)

    # ---- backbone 3x3 conv: single wide-K matmul on the im2col patch --------------
    # patch_ref block: (1, 1, cr + 2*hf, Kpad) bf16 -> feats for chunk rows + halo.
    feats = jnp.dot(patch_ref[0, 0], w_bb_ref[...],
                    preferred_element_type=jnp.float32)          # (ext_cr, 128) f32
    feats = jnp.maximum(feats + b_bb_ref[...], 0.0) * mask_ref[0]
    feats_scr[...] = feats.astype(jnp.bfloat16)                  # VMEM-resident only

    # ---- RPN 3x3 conv: 9 accumulating K=128 matmuls, acc = (cr,128) f32 (16 vregs) -
    base = hf - (wp + 1)
    acc = None
    for tap in range(9):
        dy, dx = divmod(tap, 3)
        off = base + dy * wp + dx
        part = jnp.dot(feats_scr[off:off + cr, :], w_rpn_ref[tap],
                       preferred_element_type=jnp.float32)
        acc = part if acc is None else acc + part
    hidden = jnp.maximum(acc + b_rpn_ref[...], 0.0).astype(jnp.bfloat16)   # (cr,128)

    # ---- per-image detector_postprocess params (SMEM scalars) ---------------------
    sx = params_ref[n, 0]
    sy = params_ref[n, 1]
    ow = params_ref[n, 2]
    oh = params_ref[n, 3]

    asz = asz_ref[...]            # (1,128): anchor size per lane (first A lanes real)
    acx = acx_ref[...]            # (cr,1):  anchor center x per flattened-grid row
    acy = acy_ref[...]            # (cr,1):  anchor center y

    def head(g):                  # 1x1 head for lane group g of the padded weights
        c0 = g * _LANE
        return (jnp.dot(hidden, w_hd_ref[:, c0:c0 + _LANE],
                        preferred_element_type=jnp.float32)
                + b_hd_ref[:, c0:c0 + _LANE])

    # group 0: objectness logits (stored as-is, lane-dense)
    out_ref[0, :, 0:_LANE] = head(0)

    # x coordinates: dx = group 1, dw = group 3
    pcx = head(1) * asz + acx
    pw = jnp.exp(jnp.minimum(head(3), _SCALE_CLAMP)) * asz
    out_ref[0, :, 1 * _LANE:2 * _LANE] = jnp.clip((pcx - 0.5 * pw) * sx, 0.0, ow)
    out_ref[0, :, 3 * _LANE:4 * _LANE] = jnp.clip((pcx + 0.5 * pw) * sx, 0.0, ow)

    # y coordinates: dy = group 2, dh = group 4
    pcy = head(2) * asz + acy
    ph = jnp.exp(jnp.minimum(head(4), _SCALE_CLAMP)) * asz
    out_ref[0, :, 2 * _LANE:3 * _LANE] = jnp.clip((pcy - 0.5 * ph) * sy, 0.0, oh)
    out_ref[0, :, 4 * _LANE:5 * _LANE] = jnp.clip((pcy + 0.5 * ph) * sy, 0.0, oh)


def fused_backbone_rpn_decode(params, patch_chunks, mask_chunks, w_bb, b_bb,
                              w_rpn, b_rpn, w_hd, b_hd, asz, acx, acy,
                              *, cr, wp, hf, num_chunks, core_pad):
    N = patch_chunks.shape[0]
    kdim = patch_chunks.shape[-1]
    ext_cr = cr + 2 * hf
    kern = functools.partial(_fused_rpn_kernel, cr=cr, wp=wp, hf=hf)
    return pl.pallas_call(
        kern,
        out_shape=jax.ShapeDtypeStruct((N, core_pad, 5 * _LANE), jnp.float32),
        grid=(N, num_chunks),
        in_specs=[
            pl.BlockSpec(memory_space=pltpu.MemorySpace.SMEM),              # params (N,4)
            pl.BlockSpec((1, 1, ext_cr, kdim), lambda n, j: (n, j, 0, 0)),  # im2col chunks
            pl.BlockSpec((1, ext_cr, 1), lambda n, j: (j, 0, 0)),           # interior mask
            pl.BlockSpec((kdim, _LANE), lambda n, j: (0, 0)),               # backbone W
            pl.BlockSpec((1, _LANE), lambda n, j: (0, 0)),                  # backbone b
            pl.BlockSpec((9, _LANE, _LANE), lambda n, j: (0, 0, 0)),        # RPN conv W
            pl.BlockSpec((1, _LANE), lambda n, j: (0, 0)),                  # RPN conv b
            pl.BlockSpec((_LANE, 5 * _LANE), lambda n, j: (0, 0)),          # head W (grouped)
            pl.BlockSpec((1, 5 * _LANE), lambda n, j: (0, 0)),              # head b
            pl.BlockSpec((1, _LANE), lambda n, j: (0, 0)),                  # anchor sizes
            pl.BlockSpec((cr, 1), lambda n, j: (j, 0)),                     # anchor cx
            pl.BlockSpec((cr, 1), lambda n, j: (j, 0)),                     # anchor cy
        ],
        out_specs=pl.BlockSpec((1, cr, 5 * _LANE), lambda n, j: (n, j, 0)),
        scratch_shapes=[pltpu.VMEM((ext_cr, _LANE), jnp.bfloat16)],
        compiler_params=pltpu.CompilerParams(
            dimension_semantics=("parallel", "parallel"),
            vmem_limit_bytes=32 * 1024 * 1024),
    )(params, patch_chunks, mask_chunks, w_bb, b_bb, w_rpn, b_rpn, w_hd, b_hd,
      asz, acx, acy)


# -----------------------------------------------------------------------------
# JAX wrapper (all glue + the pallas_call + batched top-k run under one jax.jit)
# -----------------------------------------------------------------------------
class ProposalNetworkPallas:
    """JAX/Pallas re-implementation of ProposalNetwork.forward (inference path)."""

    LANE = _LANE
    CHUNK_ROWS = 128   # row-tile of the flattened (Hp*Wp) padded grid

    def __init__(self, key, in_channels=3, feat_channels=32, num_anchors=3,
                 anchor_sizes=(8.0, 16.0, 32.0), pre_nms_topk=50):
        self.in_channels = in_channels
        self.feat_channels = feat_channels
        self.num_anchors = num_anchors
        self.anchor_sizes = anchor_sizes
        self.pre_nms_topk = pre_nms_topk

        # cfg.MODEL.PIXEL_MEAN / PIXEL_STD (detectron2-style BGR stats)
        self.pixel_mean = jnp.asarray([103.530, 116.280, 123.675], jnp.float32)
        self.pixel_std = jnp.asarray([57.375, 57.120, 58.395], jnp.float32)

        C, F, A = in_channels, feat_channels, num_anchors
        assert F <= self.LANE and A <= self.LANE

        # Deterministic synthetic parameters (shapes implied by the module).
        k = jax.random.split(key, 7)
        s = 0.02
        w_bb = s * jax.random.normal(k[0], (9, C, F), jnp.float32)   # backbone 3x3 stem
        b_bb = jnp.zeros((F,), jnp.float32)
        w_rpn = s * jax.random.normal(k[1], (9, F, F), jnp.float32)  # RPN 3x3 conv
        b_rpn = jnp.zeros((F,), jnp.float32)
        w_obj = s * jax.random.normal(k[2], (F, A), jnp.float32)     # objectness 1x1
        w_dx = s * jax.random.normal(k[3], (F, A), jnp.float32)      # delta heads 1x1,
        w_dy = s * jax.random.normal(k[4], (F, A), jnp.float32)      # coordinate-major
        w_dw = s * jax.random.normal(k[5], (F, A), jnp.float32)
        w_dh = s * jax.random.normal(k[6], (F, A), jnp.float32)
        # NOTE: real detectron2 RPN weights would need a column permute into this
        # coordinate-major [obj|dx|dy|dw|dh] layout.

        # --- MXU / lane-friendly layouts -----------------------------------------
        kdim = _round_up(9 * C, 8)                                   # im2col depth (27->32)
        self.kdim = kdim
        self.w_bb = jnp.pad(w_bb.reshape(9 * C, F),
                            ((0, kdim - 9 * C), (0, self.LANE - F))).astype(jnp.bfloat16)
        self.b_bb = jnp.pad(b_bb, (0, self.LANE - F)).reshape(1, self.LANE)
        self.w_rpn = jnp.pad(
            w_rpn, ((0, 0), (0, self.LANE - F), (0, self.LANE - F))).astype(jnp.bfloat16)
        self.b_rpn = jnp.pad(b_rpn, (0, self.LANE - F)).reshape(1, self.LANE)

        def padg(w):   # (F, A) -> (LANE, LANE), one lane group per head quantity
            return jnp.pad(w, ((0, self.LANE - F), (0, self.LANE - A)))

        self.w_hd = jnp.concatenate(
            [padg(w_obj), padg(w_dx), padg(w_dy), padg(w_dw), padg(w_dh)],
            axis=1).astype(jnp.bfloat16)                              # (128, 640)
        self.b_hd = jnp.zeros((1, 5 * self.LANE), jnp.float32)
        self.asz = jnp.pad(jnp.asarray(anchor_sizes, jnp.float32),
                           (0, self.LANE - A)).reshape(1, self.LANE)

        self._dense = jax.jit(self._dense_forward)

    # ---- dense path: everything up to (boxes, logits) per image, jitted ----------
    def _dense_forward(self, images_nchw, params):
        N, C, H, W = images_nchw.shape
        A = self.num_anchors
        Hp, Wp = H + 2, W + 2
        core = Hp * Wp
        CR = self.CHUNK_ROWS
        num_chunks = -(-core // CR)
        core_pad = num_chunks * CR
        HF = _round_up(Wp + 1, 8)        # per-chunk feature halo (>= max 3x3 tap offset)
        ext_cr = CR + 2 * HF
        L = self.LANE

        # normalize in f32 (ImageList padding is a no-op: all images same size here)
        x = jnp.transpose(images_nchw, (0, 2, 3, 1)).astype(jnp.float32)
        x = (x - self.pixel_mean) / self.pixel_std

        # conv zero-padding (pad=1) grid, then im2col patches for every grid position
        xp = jnp.pad(x, ((0, 0), (1, 1), (1, 1), (0, 0)))             # (N,Hp,Wp,C)
        xpp = jnp.pad(xp, ((0, 0), (1, 1), (1, 1), (0, 0)))           # (N,Hp+2,Wp+2,C)
        taps = [xpp[:, dy:dy + Hp, dx:dx + Wp, :]
                for dy in range(3) for dx in range(3)]
        patch = jnp.concatenate(taps, axis=-1).reshape(N, core, 9 * C)
        patch = jnp.pad(patch, ((0, 0), (0, core_pad - core), (0, self.kdim - 9 * C)))
        patch_ext = jnp.pad(patch, ((0, 0), (HF, HF), (0, 0)))        # halo rows = 0
        patch_chunks = jnp.stack(
            [patch_ext[:, j * CR:j * CR + ext_cr, :] for j in range(num_chunks)],
            axis=1).astype(jnp.bfloat16)                              # (N,nc,ext_cr,K)

        # interior mask (1.0 on image pixels of the padded grid; keeps feature border
        # rows exactly zero so they double as the RPN conv's zero padding)
        ys = jnp.arange(Hp)
        xs = jnp.arange(Wp)
        interior = (((ys >= 1) & (ys <= H))[:, None] &
                    ((xs >= 1) & (xs <= W))[None, :]).astype(jnp.float32)
        mask = jnp.pad(interior.reshape(core), (0, core_pad - core))
        mask_ext = jnp.pad(mask, (HF, HF))
        mask_chunks = jnp.stack(
            [mask_ext[j * CR:j * CR + ext_cr] for j in range(num_chunks)],
            axis=0)[:, :, None]                                       # (nc, ext_cr, 1)

        # per-row anchor centers of the flattened padded grid (stride-1 anchors)
        p = jnp.arange(core_pad)
        acx = ((p % Wp).astype(jnp.float32) - 0.5)[:, None]           # (core_pad, 1)
        acy = ((p // Wp).astype(jnp.float32) - 0.5)[:, None]

        out = fused_backbone_rpn_decode(
            params, patch_chunks, mask_chunks, self.w_bb, self.b_bb,
            self.w_rpn, self.b_rpn, self.w_hd, self.b_hd, self.asz, acx, acy,
            cr=CR, wp=Wp, hf=HF, num_chunks=num_chunks, core_pad=core_pad)

        # unpack: crop interior pixels, keep the A real lanes of each group
        grid = out[:, :core, :].reshape(N, Hp, Wp, 5 * L)[:, 1:H + 1, 1:W + 1, :]
        obj = grid[..., 0:A].reshape(N, H * W * A)
        x1 = grid[..., 1 * L:1 * L + A]
        y1 = grid[..., 2 * L:2 * L + A]
        x2 = grid[..., 3 * L:3 * L + A]
        y2 = grid[..., 4 * L:4 * L + A]
        boxes = jnp.stack([x1, y1, x2, y2], axis=-1).reshape(N, H * W * A, 4)

        # batched pre-NMS top-k proposal selection
        top_logits, top_idx = jax.lax.top_k(obj, self.pre_nms_topk)
        top_boxes = jnp.take_along_axis(boxes, top_idx[..., None], axis=1)
        return top_boxes, top_logits

    def forward(self, batched_inputs):
        images = jnp.stack([x["image"] for x in batched_inputs], axis=0)  # (N,C,H,W)
        N, _, H, W = images.shape

        # detector_postprocess rescale/clip parameters per image: [sx, sy, out_w, out_h]
        params = []
        for inp in batched_inputs:
            out_h = float(inp.get("height", H))
            out_w = float(inp.get("width", W))
            params.append([out_w / W, out_h / H, out_w, out_h])
        params = jnp.asarray(params, jnp.float32)

        top_boxes, top_logits = self._dense(images, params)

        # TODO(synk): RPN NMS has no clean Pallas equivalent; only pre-NMS top-k here.
        return [{"proposals": {"proposal_boxes": top_boxes[i],
                               "objectness_logits": top_logits[i]}}
                for i in range(N)]


if __name__ == "__main__":
    key = jax.random.PRNGKey(0)
    k_img, k_model = jax.random.split(key)

    N, C, H, W = 2, 3, 16, 16
    images = jax.random.uniform(k_img, (N, C, H, W), jnp.float32, 0.0, 255.0)
    batched_inputs = [
        {"image": images[i], "height": 24, "width": 20} for i in range(N)
    ]

    model = ProposalNetworkPallas(k_model)
    results = model.forward(batched_inputs)

    for r in results:
        jax.block_until_ready(r["proposals"]["proposal_boxes"])
        jax.block_until_ready(r["proposals"]["objectness_logits"])
        assert r["proposals"]["proposal_boxes"].shape == (50, 4)
        assert r["proposals"]["objectness_logits"].shape == (50,)

    print("KERNEL_OK")
</pallas_src>

<mosaic_0001>
module attributes {stable_mosaic.version = 11 : i64} {
  func.func @_fused_rpn_kernel(%arg0: i32, %arg1: i32, %arg2: memref<2x4xf32, #tpu.memory_space<smem>>, %arg3: memref<1x1x176x32xbf16, #tpu.memory_space<vmem>>, %arg4: memref<1x176x1xf32, #tpu.memory_space<vmem>>, %arg5: memref<32x128xbf16, #tpu.memory_space<vmem>>, %arg6: memref<1x128xf32, #tpu.memory_space<vmem>>, %arg7: memref<9x128x128xbf16, #tpu.memory_space<vmem>>, %arg8: memref<1x128xf32, #tpu.memory_space<vmem>>, %arg9: memref<128x640xbf16, #tpu.memory_space<vmem>>, %arg10: memref<1x640xf32, #tpu.memory_space<vmem>>, %arg11: memref<1x128xf32, #tpu.memory_space<vmem>>, %arg12: memref<128x1xf32, #tpu.memory_space<vmem>>, %arg13: memref<128x1xf32, #tpu.memory_space<vmem>>, %arg14: memref<1x128x640xf32, #tpu.memory_space<vmem>>, %arg15: memref<176x128xbf16, #tpu.memory_space<vmem>>) attributes {dimension_semantics = [#tpu.dimension_semantics<parallel>, #tpu.dimension_semantics<parallel>], iteration_bounds = array<i64: 2, 3>, scalar_prefetch = 0 : i64, scratch_operands = 1 : i64, tpu.core_type = #tpu.core_type<tc>, window_params = [{transform_indices = @transform_0, window_bounds = array<i64: 2, 4>}, {transform_indices = @transform_1, window_bounds = array<i64: 1, 1, 176, 32>}, {transform_indices = @transform_2, window_bounds = array<i64: 1, 176, 1>}, {pipeline_mode = #tpu.pipeline_mode<synchronous>, transform_indices = @transform_3, window_bounds = array<i64: 32, 128>}, {pipeline_mode = #tpu.pipeline_mode<synchronous>, transform_indices = @transform_4, window_bounds = array<i64: 1, 128>}, {pipeline_mode = #tpu.pipeline_mode<synchronous>, transform_indices = @transform_5, window_bounds = array<i64: 9, 128, 128>}, {pipeline_mode = #tpu.pipeline_mode<synchronous>, transform_indices = @transform_6, window_bounds = array<i64: 1, 128>}, {pipeline_mode = #tpu.pipeline_mode<synchronous>, transform_indices = @transform_7, window_bounds = array<i64: 128, 640>}, {pipeline_mode = #tpu.pipeline_mode<synchronous>, transform_indices = @transform_8, window_bounds = array<i64: 1, 640>}, {pipeline_mode = #tpu.pipeline_mode<synchronous>, transform_indices = @transform_9, window_bounds = array<i64: 1, 128>}, {transform_indices = @transform_10, window_bounds = array<i64: 128, 1>}, {transform_indices = @transform_11, window_bounds = array<i64: 128, 1>}, {transform_indices = @transform_12, window_bounds = array<i64: 1, 128, 640>}]} {
    %c0 = arith.constant 0 : index
    %c0_0 = arith.constant 0 : index
    %c0_1 = arith.constant 0 : index
    %c0_2 = arith.constant 0 : index
    %0 = vector.load %arg3[%c0, %c0_0, %c0_1, %c0_2] : memref<1x1x176x32xbf16, #tpu.memory_space<vmem>>, vector<1x1x176x32xbf16>
    %1 = vector.shape_cast %0 : vector<1x1x176x32xbf16> to vector<176x32xbf16>
    %c0_3 = arith.constant 0 : index
    %c0_4 = arith.constant 0 : index
    %2 = vector.load %arg5[%c0_3, %c0_4] : memref<32x128xbf16, #tpu.memory_space<vmem>>, vector<32x128xbf16>
    %cst = arith.constant dense<0.000000e+00> : vector<176x128xf32>
    %3 = tpu.matmul %1, %2, %cst {dimension_numbers = #tpu.dot_dimension_numbers<[1], [0], [0], [1], [0, 0, 1, 1], [], []>} : vector<176x32xbf16>, vector<32x128xbf16>, vector<176x128xf32> -> vector<176x128xf32>
    %c0_5 = arith.constant 0 : index
    %c0_6 = arith.constant 0 : index
    %4 = vector.load %arg6[%c0_5, %c0_6] : memref<1x128xf32, #tpu.memory_space<vmem>>, vector<1x128xf32>
    %5 = vector.broadcast %4 : vector<1x128xf32> to vector<176x128xf32>
    %6 = arith.addf %3, %5 : vector<176x128xf32>
    %cst_7 = arith.constant 0.000000e+00 : f32
    %7 = vector.broadcast %cst_7 : f32 to vector<176x128xf32>
    %8 = arith.maximumf %6, %7 : vector<176x128xf32>
    %c0_8 = arith.constant 0 : index
    %c0_9 = arith.constant 0 : index
    %c0_10 = arith.constant 0 : index
    %9 = vector.load %arg4[%c0_8, %c0_9, %c0_10] : memref<1x176x1xf32, #tpu.memory_space<vmem>>, vector<1x176x1xf32>
    %10 = vector.shape_cast %9 : vector<1x176x1xf32> to vector<176x1xf32>
    %11 = vector.broadcast %10 : vector<176x1xf32> to vector<176x128xf32>
    %12 = arith.mulf %8, %11 : vector<176x128xf32>
    %13 = arith.truncf %12 : vector<176x128xf32> to vector<176x128xbf16>
    %c0_11 = arith.constant 0 : index
    %c0_12 = arith.constant 0 : index
    %14 = vector.load %arg15[%c0_11, %c0_12] : memref<176x128xbf16, #tpu.memory_space<vmem>>, vector<176x128xbf16>
    tpu.vector_store %arg15[%c0_11, %c0_12], %13 {strides = array<i32>} : memref<176x128xbf16, #tpu.memory_space<vmem>>, vector<176x128xbf16>,
    %c5 = arith.constant 5 : index
    %c0_13 = arith.constant 0 : index
    %15 = vector.load %arg15[%c5, %c0_13] : memref<176x128xbf16, #tpu.memory_space<vmem>>, vector<128x128xbf16>
    %c0_14 = arith.constant 0 : index
    %c0_15 = arith.constant 0 : index
    %c0_16 = arith.constant 0 : index
    %16 = vector.load %arg7[%c0_14, %c0_15, %c0_16] : memref<9x128x128xbf16, #tpu.memory_space<vmem>>, vector<1x128x128xbf16>
    %17 = vector.shape_cast %16 : vector<1x128x128xbf16> to vector<128x128xbf16>
    %cst_17 = arith.constant dense<0.000000e+00> : vector<128x128xf32>
    %18 = tpu.matmul %15, %17, %cst_17 {dimension_numbers = #tpu.dot_dimension_numbers<[1], [0], [0], [1], [0, 0, 1, 1], [], []>} : vector<128x128xbf16>, vector<128x128xbf16>, vector<128x128xf32> -> vector<128x128xf32>
    %c6 = arith.constant 6 : index
    %c0_18 = arith.constant 0 : index
    %19 = vector.load %arg15[%c6, %c0_18] : memref<176x128xbf16, #tpu.memory_space<vmem>>, vector<128x128xbf16>
    %c1 = arith.constant 1 : index
    %c0_19 = arith.constant 0 : index
    %c0_20 = arith.constant 0 : index
    %20 = vector.load %arg7[%c1, %c0_19, %c0_20] : memref<9x128x128xbf16, #tpu.memory_space<vmem>>, vector<1x128x128xbf16>
    %21 = vector.shape_cast %20 : vector<1x128x128xbf16> to vector<128x128xbf16>
    %cst_21 = arith.constant dense<0.000000e+00> : vector<128x128xf32>
    %22 = tpu.matmul %19, %21, %cst_21 {dimension_numbers = #tpu.dot_dimension_numbers<[1], [0], [0], [1], [0, 0, 1, 1], [], []>} : vector<128x128xbf16>, vector<128x128xbf16>, vector<128x128xf32> -> vector<128x128xf32>
    %23 = arith.addf %18, %22 : vector<128x128xf32>
    %c7 = arith.constant 7 : index
    %c0_22 = arith.constant 0 : index
    %24 = vector.load %arg15[%c7, %c0_22] : memref<176x128xbf16, #tpu.memory_space<vmem>>, vector<128x128xbf16>
    %c2 = arith.constant 2 : index
    %c0_23 = arith.constant 0 : index
    %c0_24 = arith.constant 0 : index
    %25 = vector.load %arg7[%c2, %c0_23, %c0_24] : memref<9x128x128xbf16, #tpu.memory_space<vmem>>, vector<1x128x128xbf16>
    %26 = vector.shape_cast %25 : vector<1x128x128xbf16> to vector<128x128xbf16>
    %cst_25 = arith.constant dense<0.000000e+00> : vector<128x128xf32>
    %27 = tpu.matmul %24, %26, %cst_25 {dimension_numbers = #tpu.dot_dimension_numbers<[1], [0], [0], [1], [0, 0, 1, 1], [], []>} : vector<128x128xbf16>, vector<128x128xbf16>, vector<128x128xf32> -> vector<128x128xf32>
    %28 = arith.addf %23, %27 : vector<128x128xf32>
    %c23 = arith.constant 23 : index
    %c0_26 = arith.constant 0 : index
    %29 = vector.load %arg15[%c23, %c0_26] : memref<176x128xbf16, #tpu.memory_space<vmem>>, vector<128x128xbf16>
    %c3 = arith.constant 3 : index
    %c0_27 = arith.constant 0 : index
    %c0_28 = arith.constant 0 : index
    %30 = vector.load %arg7[%c3, %c0_27, %c0_28] : memref<9x128x128xbf16, #tpu.memory_space<vmem>>, vector<1x128x128xbf16>
    %31 = vector.shape_cast %30 : vector<1x128x128xbf16> to vector<128x128xbf16>
    %cst_29 = arith.constant dense<0.000000e+00> : vector<128x128xf32>
    %32 = tpu.matmul %29, %31, %cst_29 {dimension_numbers = #tpu.dot_dimension_numbers<[1], [0], [0], [1], [0, 0, 1, 1], [], []>} : vector<128x128xbf16>, vector<128x128xbf16>, vector<128x128xf32> -> vector<128x128xf32>
    %33 = arith.addf %28, %32 : vector<128x128xf32>
    %c24 = arith.constant 24 : index
    %c0_30 = arith.constant 0 : index
    %34 = vector.load %arg15[%c24, %c0_30] : memref<176x128xbf16, #tpu.memory_space<vmem>>, vector<128x128xbf16>
    %c4 = arith.constant 4 : index
    %c0_31 = arith.constant 0 : index
    %c0_32 = arith.constant 0 : index
    %35 = vector.load %arg7[%c4, %c0_31, %c0_32] : memref<9x128x128xbf16, #tpu.memory_space<vmem>>, vector<1x128x128xbf16>
    %36 = vector.shape_cast %35 : vector<1x128x128xbf16> to vector<128x128xbf16>
    %cst_33 = arith.constant dense<0.000000e+00> : vector<128x128xf32>
    %37 = tpu.matmul %34, %36, %cst_33 {dimension_numbers = #tpu.dot_dimension_numbers<[1], [0], [0], [1], [0, 0, 1, 1], [], []>} : vector<128x128xbf16>, vector<128x128xbf16>, vector<128x128xf32> -> vector<128x128xf32>
    %38 = arith.addf %33, %37 : vector<128x128xf32>
    %c25 = arith.constant 25 : index
    %c0_34 = arith.constant 0 : index
    %39 = vector.load %arg15[%c25, %c0_34] : memref<176x128xbf16, #tpu.memory_space<vmem>>, vector<128x128xbf16>
    %c5_35 = arith.constant 5 : index
    %c0_36 = arith.constant 0 : index
    %c0_37 = arith.constant 0 : index
    %40 = vector.load %arg7[%c5_35, %c0_36, %c0_37] : memref<9x128x128xbf16, #tpu.memory_space<vmem>>, vector<1x128x128xbf16>
    %41 = vector.shape_cast %40 : vector<1x128x128xbf16> to vector<128x128xbf16>
    %cst_38 = arith.constant dense<0.000000e+00> : vector<128x128xf32>
    %42 = tpu.matmul %39, %41, %cst_38 {dimension_numbers = #tpu.dot_dimension_numbers<[1], [0], [0], [1], [0, 0, 1, 1], [], []>} : vector<128x128xbf16>, vector<128x128xbf16>, vector<128x128xf32> -> vector<128x128xf32>
    %43 = arith.addf %38, %42 : vector<128x128xf32>
    %c41 = arith.constant 41 : index
    %c0_39 = arith.constant 0 : index
    %44 = vector.load %arg15[%c41, %c0_39] : memref<176x128xbf16, #tpu.memory_space<vmem>>, vector<128x128xbf16>
    %c6_40 = arith.constant 6 : index
    %c0_41 = arith.constant 0 : index
    %c0_42 = arith.constant 0 : index
    %45 = vector.load %arg7[%c6_40, %c0_41, %c0_42] : memref<9x128x128xbf16, #tpu.memory_space<vmem>>, vector<1x128x128xbf16>
    %46 = vector.shape_cast %45 : vector<1x128x128xbf16> to vector<128x128xbf16>
    %cst_43 = arith.constant dense<0.000000e+00> : vector<128x128xf32>
    %47 = tpu.matmul %44, %46, %cst_43 {dimension_numbers = #tpu.dot_dimension_numbers<[1], [0], [0], [1], [0, 0, 1, 1], [], []>} : vector<128x128xbf16>, vector<128x128xbf16>, vector<128x128xf32> -> vector<128x128xf32>
    %48 = arith.addf %43, %47 : vector<128x128xf32>
    %c42 = arith.constant 42 : index
    %c0_44 = arith.constant 0 : index
    %49 = vector.load %arg15[%c42, %c0_44] : memref<176x128xbf16, #tpu.memory_space<vmem>>, vector<128x128xbf16>
    %c7_45 = arith.constant 7 : index
    %c0_46 = arith.constant 0 : index
    %c0_47 = arith.constant 0 : index
    %50 = vector.load %arg7[%c7_45, %c0_46, %c0_47] : memref<9x128x128xbf16, #tpu.memory_space<vmem>>, vector<1x128x128xbf16>
    %51 = vector.shape_cast %50 : vector<1x128x128xbf16> to vector<128x128xbf16>
    %cst_48 = arith.constant dense<0.000000e+00> : vector<128x128xf32>
    %52 = tpu.matmul %49, %51, %cst_48 {dimension_numbers = #tpu.dot_dimension_numbers<[1], [0], [0], [1], [0, 0, 1, 1], [], []>} : vector<128x128xbf16>, vector<128x128xbf16>, vector<128x128xf32> -> vector<128x128xf32>
    %53 = arith.addf %48, %52 : vector<128x128xf32>
    %c43 = arith.constant 43 : index
    %c0_49 = arith.constant 0 : index
    %54 = vector.load %arg15[%c43, %c0_49] : memref<176x128xbf16, #tpu.memory_space<vmem>>, vector<128x128xbf16>
    %c8 = arith.constant 8 : index
    %c0_50 = arith.constant 0 : index
    %c0_51 = arith.constant 0 : index
    %55 = vector.load %arg7[%c8, %c0_50, %c0_51] : memref<9x128x128xbf16, #tpu.memory_space<vmem>>, vector<1x128x128xbf16>
    %56 = vector.shape_cast %55 : vector<1x128x128xbf16> to vector<128x128xbf16>
    %cst_52 = arith.constant dense<0.000000e+00> : vector<128x128xf32>
    %57 = tpu.matmul %54, %56, %cst_52 {dimension_numbers = #tpu.dot_dimension_numbers<[1], [0], [0], [1], [0, 0, 1, 1], [], []>} : vector<128x128xbf16>, vector<128x128xbf16>, vector<128x128xf32> -> vector<128x128xf32>
    %58 = arith.addf %53, %57 : vector<128x128xf32>
    %c0_53 = arith.constant 0 : index
    %c0_54 = arith.constant 0 : index
    %59 = vector.load %arg8[%c0_53, %c0_54] : memref<1x128xf32, #tpu.memory_space<vmem>>, vector<1x128xf32>
    %60 = vector.broadcast %59 : vector<1x128xf32> to vector<128x128xf32>
    %61 = arith.addf %58, %60 : vector<128x128xf32>
    %cst_55 = arith.constant 0.000000e+00 : f32
    %62 = vector.broadcast %cst_55 : f32 to vector<128x128xf32>
    %63 = arith.maximumf %61, %62 : vector<128x128xf32>
    %64 = arith.truncf %63 : vector<128x128xf32> to vector<128x128xbf16>
    %65 = arith.index_cast %arg0 : i32 to index
    %c0_56 = arith.constant 0 : index
    %66 = memref.load %arg2[%65, %c0_56] : memref<2x4xf32, #tpu.memory_space<smem>>
    %67 = arith.index_cast %arg0 : i32 to index
    %c1_57 = arith.constant 1 : index
    %68 = memref.load %arg2[%67, %c1_57] : memref<2x4xf32, #tpu.memory_space<smem>>
    %69 = arith.index_cast %arg0 : i32 to index
    %c2_58 = arith.constant 2 : index
    %70 = memref.load %arg2[%69, %c2_58] : memref<2x4xf32, #tpu.memory_space<smem>>
    %71 = arith.index_cast %arg0 : i32 to index
    %c3_59 = arith.constant 3 : index
    %72 = memref.load %arg2[%71, %c3_59] : memref<2x4xf32, #tpu.memory_space<smem>>
    %c0_60 = arith.constant 0 : index
    %c0_61 = arith.constant 0 : index
    %73 = vector.load %arg11[%c0_60, %c0_61] : memref<1x128xf32, #tpu.memory_space<vmem>>, vector<1x128xf32>
    %c0_62 = arith.constant 0 : index
    %c0_63 = arith.constant 0 : index
    %74 = vector.load %arg12[%c0_62, %c0_63] : memref<128x1xf32, #tpu.memory_space<vmem>>, vector<128x1xf32>
    %c0_64 = arith.constant 0 : index
    %c0_65 = arith.constant 0 : index
    %75 = vector.load %arg13[%c0_64, %c0_65] : memref<128x1xf32, #tpu.memory_space<vmem>>, vector<128x1xf32>
    %c0_66 = arith.constant 0 : index
    %c0_67 = arith.constant 0 : index
    %76 = vector.load %arg9[%c0_66, %c0_67] : memref<128x640xbf16, #tpu.memory_space<vmem>>, vector<128x128xbf16>
    %cst_68 = arith.constant dense<0.000000e+00> : vector<128x128xf32>
    %77 = tpu.matmul %64, %76, %cst_68 {dimension_numbers = #tpu.dot_dimension_numbers<[1], [0], [0], [1], [0, 0, 1, 1], [], []>} : vector<128x128xbf16>, vector<128x128xbf16>, vector<128x128xf32> -> vector<128x128xf32>
    %c0_69 = arith.constant 0 : index
    %c0_70 = arith.constant 0 : index
    %78 = vector.load %arg10[%c0_69, %c0_70] : memref<1x640xf32, #tpu.memory_space<vmem>>, vector<1x128xf32>
    %79 = vector.broadcast %78 : vector<1x128xf32> to vector<128x128xf32>
    %80 = arith.addf %77, %79 : vector<128x128xf32>
    %c0_71 = arith.constant 0 : index
    %c0_72 = arith.constant 0 : index
    %c0_73 = arith.constant 0 : index
    %81 = vector.load %arg14[%c0_71, %c0_72, %c0_73] : memref<1x128x640xf32, #tpu.memory_space<vmem>>, vector<1x128x128xf32>
    %82 = vector.shape_cast %81 : vector<1x128x128xf32> to vector<128x128xf32>
    %83 = vector.shape_cast %80 : vector<128x128xf32> to vector<1x128x128xf32>
    tpu.vector_store %arg14[%c0_71, %c0_72, %c0_73], %83 {strides = array<i32>} : memref<1x128x640xf32, #tpu.memory_space<vmem>>, vector<1x128x128xf32>,
    %c0_74 = arith.constant 0 : index
    %c128 = arith.constant 128 : index
    %84 = vector.load %arg9[%c0_74, %c128] : memref<128x640xbf16, #tpu.memory_space<vmem>>, vector<128x128xbf16>
    %cst_75 = arith.constant dense<0.000000e+00> : vector<128x128xf32>
    %85 = tpu.matmul %64, %84, %cst_75 {dimension_numbers = #tpu.dot_dimension_numbers<[1], [0], [0], [1], [0, 0, 1, 1], [], []>} : vector<128x128xbf16>, vector<128x128xbf16>, vector<128x128xf32> -> vector<128x128xf32>
    %c0_76 = arith.constant 0 : index
    %c128_77 = arith.constant 128 : index
    %86 = vector.load %arg10[%c0_76, %c128_77] : memref<1x640xf32, #tpu.memory_space<vmem>>, vector<1x128xf32>
    %87 = vector.broadcast %86 : vector<1x128xf32> to vector<128x128xf32>
    %88 = arith.addf %85, %87 : vector<128x128xf32>
    %89 = vector.broadcast %73 : vector<1x128xf32> to vector<128x128xf32>
    %90 = arith.mulf %88, %89 : vector<128x128xf32>
    %91 = vector.broadcast %74 : vector<128x1xf32> to vector<128x128xf32>
    %92 = arith.addf %90, %91 : vector<128x128xf32>
    %c0_78 = arith.constant 0 : index
    %c384 = arith.constant 384 : index
    %93 = vector.load %arg9[%c0_78, %c384] : memref<128x640xbf16, #tpu.memory_space<vmem>>, vector<128x128xbf16>
    %cst_79 = arith.constant dense<0.000000e+00> : vector<128x128xf32>
    %94 = tpu.matmul %64, %93, %cst_79 {dimension_numbers = #tpu.dot_dimension_numbers<[1], [0], [0], [1], [0, 0, 1, 1], [], []>} : vector<128x128xbf16>, vector<128x128xbf16>, vector<128x128xf32> -> vector<128x128xf32>
    %c0_80 = arith.constant 0 : index
    %c384_81 = arith.constant 384 : index
    %95 = vector.load %arg10[%c0_80, %c384_81] : memref<1x640xf32, #tpu.memory_space<vmem>>, vector<1x128xf32>
    %96 = vector.broadcast %95 : vector<1x128xf32> to vector<128x128xf32>
    %97 = arith.addf %94, %96 : vector<128x128xf32>
    %cst_82 = arith.constant 4.13516665 : f32
    %98 = vector.broadcast %cst_82 : f32 to vector<128x128xf32>
    %99 = arith.minimumf %97, %98 : vector<128x128xf32>
    %100 = math.exp %99 : vector<128x128xf32>
    %101 = vector.broadcast %73 : vector<1x128xf32> to vector<128x128xf32>
    %102 = arith.mulf %100, %101 : vector<128x128xf32>
    %cst_83 = arith.constant 5.000000e-01 : f32
    %103 = vector.broadcast %cst_83 : f32 to vector<128x128xf32>
    %104 = arith.mulf %103, %102 : vector<128x128xf32>
    %105 = arith.subf %92, %104 : vector<128x128xf32>
    %106 = vector.broadcast %66 : f32 to vector<128x128xf32>
    %107 = arith.mulf %105, %106 : vector<128x128xf32>
    %cst_84 = arith.constant 0.000000e+00 : f32
    %108 = vector.broadcast %cst_84 : f32 to vector<128x128xf32>
    %109 = arith.maximumf %108, %107 : vector<128x128xf32>
    %110 = vector.broadcast %70 : f32 to vector<128x128xf32>
    %111 = arith.minimumf %110, %109 : vector<128x128xf32>
    %c0_85 = arith.constant 0 : index
    %c0_86 = arith.constant 0 : index
    %c128_87 = arith.constant 128 : index
    %112 = vector.load %arg14[%c0_85, %c0_86, %c128_87] : memref<1x128x640xf32, #tpu.memory_space<vmem>>, vector<1x128x128xf32>
    %113 = vector.shape_cast %112 : vector<1x128x128xf32> to vector<128x128xf32>
    %114 = vector.shape_cast %111 : vector<128x128xf32> to vector<1x128x128xf32>
    tpu.vector_store %arg14[%c0_85, %c0_86, %c128_87], %114 {strides = array<i32>} : memref<1x128x640xf32, #tpu.memory_space<vmem>>, vector<1x128x128xf32>,
    %cst_88 = arith.constant 5.000000e-01 : f32
    %115 = vector.broadcast %cst_88 : f32 to vector<128x128xf32>
    %116 = arith.mulf %115, %102 : vector<128x128xf32>
    %117 = arith.addf %92, %116 : vector<128x128xf32>
    %118 = vector.broadcast %66 : f32 to vector<128x128xf32>
    %119 = arith.mulf %117, %118 : vector<128x128xf32>
    %cst_89 = arith.constant 0.000000e+00 : f32
    %120 = vector.broadcast %cst_89 : f32 to vector<128x128xf32>
    %121 = arith.maximumf %120, %119 : vector<128x128xf32>
    %122 = vector.broadcast %70 : f32 to vector<128x128xf32>
    %123 = arith.minimumf %122, %121 : vector<128x128xf32>
    %c0_90 = arith.constant 0 : index
    %c0_91 = arith.constant 0 : index
    %c384_92 = arith.constant 384 : index
    %124 = vector.load %arg14[%c0_90, %c0_91, %c384_92] : memref<1x128x640xf32, #tpu.memory_space<vmem>>, vector<1x128x128xf32>
    %125 = vector.shape_cast %124 : vector<1x128x128xf32> to vector<128x128xf32>
    %126 = vector.shape_cast %123 : vector<128x128xf32> to vector<1x128x128xf32>
    tpu.vector_store %arg14[%c0_90, %c0_91, %c384_92], %126 {strides = array<i32>} : memref<1x128x640xf32, #tpu.memory_space<vmem>>, vector<1x128x128xf32>,
    %c0_93 = arith.constant 0 : index
    %c256 = arith.constant 256 : index
    %127 = vector.load %arg9[%c0_93, %c256] : memref<128x640xbf16, #tpu.memory_space<vmem>>, vector<128x128xbf16>
    %cst_94 = arith.constant dense<0.000000e+00> : vector<128x128xf32>
    %128 = tpu.matmul %64, %127, %cst_94 {dimension_numbers = #tpu.dot_dimension_numbers<[1], [0], [0], [1], [0, 0, 1, 1], [], []>} : vector<128x128xbf16>, vector<128x128xbf16>, vector<128x128xf32> -> vector<128x128xf32>
    %c0_95 = arith.constant 0 : index
    %c256_96 = arith.constant 256 : index
    %129 = vector.load %arg10[%c0_95, %c256_96] : memref<1x640xf32, #tpu.memory_space<vmem>>, vector<1x128xf32>
    %130 = vector.broadcast %129 : vector<1x128xf32> to vector<128x128xf32>
    %131 = arith.addf %128, %130 : vector<128x128xf32>
    %132 = vector.broadcast %73 : vector<1x128xf32> to vector<128x128xf32>
    %133 = arith.mulf %131, %132 : vector<128x128xf32>
    %134 = vector.broadcast %75 : vector<128x1xf32> to vector<128x128xf32>
    %135 = arith.addf %133, %134 : vector<128x128xf32>
    %c0_97 = arith.constant 0 : index
    %c512 = arith.constant 512 : index
    %136 = vector.load %arg9[%c0_97, %c512] : memref<128x640xbf16, #tpu.memory_space<vmem>>, vector<128x128xbf16>
    %cst_98 = arith.constant dense<0.000000e+00> : vector<128x128xf32>
    %137 = tpu.matmul %64, %136, %cst_98 {dimension_numbers = #tpu.dot_dimension_numbers<[1], [0], [0], [1], [0, 0, 1, 1], [], []>} : vector<128x128xbf16>, vector<128x128xbf16>, vector<128x128xf32> -> vector<128x128xf32>
    %c0_99 = arith.constant 0 : index
    %c512_100 = arith.constant 512 : index
    %138 = vector.load %arg10[%c0_99, %c512_100] : memref<1x640xf32, #tpu.memory_space<vmem>>, vector<1x128xf32>
    %139 = vector.broadcast %138 : vector<1x128xf32> to vector<128x128xf32>
    %140 = arith.addf %137, %139 : vector<128x128xf32>
    %cst_101 = arith.constant 4.13516665 : f32
    %141 = vector.broadcast %cst_101 : f32 to vector<128x128xf32>
    %142 = arith.minimumf %140, %141 : vector<128x128xf32>
    %143 = math.exp %142 : vector<128x128xf32>
    %144 = vector.broadcast %73 : vector<1x128xf32> to vector<128x128xf32>
    %145 = arith.mulf %143, %144 : vector<128x128xf32>
    %cst_102 = arith.constant 5.000000e-01 : f32
    %146 = vector.broadcast %cst_102 : f32 to vector<128x128xf32>
    %147 = arith.mulf %146, %145 : vector<128x128xf32>
    %148 = arith.subf %135, %147 : vector<128x128xf32>
    %149 = vector.broadcast %68 : f32 to vector<128x128xf32>
    %150 = arith.mulf %148, %149 : vector<128x128xf32>
    %cst_103 = arith.constant 0.000000e+00 : f32
    %151 = vector.broadcast %cst_103 : f32 to vector<128x128xf32>
    %152 = arith.maximumf %151, %150 : vector<128x128xf32>
    %153 = vector.broadcast %72 : f32 to vector<128x128xf32>
    %154 = arith.minimumf %153, %152 : vector<128x128xf32>
    %c0_104 = arith.constant 0 : index
    %c0_105 = arith.constant 0 : index
    %c256_106 = arith.constant 256 : index
    %155 = vector.load %arg14[%c0_104, %c0_105, %c256_106] : memref<1x128x640xf32, #tpu.memory_space<vmem>>, vector<1x128x128xf32>
    %156 = vector.shape_cast %155 : vector<1x128x128xf32> to vector<128x128xf32>
    %157 = vector.shape_cast %154 : vector<128x128xf32> to vector<1x128x128xf32>
    tpu.vector_store %arg14[%c0_104, %c0_105, %c256_106], %157 {strides = array<i32>} : memref<1x128x640xf32, #tpu.memory_space<vmem>>, vector<1x128x128xf32>,
    %cst_107 = arith.constant 5.000000e-01 : f32
    %158 = vector.broadcast %cst_107 : f32 to vector<128x128xf32>
    %159 = arith.mulf %158, %145 : vector<128x128xf32>
    %160 = arith.addf %135, %159 : vector<128x128xf32>
    %161 = vector.broadcast %68 : f32 to vector<128x128xf32>
    %162 = arith.mulf %160, %161 : vector<128x128xf32>
    %cst_108 = arith.constant 0.000000e+00 : f32
    %163 = vector.broadcast %cst_108 : f32 to vector<128x128xf32>
    %164 = arith.maximumf %163, %162 : vector<128x128xf32>
    %165 = vector.broadcast %72 : f32 to vector<128x128xf32>
    %166 = arith.minimumf %165, %164 : vector<128x128xf32>
    %c0_109 = arith.constant 0 : index
    %c0_110 = arith.constant 0 : index
    %c512_111 = arith.constant 512 : index
    %167 = vector.load %arg14[%c0_109, %c0_110, %c512_111] : memref<1x128x640xf32, #tpu.memory_space<vmem>>, vector<1x128x128xf32>
    %168 = vector.shape_cast %167 : vector<1x128x128xf32> to vector<128x128xf32>
    %169 = vector.shape_cast %166 : vector<128x128xf32> to vector<1x128x128xf32>
    tpu.vector_store %arg14[%c0_109, %c0_110, %c512_111], %169 {strides = array<i32>} : memref<1x128x640xf32, #tpu.memory_space<vmem>>, vector<1x128x128xf32>,
    return
  }
  func.func @transform_0(%arg0: i32, %arg1: i32) -> (i32, i32) {
    %c0_i32 = arith.constant 0 : i32
    %c0_i32_0 = arith.constant 0 : i32
    %c0_i32_1 = arith.constant 0 : i32
    return %c0_i32, %c0_i32_0 : i32, i32
  }
  func.func @transform_1(%arg0: i32, %arg1: i32) -> (i32, i32, i32, i32) {
    %c0_i32 = arith.constant 0 : i32
    %c0_i32_0 = arith.constant 0 : i32
    %c0_i32_1 = arith.constant 0 : i32
    return %arg0, %arg1, %c0_i32, %c0_i32_0 : i32, i32, i32, i32
  }
  func.func @transform_2(%arg0: i32, %arg1: i32) -> (i32, i32, i32) {
    %c0_i32 = arith.constant 0 : i32
    %c0_i32_0 = arith.constant 0 : i32
    %c0_i32_1 = arith.constant 0 : i32
    return %arg1, %c0_i32, %c0_i32_0 : i32, i32, i32
  }
  func.func @transform_3(%arg0: i32, %arg1: i32) -> (i32, i32) {
    %c0_i32 = arith.constant 0 : i32
    %c0_i32_0 = arith.constant 0 : i32
    %c0_i32_1 = arith.constant 0 : i32
    return %c0_i32, %c0_i32_0 : i32, i32
  }
  func.func @transform_4(%arg0: i32, %arg1: i32) -> (i32, i32) {
    %c0_i32 = arith.constant 0 : i32
    %c0_i32_0 = arith.constant 0 : i32
    %c0_i32_1 = arith.constant 0 : i32
    return %c0_i32, %c0_i32_0 : i32, i32
  }
  func.func @transform_5(%arg0: i32, %arg1: i32) -> (i32, i32, i32) {
    %c0_i32 = arith.constant 0 : i32
    %c0_i32_0 = arith.constant 0 : i32
    %c0_i32_1 = arith.constant 0 : i32
    %c0_i32_2 = arith.constant 0 : i32
    return %c0_i32, %c0_i32_0, %c0_i32_1 : i32, i32, i32
  }
  func.func @transform_6(%arg0: i32, %arg1: i32) -> (i32, i32) {
    %c0_i32 = arith.constant 0 : i32
    %c0_i32_0 = arith.constant 0 : i32
    %c0_i32_1 = arith.constant 0 : i32
    return %c0_i32, %c0_i32_0 : i32, i32
  }
  func.func @transform_7(%arg0: i32, %arg1: i32) -> (i32, i32) {
    %c0_i32 = arith.constant 0 : i32
    %c0_i32_0 = arith.constant 0 : i32
    %c0_i32_1 = arith.constant 0 : i32
    return %c0_i32, %c0_i32_0 : i32, i32
  }
  func.func @transform_8(%arg0: i32, %arg1: i32) -> (i32, i32) {
    %c0_i32 = arith.constant 0 : i32
    %c0_i32_0 = arith.constant 0 : i32
    %c0_i32_1 = arith.constant 0 : i32
    return %c0_i32, %c0_i32_0 : i32, i32
  }
  func.func @transform_9(%arg0: i32, %arg1: i32) -> (i32, i32) {
    %c0_i32 = arith.constant 0 : i32
    %c0_i32_0 = arith.constant 0 : i32
    %c0_i32_1 = arith.constant 0 : i32
    return %c0_i32, %c0_i32_0 : i32, i32
  }
  func.func @transform_10(%arg0: i32, %arg1: i32) -> (i32, i32) {
    %c0_i32 = arith.constant 0 : i32
    %c0_i32_0 = arith.constant 0 : i32
    return %arg1, %c0_i32 : i32, i32
  }
  func.func @transform_11(%arg0: i32, %arg1: i32) -> (i32, i32) {
    %c0_i32 = arith.constant 0 : i32
    %c0_i32_0 = arith.constant 0 : i32
    return %arg1, %c0_i32 : i32, i32
  }
  func.func @transform_12(%arg0: i32, %arg1: i32) -> (i32, i32, i32) {
    %c0_i32 = arith.constant 0 : i32
    %c0_i32_0 = arith.constant 0 : i32
    return %arg0, %arg1, %c0_i32 : i32, i32, i32
  }
}

</mosaic_0001>

<bundles_post_ra>
// kernel: _dense_forward.1
= control target key start
LH: loop header
LB: loop body
LE: loop exit
PB: predicated region body
PF: predicated region fallthrough
CT: control target
= control target key end

     0   :  { %s8205_s0 = inlined_call_operand.vmem [shape: f32[2,4], index: 0, kind: input, shape index: {}]   ;;  %s8206_s1 = inlined_call_operand.vmem [shape: bf16[2,3,176,32], index: 1, kind: input, shape index: {}]   ;;  %s8207_s2 = inlined_call_operand.vmem [shape: f32[3,176,1], index: 2, kind: input, shape index: {}]   ;;  %s8208_s3 = inlined_call_operand.vmem [shape: bf16[32,128], index: 3, kind: input, shape index: {}]   ;;  %s8209_s4 = inlined_call_operand.vmem [shape: f32[1,128], index: 4, kind: input, shape index: {}, may-alias: {4,6}]   ;;  %s8210_s5 = inlined_call_operand.vmem [shape: bf16[9,128,128], index: 5, kind: input, shape index: {}]   ;;  %s8211_s6 = inlined_call_operand.vmem [shape: f32[1,128], index: 6, kind: input, shape index: {}, may-alias: {4,6}]   ;;  %s8212_s7 = inlined_call_operand.vmem [shape: bf16[128,640], index: 7, kind: input, shape index: {}]   ;;  %s8213_s8 = inlined_call_operand.vmem [shape: f32[1,640], index: 8, kind: input, shape index: {}]   ;;  %s8214_s9 = inlined_call_operand.vmem [shape: f32[1,128], index: 9, kind: input, shape index: {}]   ;;  %s8215_s10 = inlined_call_operand.vmem [shape: f32[384,1], index: 10, kind: input, shape index: {}]   ;;  %s8216_s11 = inlined_call_operand.vmem [shape: f32[384,1], index: 11, kind: input, shape index: {}]   ;;  %s8217_s12 = inlined_call_operand.vmem [shape: f32[2,384,640], index: 12, kind: output, shape index: {}]  }
   0x1   :  { %8224 = sst [smem:[#allocation7_spill]] %s8205_s0 }
   0x2   :  { %8225 = sst [smem:[#allocation8_spill]] %s8208_s3 }
   0x3   :  { %17 = vsyncpa [#allocation4], 0  ;;  %s6454_s21 = smov 0   ;;  %s6456_s22 = smov 0  }
   0x4   :  { %s6458_s23 = smov 0   ;;  %s6460_s24 = smov 0  }
   0x5   :  { %s6462_s25 = smov 0  }
   0x6 LB: > { %s4924_s26 = sadd.s32 4294967295, %s6383_s25   ;;  %s32_s27 = sadd.s32 1, %s6375_s23  ;;  %s6383_s25 = sphi %s6462_s25, %s23_s25   ;;  %s6379_s24 = sphi %s6460_s24, %s8241_s24   ;;  %s6375_s23 = sphi %s6458_s23, %s8240_s23   ;;  %s6371_s22 = sphi %s6456_s22, %s8239_s22   ;;  %s6367_s21 = sphi %s6454_s21, %s8238_s21  }
   0x7   : > { %p33_p0 = scmp.ge.s32.totalorder %s32_s27, 3  ;;  %s35_s28 = sadd.s32 1, %s6379_s24 }
   0x8   : > { %p4926_p1 = scmp.ge.s32.totalorder %s6383_s25, 1  ;;  %p342_p2 = scmp.lt.s32.totalorder %s6383_s25, 7 }
   0x9   : > { %s8243_s27 = smov (%p33_p0, %s32_s27), 0  ;;  %s8245_s28 = smov (!%p33_p0, %s35_s28), %s6379_s24 }
   0xa   : > { %p6487_p3 = pnand %p4926_p1, %p342_p2  ;;  %p37_p4 = scmp.ge.s32.totalorder %s8245_s28, 2 }
   0xb   : > { %p6491_p5 = scmp.eq.s32.totalorder %s4924_s26, 0  ;;  %s8228_s0 = sld [smem:[#allocation7_spill]] }
   0xc   : > { %p6084_p6 = pneg %p6487_p3  ;;  %s8247_s28 = smov (%p37_p4, %s8245_s28), 0 }
   0xd   : > { %8229 = sst [smem:[#allocation6_spill]] %s8247_s28 }
   0xe   : > { %p6085_p7 = pnand %p6491_p5, %p6084_p6 }
  0x10   : > { %p6328_p9 = pneg %p6085_p7 }
  0x11   : > { %s355_s15 = sshll.u32 %s8228_s0, 4  ;;  %s356_s15 = int_to_ptr.vmem [resolvable:$true] %s355_s15 }
  0x12   : > { %s6326_s16 = scalar_lea.vmem %s356_s15, 32  ;;  %p6334_p12 = scmp.lt.s32.totalorder %s356_s15, %s356_s15 }
  0x13   : > { %p6327_p8 = scmp.ne.s32.totalorder %s356_s15, %s6326_s16  ;;  %p6335_p13 = scmp.lt.s32.totalorder %s6326_s16, %s6326_s16 }
  0x15   : > { %p6329_p10 = pnand %p6328_p9, %p6327_p8  ;;  %p6336_p0 = por %p6335_p13, %p6334_p12 }
  0x17   : > { %p6330_p11 = pneg %p6329_p10 }
  0x19   : > { %p6337_p1 = pnand %p6336_p0, %p6330_p11 }
  0x1b   : > { %6340 = shalt.err (!%p6337_p1)
}
  0x1c   : > { %s6385_s17 = smov [#allocation3]   ;;  %427 = sbr.rel (%p6487_p3) target bundleno = 1200 (0x4b0), region = 68 }
  0x1d   : > { %6087 = dma.vmem_to_smem (!%p6085_p7), %s356_s15, 32, %s6385_s17, [#allocation4]  }
  0x23   : > { %6362 = dma.done.wait (%p6491_p5), [#allocation4], 32  }
  0x24   : > { %6364 = vsyncadd (%p6491_p5), [#allocation4], 4294967264 }
  0x25   : > { %433 = sfence }
  0x26   : > { %s8230_s3 = sld [smem:[#allocation8_spill]]  ;;  %v6386_v1 = vmov 0.0   ;;  %vm6387_vm0 = vmmov 0   ;;  %p494_p2 = scmp.lt.s32.totalorder %s6371_s22, 1  ;;  %v6388_v3 = vmov 0   ;;  %vm632_vm1 = vcmask 261120  }
  0x27   : > { %5451 = vmatprep.subr.bf16.mxu0 %v6386_v1  ;;  %5455 = vmatprep.mubr.msk.bf16.mxu0 %vm6387_vm0, %v6386_v1  ;;  %p496_p3 = scmp.lt.s32.totalorder %s6367_s21, 2  ;;  %s4933_s14 = sshll.u32 %s6367_s21, 4  ;;  %v6149_v59 = vld [vmem:[%s8210_s5 + $0x40] sm:$0xff]   ;;  %v6151_v63 = vld [vmem:[%s8210_s5 + $0x48] sm:$0xff]   ;;  %vm1037_vm2 = vcmask 1044480   ;;  %vm1977_vm5 = vcmask 1043456  }
  0x28   : > { %6135 = vset.pattern.permute.xlu1 %v6388_v3  ;;  %s6523_s29 = scalar_select %p494_p2, %s6371_s22, 1  ;;  %6134 = vset.pattern.permute.xlu0 %v6388_v3  ;;  %v6150_v62 = vld [vmem:[%s8210_s5] sm:$0xff]   ;;  %v6153_v3 = vld [vmem:[%s8210_s5 + $0x50] sm:$0xff]   ;;  %vm1208_vm3 = vsmask.f32 5376  ;;  %vm2699_vm8 = vcmask 1042432  }
  0x29   : > { %s497_s30 = scalar_select %p496_p3, %s6367_s21, 2  ;;  %5531 = vmatprep.subr.bf16.mxu1 %v6150_v62  ;;  %vm1460_vm4 = vsmask.f32 4352  ;;  %vm2182_vm6 = vsmask.f32 3328 }
  0x2a   : > { %s6076_s13 = smul.u32 66, %s6523_s29  ;;  %p509_p4 = scmp.lt.s32.totalorder %s4933_s14, 47  ;;  %5532 = vmatpush3.bf16.msra.mxu1 %v6150_v62  ;;  %vm2904_vm7 = vsmask.f32 2304 }
  0x2b   : > { %s6075_s15 = smul.u32 22, %s497_s30 }
  0x2c   : > { %v6136_v0 = vld [vmem:[%s8230_s3] sm:$0xff]   ;;  %v6137_v2 = vld [vmem:[%s8230_s3 + $0x8] sm:$0xff]   ;;  %s6077_s16 = smul.u32 176, %s497_s30  ;;  %s8249_s14 = smov (!%p509_p4, %s4933_s14), 47 }
  0x2d   : > { %5452 = vmatpush3.bf16.msra.mxu0 %v6136_v0  ;;  %s500_s17 = sadd.s32 %s6076_s13, %s6075_s15  ;;  %s6079_s21 = smul.u32 240, %s6523_s29 }
  0x2e   : > { %5453 = vmatprep.subr.bf16.mxu0 %v6386_v1  ;;  %s4931_s18 = sshll.u32 %s500_s17, 2  ;;  %s6531_s26 = scalar_lea.vmem %s8207_s2, %s6077_s16 }
  0x2f   : > { %s6536_s28 = scalar_lea.vmem %s8206_s1, %s4931_s18  ;;  %v811_v4 = vld [vmem:[%s6531_s26 + $0x10] sm:$0xff]  ;;  %v809_v5 = vld [vmem:[%s6531_s26] sm:$0xff]  ;;  %v812_v7 = vld [vmem:[%s6531_s26 + $0x18] sm:$0xff]  ;;  %s6078_s0 = smul.u32 5, %s8249_s14 }
  0x30   : > { %v6138_v6 = vld [vmem:[%s6536_s28] sm:$0xff]   ;;  %843 = vperm.xlu1 %6135, %v811_v4   ;;  %833 = vperm.xlu0 %6134, %v809_v5   ;;  %v810_v8 = vld [vmem:[%s6531_s26 + $0x8] sm:$0xff]  ;;  %v816_v12 = vld [vmem:[%s6531_s26 + $0x38] sm:$0xff]  ;;  %s4934_s29 = sshll.u32 %s8249_s14, 3 }
  0x31   : > { %5454 = vmatpush3.bf16.msra.mxu0 %v6137_v2  ;;  %v814_v9 = vld [vmem:[%s6531_s26 + $0x28] sm:$0xff]  ;;  %v813_v10 = vld [vmem:[%s6531_s26 + $0x20] sm:$0xff]  ;;  %s6552_s3 = sadd.s32 %s6079_s21, %s6078_s0  ;;  %v815_v13 = vld [vmem:[%s6531_s26 + $0x30] sm:$0xff]  ;;  %s6593_s15 = scalar_lea.vmem %s8215_s10, %s4934_s29 }
  0x32   : > { %v6139_v11 = vld [vmem:[%s6536_s28 + $0x8] sm:$0xff]   ;;  %v817_v15 = vld [vmem:[%s6531_s26 + $0x40] sm:$0xff]  ;;  %v6140_v16 = vld [vmem:[%s6536_s28 + $0x10] sm:$0xff]   ;;  %s6632_s18 = scalar_lea.vmem %s8216_s11, %s4934_s29  ;;  %5499 = vmatprep.subr.bf16.mxu0 %v6149_v59  ;;  %s4938_s21 = sshll.u32 %s6552_s3, 3 }
  0x33   : > { %v818_v14 = vld [vmem:[%s6531_s26 + $0x48] sm:$0xff]  ;;  %v820_v17 = vld [vmem:[%s6531_s26 + $0x58] sm:$0xff]  ;;  %v819_v18 = vld [vmem:[%s6531_s26 + $0x50] sm:$0xff]  ;;  %s7533_s3 = sshll.u32 %s6371_s22, 7 }
  0x34   : > { %5456 = vmatmul.mubr.msk.bf16.vlgmr.msra.gmra.mrb[0].mxu0 %vm632_vm1, %v6138_v6  ;;  %848 = vperm.xlu1 %6135, %v812_v7   ;;  %v822_v19 = vld [vmem:[%s6531_s26 + $0x68] sm:$0xff]  ;;  %v821_v20 = vld [vmem:[%s6531_s26 + $0x60] sm:$0xff]  ;;  %v6141_v21 = vld [vmem:[%s6536_s28 + $0x18] sm:$0xff]   ;;  %s3168_s16 = sadd.s32 1, %s7533_s3  ;;  %s3167_s19 = sld [smem:[#allocation3 + %s7533_s3]] }
  0x35   : > { %5459 = vmatprep.mubr.msk.bf16.mxu0 %vm6387_vm0, %v6386_v1  ;;  %838 = vperm.xlu0 %6134, %v810_v8   ;;  %v824_v22 = vld [vmem:[%s6531_s26 + $0x78] sm:$0xff]  ;;  %v823_v23 = vld [vmem:[%s6531_s26 + $0x70] sm:$0xff]  ;;  %v826_v24 = vld [vmem:[%s6531_s26 + $0x88] sm:$0xff]  ;;  %s3172_s29 = sadd.s32 3, %s7533_s3 }
  0x36   : > { %v825_v25 = vld [vmem:[%s6531_s26 + $0x80] sm:$0xff]  ;;  %v828_v27 = vld [vmem:[%s6531_s26 + $0x98] sm:$0xff]  ;;  %v827_v28 = vld [vmem:[%s6531_s26 + $0x90] sm:$0xff]  ;;  %5500 = vmatpush3.bf16.msra.mxu0 %v6149_v59  ;;  %s7765_s30 = sld [smem:[#allocation3 + %s3172_s29]] }
  0x37   : > { %v6142_v26 = vld [vmem:[%s6536_s28 + $0x20] sm:$0xff]   ;;  %v830_v29 = vld [vmem:[%s6531_s26 + $0xa8] sm:$0xff]  ;;  %v3178_v34 = vld [vmem:[%s6593_s15 + $0x18] sm:$0xff]  ;;  %5501 = vmatprep.subr.bf16.mxu0 %v6151_v63 }
  0x38   : > { %858 = vperm.xlu1 %6135, %v814_v9   ;;  %v829_v30 = vld [vmem:[%s6531_s26 + $0xa0] sm:$0xff]  ;;  %v6143_v31 = vld [vmem:[%s6536_s28 + $0x28] sm:$0xff]   ;;  %v3177_v35 = vld [vmem:[%s6593_s15 + $0x10] sm:$0xff] }
  0x39   : > { %853 = vperm.xlu0 %6134, %v813_v10   ;;  %v3176_v32 = vld [vmem:[%s6593_s15 + $0x8] sm:$0xff]  ;;  %v3175_v33 = vld [vmem:[%s6593_s15] sm:$0xff]  ;;  %v6144_v36 = vld [vmem:[%s6536_s28 + $0x30] sm:$0xff]  }
  0x3a   : > { %v3180_v37 = vld [vmem:[%s6593_s15 + $0x28] sm:$0xff]  ;;  %v3179_v38 = vld [vmem:[%s6593_s15 + $0x20] sm:$0xff]  ;;  %v3182_v39 = vld [vmem:[%s6593_s15 + $0x38] sm:$0xff]  ;;  %5502 = vmatpush3.bf16.msra.mxu0 %v6151_v63 }
  0x3b   : > { %v3181_v40 = vld [vmem:[%s6593_s15 + $0x30] sm:$0xff]  ;;  %v6145_v41 = vld [vmem:[%s6536_s28 + $0x38] sm:$0xff]   ;;  %v3184_v42 = vld [vmem:[%s6593_s15 + $0x48] sm:$0xff]  ;;  %5503 = vmatprep.subr.bf16.mxu0 %v6153_v3 }
  0x3c   : > { %5460 = vmatmul.mubr.msk.bf16.gmra.mrb[4].mxu0 %vm632_vm1, %v6139_v11  ;;  %868 = vperm.xlu1 %6135, %v816_v12   ;;  %v3183_v43 = vld [vmem:[%s6593_s15 + $0x40] sm:$0xff]  ;;  %v3186_v44 = vld [vmem:[%s6593_s15 + $0x58] sm:$0xff]  ;;  %v3185_v45 = vld [vmem:[%s6593_s15 + $0x50] sm:$0xff] }
  0x3d   : > { %5463 = vmatprep.mubr.msk.bf16.mxu0 %vm6387_vm0, %v6386_v1  ;;  %863 = vperm.xlu0 %6134, %v815_v13   ;;  %v6146_v46 = vld [vmem:[%s6536_s28 + $0x40] sm:$0xff]   ;;  %v3188_v47 = vld [vmem:[%s6593_s15 + $0x68] sm:$0xff]  ;;  %v3190_v49 = vld [vmem:[%s6593_s15 + $0x78] sm:$0xff] }
  0x3e   : > { %v3187_v48 = vld [vmem:[%s6593_s15 + $0x60] sm:$0xff]  ;;  %v3189_v50 = vld [vmem:[%s6593_s15 + $0x70] sm:$0xff]  ;;  %v6147_v51 = vld [vmem:[%s6536_s28 + $0x48] sm:$0xff]   ;;  %5504 = vmatpush3.bf16.msra.mxu0 %v6153_v3  ;;  %s7510_s15 = scalar_lea.vmem %s8217_s12, %s4938_s21 }
  0x3f   : > { %v3192_v52 = vld [vmem:[%s6632_s18 + $0x8] sm:$0xff]  ;;  %v3191_v53 = vld [vmem:[%s6632_s18] sm:$0xff]  ;;  %v3194_v54 = vld [vmem:[%s6632_s18 + $0x18] sm:$0xff] }
  0x40   : > { %878 = vperm.xlu1 %6135, %v818_v14   ;;  %v3193_v55 = vld [vmem:[%s6632_s18 + $0x10] sm:$0xff]  ;;  %v3196_v57 = vld [vmem:[%s6632_s18 + $0x28] sm:$0xff]  ;;  %v3195_v58 = vld [vmem:[%s6632_s18 + $0x20] sm:$0xff] }
  0x41   : > { %873 = vperm.xlu0 %6134, %v817_v15   ;;  %v6148_v56 = vld [vmem:[%s6536_s28 + $0x50] sm:$0xff]   ;;  %v3198_v60 = vld [vmem:[%s6632_s18 + $0x38] sm:$0xff]  ;;  %v3200_v0 = vld [vmem:[%s6632_s18 + $0x48] sm:$0xff]  ;;  %s3169_s28 = sld [smem:[#allocation3 + %s3168_s16]] }
  0x42   : > { %v3197_v61 = vld [vmem:[%s6632_s18 + $0x30] sm:$0xff]  ;;  %v6152_v2 = vld [vmem:[%s8210_s5 + $0x8] sm:$0xff]   ;;  %v3202_v4 = vld [vmem:[%s6632_s18 + $0x58] sm:$0xff] }
  0x43   : > { %v3201_v5 = vld [vmem:[%s6632_s18 + $0x50] sm:$0xff]  ;;  %5533 = vmatprep.subr.bf16.mxu1 %v6152_v2  ;;  %v6155_v7 = vld [vmem:[%s8210_s5 + $0x58] sm:$0xff]   ;;  %v3204_v8 = vld [vmem:[%s6632_s18 + $0x68] sm:$0xff] }
  0x44   : > { %5464 = vmatmul.mubr.msk.bf16.gmra.mrb[8].mxu0 %vm632_vm1, %v6140_v16  ;;  %888 = vperm.xlu1 %6135, %v820_v17   ;;  %v6154_v6 = vld [vmem:[%s8210_s5 + $0x10] sm:$0xff]   ;;  %v3203_v9 = vld [vmem:[%s6632_s18 + $0x60] sm:$0xff]  ;;  %v6156_v10 = vld [vmem:[%s8210_s5 + $0x18] sm:$0xff]  }
  0x45   : > { %5467 = vmatprep.mubr.msk.bf16.mxu0 %vm6387_vm0, %v6386_v1  ;;  %883 = vperm.xlu0 %6134, %v819_v18   ;;  %v6157_v11 = vld [vmem:[%s8210_s5 + $0x60] sm:$0xff]   ;;  %v3206_v12 = vld [vmem:[%s6632_s18 + $0x78] sm:$0xff]  ;;  %v3205_v13 = vld [vmem:[%s6632_s18 + $0x70] sm:$0xff] }
  0x46   : > { %5534 = vmatpush3.bf16.msra.mxu1 %v6152_v2  ;;  %5505 = vmatprep.subr.bf16.mxu0 %v6155_v7  ;;  %v6158_v14 = vld [vmem:[%s8210_s5 + $0x20] sm:$0xff]   ;;  %v6159_v15 = vld [vmem:[%s8210_s5 + $0x68] sm:$0xff]   ;;  %v6161_v17 = vld [vmem:[%s8210_s5 + $0x70] sm:$0xff]  }
  0x47   : > { %5535 = vmatprep.subr.bf16.mxu1 %v6154_v6  ;;  %5506 = vmatpush3.bf16.msra.mxu0 %v6155_v7  ;;  %v6160_v16 = vld [vmem:[%s8210_s5 + $0x28] sm:$0xff]   ;;  %v6162_v18 = vld [vmem:[%s8210_s5 + $0x30] sm:$0xff]  }
  0x48   : > { %898 = vperm.xlu1 %6135, %v822_v19   ;;  %5507 = vmatprep.subr.bf16.mxu0 %v6157_v11  ;;  %v6163_v19 = vld [vmem:[%s8210_s5 + $0x78] sm:$0xff]  }
  0x49   : > { %893 = vperm.xlu0 %6134, %v821_v20   ;;  %v6164_v20 = vld [vmem:[%s8210_s5 + $0x38] sm:$0xff]  }
  0x4a   : > { %5536 = vmatpush3.bf16.msra.mxu1 %v6154_v6 }
  0x4b   : > { %5537 = vmatprep.subr.bf16.mxu1 %v6156_v10  ;;  %5508 = vmatpush3.bf16.msra.mxu0 %v6157_v11 }
  0x4c   : > { %5468 = vmatmul.mubr.msk.bf16.gmra.mrb[12].mxu0 %vm632_vm1, %v6141_v21  ;;  %908 = vperm.xlu1 %6135, %v824_v22   ;;  %v6706_v21 = vld [vmem:[%s8210_s5 + $0x80] sm:$0xff]  }
  0x4d   : > { %5471 = vmatprep.mubr.msk.bf16.mxu0 %vm6387_vm0, %v6386_v1  ;;  %903 = vperm.xlu0 %6134, %v823_v23   ;;  %v6712_v22 = vld [vmem:[%s8209_s4] ss:$0 sm:$0xff] }
  0x4e   : > { %5538 = vmatpush3.bf16.msra.mxu1 %v6156_v10  ;;  %5509 = vmatprep.subr.bf16.mxu0 %v6159_v15 }
  0x4f   : > { %5539 = vmatprep.subr.bf16.mxu1 %v6158_v14  ;;  %5510 = vmatpush3.bf16.msra.mxu0 %v6159_v15 }
  0x50   : > { %918 = vperm.xlu1 %6135, %v826_v24   ;;  %5511 = vmatprep.subr.bf16.mxu0 %v6161_v17 }
  0x51   : > { %913 = vperm.xlu0 %6134, %v825_v25  }
  0x52   : > { %5540 = vmatpush3.bf16.msra.mxu1 %v6158_v14 }
  0x53   : > { %5541 = vmatprep.subr.bf16.mxu1 %v6160_v16  ;;  %5512 = vmatpush3.bf16.msra.mxu0 %v6161_v17 }
  0x54   : > { %5472 = vmatmul.mubr.msk.bf16.gmra.mrb[16].mxu0 %vm632_vm1, %v6142_v26  ;;  %928 = vperm.xlu1 %6135, %v828_v27  }
  0x55   : > { %5475 = vmatprep.mubr.msk.bf16.mxu0 %vm6387_vm0, %v6386_v1  ;;  %923 = vperm.xlu0 %6134, %v827_v28  }
  0x56   : > { %5542 = vmatpush3.bf16.msra.mxu1 %v6160_v16  ;;  %5513 = vmatprep.subr.bf16.mxu0 %v6163_v19 }
  0x57   : > { %5543 = vmatprep.subr.bf16.mxu1 %v6162_v18  ;;  %5514 = vmatpush3.bf16.msra.mxu0 %v6163_v19 }
  0x58   : > { %938 = vperm.xlu1 %6135, %v830_v29  }
  0x59   : > { %933 = vperm.xlu0 %6134, %v829_v30  }
  0x5a   : > { %5544 = vmatpush3.bf16.msra.mxu1 %v6162_v18 }
  0x5b   : > { %5545 = vmatprep.subr.bf16.mxu1 %v6164_v20 }
  0x5c   : > { %5476 = vmatmul.mubr.msk.bf16.gmra.mrb[20].mxu0 %vm632_vm1, %v6143_v31  ;;  %3588 = vperm.xlu1 %6135, %v3176_v32  }
  0x5d   : > { %5479 = vmatprep.mubr.msk.bf16.mxu0 %vm6387_vm0, %v6386_v1  ;;  %3583 = vperm.xlu0 %6134, %v3175_v33  }
  0x5e   : > { %5546 = vmatpush3.bf16.msra.mxu1 %v6164_v20 }
  0x5f   : > { %5563 = vmatprep.subr.bf16.mxu1 %v6706_v21 }
  0x60   : > { %3598 = vperm.xlu1 %6135, %v3178_v34  }
  0x61   : > { %3593 = vperm.xlu0 %6134, %v3177_v35  }
  0x64   : > { %5480 = vmatmul.mubr.msk.bf16.gmra.mrb[24].mxu0 %vm632_vm1, %v6144_v36  ;;  %3608 = vperm.xlu1 %6135, %v3180_v37  }
  0x65   : > { %5483 = vmatprep.mubr.msk.bf16.mxu0 %vm6387_vm0, %v6386_v1  ;;  %3603 = vperm.xlu0 %6134, %v3179_v38  }
  0x68   : > { %3618 = vperm.xlu1 %6135, %v3182_v39  }
  0x69   : > { %3613 = vperm.xlu0 %6134, %v3181_v40  }
  0x6c   : > { %5484 = vmatmul.mubr.msk.bf16.gmra.mrb[28].mxu0 %vm632_vm1, %v6145_v41  ;;  %3628 = vperm.xlu1 %6135, %v3184_v42  }
  0x6d   : > { %5487 = vmatprep.mubr.msk.bf16.mxu0 %vm6387_vm0, %v6386_v1  ;;  %3623 = vperm.xlu0 %6134, %v3183_v43  }
  0x70   : > { %3638 = vperm.xlu1 %6135, %v3186_v44  }
  0x71   : > { %3633 = vperm.xlu0 %6134, %v3185_v45  }
  0x74   : > { %5488 = vmatmul.mubr.msk.bf16.gmra.mrb[32].mxu0 %vm632_vm1, %v6146_v46  ;;  %3648 = vperm.xlu1 %6135, %v3188_v47  }
  0x75   : > { %5491 = vmatprep.mubr.msk.bf16.mxu0 %vm6387_vm0, %v6386_v1  ;;  %3643 = vperm.xlu0 %6134, %v3187_v48  }
  0x78   : > { %3658 = vperm.xlu1 %6135, %v3190_v49  }
  0x79   : > { %3653 = vperm.xlu0 %6134, %v3189_v50  }
  0x7c   : > { %5492 = vmatmul.mubr.msk.bf16.gmra.mrb[36].mxu0 %vm632_vm1, %v6147_v51  ;;  %4278 = vperm.xlu1 %6135, %v3192_v52  }
  0x7d   : > { %5495 = vmatprep.mubr.msk.bf16.mxu0 %vm6387_vm0, %v6386_v1  ;;  %4273 = vperm.xlu0 %6134, %v3191_v53   ;;  %v3199_v1 = vld [vmem:[%s6632_s18 + $0x40] sm:$0xff]  ;;  %s3170_s18 = sadd.s32 2, %s7533_s3 }
  0x7e   : > { %s3171_s22 = sld [smem:[#allocation3 + %s3170_s18]] }
  0x80   : > { %4288 = vperm.xlu1 %6135, %v3194_v54  }
  0x81   : > { %4283 = vperm.xlu0 %6134, %v3193_v55  }
  0x84   : > { %5496 = vmatmul.mubr.msk.bf16.gmra.mrb[40].mxu0 %vm632_vm1, %v6148_v56  ;;  %4298 = vperm.xlu1 %6135, %v3196_v57  }
  0x85   : > { %4293 = vperm.xlu0 %6134, %v3195_v58  }
  0x88   : > { %4308 = vperm.xlu1 %6135, %v3198_v60  }
  0x89   : > { %4303 = vperm.xlu0 %6134, %v3197_v61  }
  0x8c   : > { %4318 = vperm.xlu1 %6135, %v3200_v0  }
  0x8d   : > { %4313 = vperm.xlu0 %6134, %v3199_v1  }
  0x90   : > { %4328 = vperm.xlu1 %6135, %v3202_v4  }
  0x91   : > { %4323 = vperm.xlu0 %6134, %v3201_v5  }
  0x94   : > { %4338 = vperm.xlu1 %6135, %v3204_v8  }
  0x95   : > { %4333 = vperm.xlu0 %6134, %v3203_v9  }
  0x98   : > { %4348 = vperm.xlu1 %6135, %v3206_v12  }
  0x99   : > { %4343 = vperm.xlu0 %6134, %v3205_v13  }
  0xaf   : > { %v834_v23 = vpop.permute.xlu0 %833  ;;  %v844_v35 = vpop.permute.xlu1 %843 }
  0xb3   : > { %v849_v45 = vpop.permute.xlu1 %848 }
  0xb4   : > { %v839_v32 = vpop.permute.xlu0 %838 }
  0xb7   : > { %v859_v3 = vpop.permute.xlu1 %858 }
  0xb8   : > { %v854_v4 = vpop.permute.xlu0 %853 }
 0x107   : > { %v700_v24 = vpop.f32.mrb[0].mxu0 }
 0x108   : > { %v701_v25 = vadd.f32 %v6712_v22, %v700_v24  ;;  %v5457_v26 = vpop.f32.mrb[1].mxu0 }
 0x109   : > { %v703_v27 = vpop.f32.mrb[2].mxu0 }
 0x10a   : > { %v787_v28 = vmax.f32 %v701_v25, 0.0  ;;  %v704_v29 = vadd.f32 %v6712_v22, %v703_v27  ;;  %v5458_v30 = vpop.f32.mrb[3].mxu0 }
 0x10c   : > { %v788_v31 = vmax.f32 %v704_v29, 0.0  ;;  %v941_v33 = vmul.f32 %v834_v23, %v787_v28 }
 0x10e   : > { %v942_v34 = vmul.f32 %v839_v32, %v788_v31 }
 0x10f   : > { %v708_v36 = vpop.f32.mrb[4].mxu0 }
 0x110   : > { %v963_v37 = vpack.c.bf16 %v942_v34, %v941_v33  ;;  %v709_v38 = vadd.f32 %v6712_v22, %v708_v36  ;;  %v5461_v39 = vpop.f32.mrb[5].mxu0 }
 0x111   : > { %v711_v40 = vpop.f32.mrb[6].mxu0 }
 0x112   : > { %974 = vst [vmem:[#allocation2] sm:$0xff] %v963_v37  ;;  %v789_v41 = vmax.f32 %v709_v38, 0.0  ;;  %v712_v42 = vadd.f32 %v6712_v22, %v711_v40  ;;  %v5462_v43 = vpop.f32.mrb[7].mxu0  ;;  %v869_v37 = vpop.permute.xlu1 %868 }
 0x113   : > { %v864_v38 = vpop.permute.xlu0 %863 }
 0x114   : > { %v790_v44 = vmax.f32 %v712_v42, 0.0  ;;  %v943_v46 = vmul.f32 %v844_v35, %v789_v41 }
 0x116   : > { %v944_v47 = vmul.f32 %v849_v45, %v790_v44 }
 0x117   : > { %v716_v48 = vpop.f32.mrb[8].mxu0 }
 0x118   : > { %v964_v49 = vpack.c.bf16 %v944_v47, %v943_v46  ;;  %v717_v50 = vadd.f32 %v6712_v22, %v716_v48  ;;  %v5465_v51 = vpop.f32.mrb[9].mxu0 }
 0x119   : > { %v719_v52 = vpop.f32.mrb[10].mxu0  ;;  %v1010_v53 = vld [vmem:[#allocation2] sm:$0xf8]  ;;  %v6166_v51 = vld [vmem:[%s8210_s5 + $0x88] sm:$0xff]  }
 0x11a   : > { %v985_v54 = vld [vmem:[#allocation2] sm:$0xfc]  ;;  %975 = vst [vmem:[#allocation2 + $0x8] sm:$0xff] %v964_v49  ;;  %v791_v55 = vmax.f32 %v717_v50, 0.0  ;;  %v720_v56 = vadd.f32 %v6712_v22, %v719_v52  ;;  %v5466_v57 = vpop.f32.mrb[11].mxu0  ;;  %v1038_v58 = vrot.slane %v1010_v53, 3 }
 0x11b   : > { %v1039_v59 = vrot.slane %v964_v49, 3  ;;  %v1210_v60 = vshrl.u32 %v985_v54, 16  ;;  %v1213_v61 = vshll.u32 %v985_v54, 16  ;;  %v1218_v62 = vshrl.u32 %v964_v49, 16 }
 0x11c   : > { %v1221_v63 = vshll.u32 %v964_v49, 16  ;;  %v792_v0 = vmax.f32 %v720_v56, 0.0  ;;  %v1462_v2 = vshrl.u32 %v1010_v53, 16  ;;  %v945_v9 = vmul.f32 %v854_v4, %v791_v55  ;;  %v874_v4 = vpop.permute.xlu0 %873 }
 0x11d   : > { %v1040_v1 = vsel %vm1037_vm2, %v1038_v58, %v1039_v59  ;;  %v1212_v5 = vrot.slane %v1210_v60, 2  ;;  %v1215_v6 = vrot.slane %v1213_v61, 3  ;;  %v1220_v7 = vrot.slane %v1218_v62, 2 }
 0x11e   : > { %5515 = vmatprep.mubr.bf16.mxu0 %v1040_v1  ;;  %v1223_v8 = vrot.slane %v1221_v63, 3  ;;  %v946_v10 = vmul.f32 %v859_v3, %v792_v0  ;;  %v1465_v11 = vshll.u32 %v1010_v53, 16  ;;  %v1469_v12 = vrot.slane %v1218_v62, 3  ;;  %v879_v3 = vpop.permute.xlu1 %878 }
 0x11f   : > { %v724_v13 = vpop.f32.mrb[12].mxu0  ;;  %v1216_v14 = vor.u32 %v1215_v6, %v1212_v5  ;;  %v1464_v16 = vrot.slane %v1462_v2, 3  ;;  %v1470_v17 = vrot.slane %v1221_v63, 4  ;;  %v6167_v2 = vld [vmem:[%s8210_s5 + $0x90] sm:$0xff]  }
 0x120   : > { %v1224_v15 = vor.u32 %v1223_v8, %v1220_v7  ;;  %v6721_v18 = vpack.c.bf16 %v946_v10, %v945_v9  ;;  %v725_v19 = vadd.f32 %v6712_v22, %v724_v13  ;;  %v5469_v20 = vpop.f32.mrb[13].mxu0  ;;  %v1467_v23 = vrot.slane %v1465_v11, 4 }
 0x121   : > { %v727_v24 = vpop.f32.mrb[14].mxu0  ;;  %v1471_v26 = vor.u32 %v1470_v17, %v1469_v12 }
 0x122   : > { %v1225_v25 = vsel %vm1208_vm3, %v1216_v14, %v1224_v15  ;;  %976 = vst [vmem:[#allocation2 + $0x10] sm:$0xff] %v6721_v18  ;;  %v793_v27 = vmax.f32 %v725_v19, 0.0  ;;  %v728_v28 = vadd.f32 %v6712_v22, %v727_v24  ;;  %v5470_v29 = vpop.f32.mrb[15].mxu0  ;;  %v1041_v30 = vrot.slane %v6721_v18, 3 }
 0x123   : > { %5547 = vmatprep.mubr.bf16.mxu1 %v1225_v25  ;;  %v6729_v31 = vshrl.u32 %v6721_v18, 16  ;;  %v6732_v32 = vshll.u32 %v6721_v18, 16  ;;  %v1468_v33 = vor.u32 %v1467_v23, %v1464_v16  ;;  %v1979_v61 = vrot.slane %v6721_v18, 4  ;;  %v6168_v23 = vld [vmem:[%s8210_s5 + $0x98] sm:$0xff]   ;;  %v6191_v18 = vld [vmem:[%s8210_s5 + $0x150] sm:$0xff]  }
 0x124   : > { %v794_v34 = vmax.f32 %v728_v28, 0.0  ;;  %v1042_v35 = vsel %vm1037_vm2, %v1039_v59, %v1041_v30  ;;  %v947_v43 = vmul.f32 %v864_v38, %v793_v27 }
 0x125   : > { %v1229_v36 = vrot.slane %v6729_v31, 2  ;;  %5516 = vmatmul.mubr.bf16.vlgmr.msra.gmra.mrb[44].mxu0 %v1042_v35  ;;  %v1232_v39 = vrot.slane %v6732_v32, 3  ;;  %v6738_v40 = vsel %vm1460_vm4, %v1468_v33, %v1471_v26  ;;  %v1473_v41 = vrot.slane %v6729_v31, 3 }
 0x126   : > { %v1474_v42 = vrot.slane %v6732_v32, 4  ;;  %v948_v44 = vmul.f32 %v869_v37, %v794_v34  ;;  %v2191_v10 = vrot.slane %v6729_v31, 4  ;;  %v2192_v11 = vrot.slane %v6732_v32, 5 }
 0x127   : > { %v732_v45 = vpop.f32.mrb[16].mxu0  ;;  %v1233_v46 = vor.u32 %v1232_v39, %v1229_v36 }
 0x128   : > { %v6742_v47 = vor.u32 %v1474_v42, %v1473_v41  ;;  %v6744_v48 = vpack.c.bf16 %v948_v44, %v947_v43  ;;  %v733_v49 = vadd.f32 %v6712_v22, %v732_v45  ;;  %v5473_v50 = vpop.f32.mrb[17].mxu0  ;;  %v6780_v24 = vor.u32 %v2192_v11, %v2191_v10  ;;  %v6169_v41 = vld [vmem:[%s8210_s5 + $0xa0] sm:$0xff]   ;;  %v889_v42 = vpop.permute.xlu1 %888 }
 0x129   : > { %v735_v52 = vpop.f32.mrb[18].mxu0  ;;  %v1234_v53 = vsel %vm1208_vm3, %v1224_v15, %v1233_v46  ;;  %v884_v43 = vpop.permute.xlu0 %883 }
 0x12a   : > { %v6753_v54 = vsel %vm1460_vm4, %v1471_v26, %v6742_v47  ;;  %977 = vst [vmem:[#allocation2 + $0x18] sm:$0xff] %v6744_v48  ;;  %v795_v55 = vmax.f32 %v733_v49, 0.0  ;;  %v736_v56 = vadd.f32 %v6712_v22, %v735_v52  ;;  %v5474_v57 = vpop.f32.mrb[19].mxu0  ;;  %5548 = vmatmul.mubr.bf16.vlgmr.msra.gmra.mrb[0].mxu1 %v1234_v53  ;;  %v1043_v58 = vrot.slane %v6744_v48, 3 }
 0x12b   : > { %v1236_v59 = vshrl.u32 %v6744_v48, 16  ;;  %v1239_v60 = vshll.u32 %v6744_v48, 16  ;;  %5564 = vmatpush3.bf16.msra.mxu1 %v6706_v21  ;;  %v1981_v62 = vrot.slane %v6744_v48, 4 }
 0x12c   : > { %v796_v63 = vmax.f32 %v736_v56, 0.0  ;;  %v1044_v0 = vsel %vm1037_vm2, %v1041_v30, %v1043_v58  ;;  %5565 = vmatprep.subr.bf16.mxu1 %v6166_v51  ;;  %v949_v8 = vmul.f32 %v874_v4, %v795_v55 }
 0x12d   : > { %v1238_v1 = vrot.slane %v1236_v59, 2  ;;  %5519 = vmatprep.mubr.bf16.mxu0 %v1044_v0  ;;  %v1241_v5 = vrot.slane %v1239_v60, 3  ;;  %v1477_v6 = vrot.slane %v1236_v59, 3  ;;  %v1478_v21 = vrot.slane %v1239_v60, 4 }
 0x12e   : > { %v6770_v7 = vsel %vm1977_vm5, %v1979_v61, %v1981_v62  ;;  %v950_v9 = vmul.f32 %v879_v3, %v796_v63  ;;  %v2195_v15 = vrot.slane %v1236_v59, 4  ;;  %v2196_v16 = vrot.slane %v1239_v60, 5  ;;  %v6170_v60 = vld [vmem:[%s8210_s5 + $0xa8] sm:$0xff]  }
 0x12f   : > { %v740_v12 = vpop.f32.mrb[20].mxu0  ;;  %v1242_v13 = vor.u32 %v1241_v5, %v1238_v1  ;;  %5566 = vmatpush3.bf16.msra.mxu1 %v6166_v51  ;;  %v1479_v14 = vor.u32 %v1478_v21, %v1477_v6 }
 0x130   : > { %v6774_v17 = vpack.c.bf16 %v950_v9, %v949_v8  ;;  %v741_v19 = vadd.f32 %v6712_v22, %v740_v12  ;;  %v5477_v20 = vpop.f32.mrb[21].mxu0  ;;  %5567 = vmatprep.subr.bf16.mxu1 %v6167_v2  ;;  %v2197_v28 = vor.u32 %v2196_v16, %v2195_v15  ;;  %v894_v15 = vpop.permute.xlu0 %893 }
 0x131   : > { %v743_v25 = vpop.f32.mrb[22].mxu0  ;;  %v1243_v26 = vsel %vm1208_vm3, %v1233_v46, %v1242_v13  ;;  %v6785_v27 = vsel %vm1460_vm4, %v6742_v47, %v1479_v14 }
 0x132   : > { %978 = vst [vmem:[#allocation2 + $0x20] sm:$0xff] %v6774_v17  ;;  %v797_v29 = vmax.f32 %v741_v19, 0.0  ;;  %v744_v30 = vadd.f32 %v6712_v22, %v743_v25  ;;  %v5478_v31 = vpop.f32.mrb[23].mxu0  ;;  %5551 = vmatprep.mubr.bf16.mxu1 %v1243_v26  ;;  %v1045_v32 = vrot.slane %v6774_v17, 3  ;;  %v1245_v33 = vshrl.u32 %v6774_v17, 16 }
 0x133   : > { %v1248_v34 = vshll.u32 %v6774_v17, 16  ;;  %5568 = vmatpush3.bf16.msra.mxu1 %v6167_v2  ;;  %v1983_v35 = vrot.slane %v6774_v17, 4  ;;  %v6795_v36 = vsel %vm2182_vm6, %v6780_v24, %v2197_v28 }
 0x134   : > { %v798_v37 = vmax.f32 %v744_v30, 0.0  ;;  %v1046_v38 = vsel %vm1037_vm2, %v1043_v58, %v1045_v32  ;;  %v1247_v39 = vrot.slane %v1245_v33, 2  ;;  %5569 = vmatprep.subr.bf16.mxu1 %v6168_v23  ;;  %v1481_v45 = vrot.slane %v1245_v33, 3 }
 0x135   : > { %5520 = vmatmul.mubr.bf16.gmra.mrb[48].mxu0 %v1046_v38  ;;  %v1250_v44 = vrot.slane %v1248_v34, 3  ;;  %v1482_v46 = vrot.slane %v1248_v34, 4  ;;  %v6802_v48 = vsel %vm1977_vm5, %v1981_v62, %v1983_v35  ;;  %v951_v49 = vmul.f32 %v884_v43, %v797_v29 }
 0x136   : > { %v952_v50 = vmul.f32 %v889_v42, %v798_v37  ;;  %v2199_v51 = vrot.slane %v1245_v33, 4  ;;  %v2200_v52 = vrot.slane %v1248_v34, 5  ;;  %v6172_v37 = vld [vmem:[%s8210_s5 + $0xb8] sm:$0xff]  }
 0x137   : > { %v748_v53 = vpop.f32.mrb[24].mxu0  ;;  %v1251_v55 = vor.u32 %v1250_v44, %v1247_v39  ;;  %5570 = vmatpush3.bf16.msra.mxu1 %v6168_v23  ;;  %v1483_v56 = vor.u32 %v1482_v46, %v1481_v45 }
 0x138   : > { %v6804_v57 = vpack.c.bf16 %v952_v50, %v951_v49  ;;  %v749_v58 = vadd.f32 %v6712_v22, %v748_v53  ;;  %v5481_v59 = vpop.f32.mrb[25].mxu0  ;;  %5571 = vmatprep.subr.bf16.mxu1 %v6169_v41  ;;  %v2201_v62 = vor.u32 %v2200_v52, %v2199_v51 }
 0x139   : > { %v751_v63 = vpop.f32.mrb[26].mxu0  ;;  %v1252_v0 = vsel %vm1208_vm3, %v1242_v13, %v1251_v55  ;;  %v6812_v1 = vsel %vm1460_vm4, %v1479_v14, %v1483_v56  ;;  %v6171_v13 = vld [vmem:[%s8210_s5 + $0xb0] sm:$0xff]   ;;  %v899_v14 = vpop.permute.xlu1 %898 }
 0x13a   : > { %979 = vst [vmem:[#allocation2 + $0x28] sm:$0xff] %v6804_v57  ;;  %v799_v2 = vmax.f32 %v749_v58, 0.0  ;;  %v752_v3 = vadd.f32 %v6712_v22, %v751_v63  ;;  %v5482_v4 = vpop.f32.mrb[27].mxu0  ;;  %5552 = vmatmul.mubr.bf16.gmra.mrb[4].mxu1 %v1252_v0  ;;  %v1047_v5 = vrot.slane %v6804_v57, 3  ;;  %v1254_v6 = vshrl.u32 %v6804_v57, 16  ;;  %v904_v58 = vpop.permute.xlu0 %903 }
 0x13b   : > { %v1257_v21 = vshll.u32 %v6804_v57, 16  ;;  %5572 = vmatpush3.bf16.msra.mxu1 %v6169_v41  ;;  %v1985_v8 = vrot.slane %v6804_v57, 4  ;;  %v6821_v9 = vsel %vm2182_vm6, %v2197_v28, %v2201_v62 }
 0x13c   : > { %v800_v10 = vmax.f32 %v752_v3, 0.0  ;;  %v1048_v11 = vsel %vm1037_vm2, %v1045_v32, %v1047_v5  ;;  %v1256_v12 = vrot.slane %v1254_v6, 2  ;;  %5573 = vmatprep.subr.bf16.mxu1 %v6170_v60  ;;  %v1485_v17 = vrot.slane %v1254_v6, 3 }
 0x13d   : > { %5523 = vmatprep.mubr.bf16.mxu0 %v1048_v11  ;;  %v1259_v16 = vrot.slane %v1257_v21, 3  ;;  %v1486_v19 = vrot.slane %v1257_v21, 4  ;;  %v6828_v20 = vsel %vm1977_vm5, %v1983_v35, %v1985_v8  ;;  %v953_v23 = vmul.f32 %v894_v15, %v799_v2  ;;  %v909_v57 = vpop.permute.xlu1 %908 }
 0x13e   : > { %v954_v25 = vmul.f32 %v899_v14, %v800_v10  ;;  %v2203_v26 = vrot.slane %v1254_v6, 4  ;;  %v2204_v28 = vrot.slane %v1257_v21, 5 }
 0x13f   : > { %v756_v29 = vpop.f32.mrb[28].mxu0  ;;  %v1260_v30 = vor.u32 %v1259_v16, %v1256_v12  ;;  %5574 = vmatpush3.bf16.msra.mxu1 %v6170_v60  ;;  %v1487_v31 = vor.u32 %v1486_v19, %v1485_v17 }
 0x140   : > { %v6830_v32 = vpack.c.bf16 %v954_v25, %v953_v23  ;;  %v757_v33 = vadd.f32 %v6712_v22, %v756_v29  ;;  %v5485_v34 = vpop.f32.mrb[29].mxu0  ;;  %5575 = vmatprep.subr.bf16.mxu1 %v6171_v13  ;;  %v2205_v35 = vor.u32 %v2204_v28, %v2203_v26 }
 0x141   : > { %v759_v38 = vpop.f32.mrb[30].mxu0  ;;  %v1261_v39 = vsel %vm1208_vm3, %v1251_v55, %v1260_v30  ;;  %v6838_v41 = vsel %vm1460_vm4, %v1483_v56, %v1487_v31  ;;  %v6853_v56 = vld [vmem:[%s8210_s5 + $0xc0] sm:$0xff]   ;;  %v914_v34 = vpop.permute.xlu0 %913 }
 0x142   : > { %980 = vst [vmem:[#allocation2 + $0x30] sm:$0xff] %v6830_v32  ;;  %v801_v42 = vmax.f32 %v757_v33, 0.0  ;;  %v760_v43 = vadd.f32 %v6712_v22, %v759_v38  ;;  %v5486_v44 = vpop.f32.mrb[31].mxu0  ;;  %5555 = vmatprep.mubr.bf16.mxu1 %v1261_v39  ;;  %v1049_v45 = vrot.slane %v6830_v32, 3  ;;  %v1263_v46 = vshrl.u32 %v6830_v32, 16  ;;  %v919_v33 = vpop.permute.xlu1 %918 }
 0x143   : > { %v1266_v49 = vshll.u32 %v6830_v32, 16  ;;  %5576 = vmatpush3.bf16.msra.mxu1 %v6171_v13  ;;  %v1987_v50 = vrot.slane %v6830_v32, 4  ;;  %v6847_v51 = vsel %vm2182_vm6, %v2201_v62, %v2205_v35 }
 0x144   : > { %v802_v52 = vmax.f32 %v760_v43, 0.0  ;;  %v1050_v53 = vsel %vm1037_vm2, %v1047_v5, %v1049_v45  ;;  %v1265_v55 = vrot.slane %v1263_v46, 2  ;;  %5577 = vmatprep.subr.bf16.mxu1 %v6172_v37  ;;  %v1489_v60 = vrot.slane %v1263_v46, 3 }
 0x145   : > { %5524 = vmatmul.mubr.bf16.gmra.mrb[52].mxu0 %v1050_v53  ;;  %v1268_v59 = vrot.slane %v1266_v49, 3  ;;  %v1490_v63 = vrot.slane %v1266_v49, 4  ;;  %v6856_v0 = vsel %vm1977_vm5, %v1985_v8, %v1987_v50  ;;  %v955_v62 = vmul.f32 %v904_v58, %v801_v42 }
 0x146   : > { %v956_v2 = vmul.f32 %v909_v57, %v802_v52  ;;  %v2207_v3 = vrot.slane %v1263_v46, 4  ;;  %v2208_v4 = vrot.slane %v1266_v49, 5 }
 0x147   : > { %v764_v5 = vpop.f32.mrb[32].mxu0  ;;  %v1269_v6 = vor.u32 %v1268_v59, %v1265_v55  ;;  %5578 = vmatpush3.bf16.msra.mxu1 %v6172_v37  ;;  %v1491_v21 = vor.u32 %v1490_v63, %v1489_v60 }
 0x148   : > { %v6858_v10 = vpack.c.bf16 %v956_v2, %v955_v62  ;;  %v765_v11 = vadd.f32 %v6712_v22, %v764_v5  ;;  %v5489_v12 = vpop.f32.mrb[33].mxu0  ;;  %5595 = vmatprep.subr.bf16.mxu1 %v6853_v56  ;;  %v2209_v13 = vor.u32 %v2208_v4, %v2207_v3 }
 0x149   : > { %v767_v14 = vpop.f32.mrb[34].mxu0  ;;  %v1270_v8 = vsel %vm1208_vm3, %v1260_v30, %v1269_v6  ;;  %v6864_v15 = vsel %vm1460_vm4, %v1487_v31, %v1491_v21 }
 0x14a   : > { %981 = vst [vmem:[#allocation2 + $0x38] sm:$0xff] %v6858_v10  ;;  %v803_v16 = vmax.f32 %v765_v11, 0.0  ;;  %v768_v17 = vadd.f32 %v6712_v22, %v767_v14  ;;  %v5490_v19 = vpop.f32.mrb[35].mxu0  ;;  %5556 = vmatmul.mubr.bf16.gmra.mrb[8].mxu1 %v1270_v8  ;;  %v1051_v23 = vrot.slane %v6858_v10, 3  ;;  %v1272_v25 = vshrl.u32 %v6858_v10, 16  ;;  %v929_v14 = vpop.permute.xlu1 %928 }
 0x14b   : > { %v1275_v26 = vshll.u32 %v6858_v10, 16  ;;  %v1989_v28 = vrot.slane %v6858_v10, 4  ;;  %v6873_v29 = vsel %vm2182_vm6, %v2205_v35, %v2209_v13  ;;  %v924_v8 = vpop.permute.xlu0 %923 }
 0x14c   : > { %v804_v30 = vmax.f32 %v768_v17, 0.0  ;;  %v1052_v31 = vsel %vm1037_vm2, %v1049_v45, %v1051_v23  ;;  %v1274_v32 = vrot.slane %v1272_v25, 2  ;;  %v1493_v38 = vrot.slane %v1272_v25, 3 }
 0x14d   : > { %5527 = vmatprep.mubr.bf16.mxu0 %v1052_v31  ;;  %v1277_v37 = vrot.slane %v1275_v26, 3  ;;  %v1494_v39 = vrot.slane %v1275_v26, 4  ;;  %v6879_v42 = vsel %vm1977_vm5, %v1987_v50, %v1989_v28  ;;  %v957_v43 = vmul.f32 %v914_v34, %v803_v16 }
 0x14e   : > { %v958_v44 = vmul.f32 %v919_v33, %v804_v30  ;;  %v2211_v46 = vrot.slane %v1272_v25, 4  ;;  %v2212_v35 = vrot.slane %v1275_v26, 5 }
 0x14f   : > { %v772_v49 = vpop.f32.mrb[36].mxu0  ;;  %v1278_v52 = vor.u32 %v1277_v37, %v1274_v32  ;;  %v6881_v53 = vor.u32 %v1494_v39, %v1493_v38 }
 0x150   : > { %v6883_v55 = vpack.c.bf16 %v958_v44, %v957_v43  ;;  %v773_v45 = vadd.f32 %v6712_v22, %v772_v49  ;;  %v5493_v57 = vpop.f32.mrb[37].mxu0  ;;  %v2213_v58 = vor.u32 %v2212_v35, %v2211_v46 }
 0x151   : > { %v775_v59 = vpop.f32.mrb[38].mxu0  ;;  %v1279_v60 = vsel %vm1208_vm3, %v1269_v6, %v1278_v52  ;;  %v6889_v50 = vsel %vm1460_vm4, %v1491_v21, %v6881_v53 }
 0x152   : > { %982 = vst [vmem:[#allocation2 + $0x40] sm:$0xff] %v6883_v55  ;;  %v805_v63 = vmax.f32 %v773_v45, 0.0  ;;  %v776_v62 = vadd.f32 %v6712_v22, %v775_v59  ;;  %v5494_v2 = vpop.f32.mrb[39].mxu0  ;;  %5559 = vmatprep.mubr.bf16.mxu1 %v1279_v60  ;;  %v1764_v3 = vshrl.u32 %v6883_v55, 16  ;;  %v1767_v4 = vshll.u32 %v6883_v55, 16 }
 0x153   : > { %v1991_v5 = vrot.slane %v6883_v55, 4  ;;  %v6897_v11 = vsel %vm2182_vm6, %v2209_v13, %v2213_v58  ;;  %v6197_v55 = vld [vmem:[%s8210_s5 + $0x180] sm:$0xff]  }
 0x154   : > { %v806_v6 = vmax.f32 %v776_v62, 0.0  ;;  %v1766_v12 = vrot.slane %v1764_v3, 3  ;;  %v1769_v21 = vrot.slane %v1767_v4, 4  ;;  %v2215_v17 = vrot.slane %v1764_v3, 4  ;;  %v934_v62 = vpop.permute.xlu0 %933 }
 0x155   : > { %v6902_v16 = vsel %vm1977_vm5, %v1989_v28, %v1991_v5  ;;  %v2216_v19 = vrot.slane %v1767_v4, 5  ;;  %v959_v25 = vmul.f32 %v924_v8, %v805_v63  ;;  %v939_v63 = vpop.permute.xlu1 %938  ;;  %v6935_v8 = vld [vmem:[#allocation2 + $0x30] sm:$0xff] }
 0x156   : > { %v960_v26 = vmul.f32 %v929_v14, %v806_v6  ;;  %v6904_v30 = vor.u32 %v1769_v21, %v1766_v12  ;;  %v6925_v12 = vld [vmem:[#allocation2 + $0x18] sm:$0xff]  ;;  %v6928_v21 = vld [vmem:[#allocation2 + $0x20] sm:$0xff]  ;;  %v6933_v14 = vld [vmem:[#allocation2 + $0x28] sm:$0xff] }
 0x157   : > { %v780_v31 = vpop.f32.mrb[40].mxu0  ;;  %v6906_v32 = vor.u32 %v2216_v19, %v2215_v17  ;;  %v2432_v10 = vshrl.u32 %v6925_v12, 16  ;;  %v2441_v17 = vshrl.u32 %v6928_v21, 16  ;;  %v2444_v19 = vshll.u32 %v6928_v21, 16 }
 0x158   : > { %v6908_v13 = vpack.c.bf16 %v960_v26, %v959_v25  ;;  %v781_v33 = vadd.f32 %v6712_v22, %v780_v31  ;;  %v5497_v34 = vpop.f32.mrb[41].mxu0  ;;  %v6914_v37 = vsel %vm1460_vm4, %v6881_v53, %v6904_v30  ;;  %v6940_v25 = vld [vmem:[#allocation2 + $0x38] sm:$0xff]  ;;  %v2453_v26 = vshll.u32 %v6933_v14, 16 }
 0x159   : > { %v783_v28 = vpop.f32.mrb[42].mxu0  ;;  %v993_v38 = vld [vmem:[#allocation2 + $0x40] sm:$0x7]  ;;  %v6918_v39 = vsel %vm2182_vm6, %v2213_v58, %v6906_v32 }
 0x15a   : > { %983 = vst [vmem:[#allocation2 + $0x48] sm:$0xff] %v6908_v13  ;;  %v807_v43 = vmax.f32 %v781_v33, 0.0  ;;  %v784_v44 = vadd.f32 %v6712_v22, %v783_v28  ;;  %v1053_v46 = vrot.slane %v993_v38, 3  ;;  %v1281_v35 = vshrl.u32 %v993_v38, 16  ;;  %v5498_v49 = vpop.f32.mrb[43].mxu0  ;;  %v6944_v31 = vld [vmem:[#allocation2 + $0x40] sm:$0xff] }
 0x15b   : > { %v1284_v45 = vshll.u32 %v993_v38, 16  ;;  %v2913_v33 = vrot.slane %v2432_v10, 5  ;;  %v6174_v28 = vld [vmem:[%s8210_s5 + $0xc8] sm:$0xff]   ;;  %v2462_v38 = vshll.u32 %v6935_v8, 16  ;;  %v8219_v49 = vshrl.u32 %v6944_v31, 16 }
 0x15c   : > { %v808_v57 = vmax.f32 %v784_v44, 0.0  ;;  %v1054_v59 = vsel %vm1037_vm2, %v1051_v23, %v1053_v46  ;;  %v1283_v60 = vrot.slane %v1281_v35, 2  ;;  %v961_v2 = vmul.f32 %v934_v62, %v807_v43  ;;  %v6175_v62 = vld [vmem:[%s8210_s5 + $0xd0] sm:$0xff]  }
 0x15d   : > { %5528 = vmatmul.mubr.bf16.gmra.mrb[56].mxu0 %v1054_v59  ;;  %v1286_v58 = vrot.slane %v1284_v45, 3  ;;  %v2435_v23 = vshll.u32 %v6925_v12, 16  ;;  %v8223_v43 = vshrl.u32 %v6940_v25, 16  ;;  %v2917_v46 = vrot.slane %v2441_v17, 5 }
 0x15e   : > { %v962_v3 = vmul.f32 %v939_v63, %v808_v57  ;;  %v8218_v35 = vshll.u32 %v6940_v25, 16  ;;  %v8221_v45 = vshll.u32 %v6944_v31, 16  ;;  %v2918_v57 = vrot.slane %v2444_v19, 6 }
 0x15f   : > { %v1287_v4 = vor.u32 %v1286_v58, %v1283_v60  ;;  %v2914_v34 = vrot.slane %v2435_v23, 6  ;;  %v8220_v59 = vshrl.u32 %v6908_v13, 16 }
 0x160   : > { %v973_v6 = vpack.c.bf16 %v962_v3, %v961_v2  ;;  %v2919_v58 = vor.u32 %v2918_v57, %v2917_v46  ;;  %v2926_v3 = vrot.slane %v2462_v38, 6  ;;  %v2934_v57 = vrot.slane %v8221_v45, 6  ;;  %v1675_v45 = vld [vmem:[#allocation2 + $0x8] sm:$0xf8] }
 0x161   : > { %v1288_v22 = vsel %vm1208_vm3, %v1278_v52, %v1287_v4  ;;  %v2450_v52 = vshrl.u32 %v6933_v14, 16  ;;  %v6955_v44 = vor.u32 %v2914_v34, %v2913_v33  ;;  %v2929_v4 = vrot.slane %v8223_v43, 5 }
 0x162   : > { %984 = vst [vmem:[#allocation2 + $0x50] sm:$0xff] %v973_v6  ;;  %5560 = vmatmul.mubr.bf16.gmra.mrb[12].mxu1 %v1288_v22  ;;  %v2930_v22 = vrot.slane %v8218_v35, 6  ;;  %v2933_v33 = vrot.slane %v8219_v49, 5 }
 0x163   : > { %5579 = vmatprep.mubr.bf16.mxu1 %v6738_v40  ;;  %v2459_v40 = vshrl.u32 %v6935_v8, 16  ;;  %v2921_v60 = vrot.slane %v2450_v52, 5  ;;  %v6984_v6 = vsel %vm2904_vm7, %v6955_v44, %v2919_v58 }
 0x164   : > { %v2931_v35 = vor.u32 %v2930_v22, %v2929_v4 }
 0x165   : > { %v2925_v63 = vrot.slane %v2459_v40, 5 }
 0x167   : > { %v2927_v46 = vor.u32 %v2926_v3, %v2925_v63  ;;  %v1442_v63 = vld [vmem:[#allocation2 + $0x40] sm:$0xf] }
 0x169   : > { %v7007_v3 = vsel %vm2904_vm7, %v2927_v46, %v2931_v35 }
 0x16a   : > { %5580 = vmatmul.mubr.bf16.vlgmr.msra.gmra.mrb[0].mxu1 %v6753_v54  ;;  %v2922_v54 = vrot.slane %v2453_v26, 6 }
 0x16b   : > { %5596 = vmatpush3.bf16.msra.mxu1 %v6853_v56  ;;  %5583 = vmatprep.mubr.bf16.mxu1 %v6785_v27  ;;  %v8222_v56 = vshll.u32 %v6908_v13, 16 }
 0x16c   : > { %5597 = vmatprep.subr.bf16.mxu1 %v6174_v28  ;;  %v2923_v2 = vor.u32 %v2922_v54, %v2921_v60  ;;  %v2937_v60 = vrot.slane %v8220_v59, 5  ;;  %v6176_v54 = vld [vmem:[%s8210_s5 + $0xd8] sm:$0xff]  }
 0x16d   : > { %v2938_v49 = vrot.slane %v8222_v56, 6 }
 0x16e   : > { %v6991_v34 = vsel %vm2904_vm7, %v2919_v58, %v2923_v2  ;;  %v2935_v58 = vor.u32 %v2934_v57, %v2933_v33  ;;  %v1498_v33 = vshrl.u32 %v1442_v63, 16  ;;  %v1705_v57 = vshll.u32 %v1675_v45, 16 }
 0x16f   : > { %5598 = vmatpush3.bf16.msra.mxu1 %v6174_v28  ;;  %v7003_v28 = vsel %vm2904_vm7, %v2923_v2, %v2927_v46  ;;  %v7009_v59 = vor.u32 %v2938_v49, %v2937_v60  ;;  %v6177_v2 = vld [vmem:[%s8210_s5 + $0xe0] sm:$0xff]   ;;  %v1501_v46 = vshll.u32 %v1442_v63, 16  ;;  %v1702_v49 = vshrl.u32 %v1675_v45, 16  ;;  %v6179_v45 = vld [vmem:[%s8210_s5 + $0xf0] sm:$0xff]   ;;  %v6180_v63 = vld [vmem:[%s8210_s5 + $0xf8] sm:$0xff]  }
 0x170   : > { %5599 = vmatprep.subr.bf16.mxu1 %v6175_v62  ;;  %v7013_v4 = vsel %vm2904_vm7, %v2931_v35, %v2935_v58  ;;  %v6178_v35 = vld [vmem:[%s8210_s5 + $0xe8] sm:$0xff]   ;;  %v1707_v43 = vrot.slane %v1705_v57, 4 }
 0x171   : > { %v7020_v22 = vsel %vm2904_vm7, %v2935_v58, %v7009_v59  ;;  %v1503_v60 = vrot.slane %v1501_v46, 4  ;;  %v1704_v56 = vrot.slane %v1702_v49, 3  ;;  %v7052_v46 = vld [vmem:[#allocation2 + $0x48] sm:$0xf] }
 0x172   : > { %5584 = vmatmul.mubr.bf16.gmra.mrb[4].mxu1 %v6812_v1  ;;  %v1776_v49 = vshll.u32 %v7052_v46, 16 }
 0x173   : > { %5600 = vmatpush3.bf16.msra.mxu1 %v6175_v62  ;;  %5587 = vmatprep.mubr.bf16.mxu1 %v6838_v41  ;;  %v1500_v62 = vrot.slane %v1498_v33, 3  ;;  %v1708_v58 = vor.u32 %v1707_v43, %v1704_v56  ;;  %v6181_v43 = vld [vmem:[%s8210_s5 + $0x100] sm:$0xff]   ;;  %v6182_v56 = vld [vmem:[%s8210_s5 + $0x108] sm:$0xff]  }
 0x174   : > { %5601 = vmatprep.subr.bf16.mxu1 %v6176_v54 }
 0x177   : > { %5602 = vmatpush3.bf16.msra.mxu1 %v6176_v54  ;;  %v1504_v54 = vor.u32 %v1503_v60, %v1500_v62  ;;  %v6187_v62 = vld [vmem:[%s8210_s5 + $0x130] sm:$0xff]  }
 0x178   : > { %5603 = vmatprep.subr.bf16.mxu1 %v6177_v2 }
 0x179   : > { %v1505_v33 = vsel %vm1460_vm4, %v6881_v53, %v1504_v54  ;;  %v6184_v53 = vld [vmem:[%s8210_s5 + $0x118] sm:$0xff]  }
 0x17a   : > { %5588 = vmatmul.mubr.bf16.gmra.mrb[8].mxu1 %v6864_v15  ;;  %v6188_v54 = vld [vmem:[%s8210_s5 + $0x138] sm:$0xff]  }
 0x17b   : > { %5604 = vmatpush3.bf16.msra.mxu1 %v6177_v2  ;;  %5591 = vmatprep.mubr.bf16.mxu1 %v6889_v50  ;;  %v1717_v2 = vsel %vm1460_vm4, %v1708_v58, %v6742_v47  ;;  %v6183_v47 = vld [vmem:[%s8210_s5 + $0x110] sm:$0xff]   ;;  %v6189_v58 = vld [vmem:[%s8210_s5 + $0x140] sm:$0xff]  }
 0x17c   : > { %5605 = vmatprep.subr.bf16.mxu1 %v6178_v35 }
 0x17f   : > { %5606 = vmatpush3.bf16.msra.mxu1 %v6178_v35  ;;  %v1778_v35 = vrot.slane %v1776_v49, 4  ;;  %v6225_v49 = vld [vmem:[%s8212_s7 + $0xa0] ss:$20 sps:$4 sm:$0xff]  }
 0x180   : > { %5607 = vmatprep.subr.bf16.mxu1 %v6179_v45 }
 0x182   : > { %5592 = vmatmul.mubr.bf16.gmra.mrb[12].mxu1 %v1505_v33  ;;  %v6194_v33 = vld [vmem:[%s8210_s5 + $0x168] sm:$0xff]  }
 0x183   : > { %5608 = vmatpush3.bf16.msra.mxu1 %v6179_v45  ;;  %5611 = vmatprep.mubr.bf16.mxu1 %v1717_v2 }
 0x184   : > { %5609 = vmatprep.subr.bf16.mxu1 %v6180_v63 }
 0x187   : > { %5610 = vmatpush3.bf16.msra.mxu1 %v6180_v63  ;;  %v6190_v63 = vld [vmem:[%s8210_s5 + $0x148] sm:$0xff]  }
 0x188   : > { %5627 = vmatprep.subr.bf16.mxu1 %v6181_v43 }
 0x18a   : > { %5612 = vmatmul.mubr.bf16.vlgmr.msra.gmra.mrb[0].mxu1 %v6785_v27  ;;  %v6185_v27 = vld [vmem:[%s8210_s5 + $0x120] sm:$0xff]  }
 0x18b   : > { %5628 = vmatpush3.bf16.msra.mxu1 %v6181_v43  ;;  %5615 = vmatprep.mubr.bf16.mxu1 %v6812_v1  ;;  %v1773_v1 = vshrl.u32 %v7052_v46, 16  ;;  %v1993_v43 = vrot.slane %v7052_v46, 4  ;;  %v6222_v46 = vld [vmem:[%s8212_s7 + $0x28] ss:$20 sps:$4 sm:$0xff]  }
 0x18c   : > { %5629 = vmatprep.subr.bf16.mxu1 %v6182_v56 }
 0x18d   : > { %v1775_v57 = vrot.slane %v1773_v1, 3  ;;  %v6199_v1 = vld [vmem:[%s8210_s5 + $0x190] sm:$0xff]  }
 0x18f   : > { %5630 = vmatpush3.bf16.msra.mxu1 %v6182_v56  ;;  %v1779_v60 = vor.u32 %v1778_v35, %v1775_v57 }
 0x190   : > { %5631 = vmatprep.subr.bf16.mxu1 %v6183_v47 }
 0x192   : > { %5616 = vmatmul.mubr.bf16.gmra.mrb[4].mxu1 %v6838_v41  ;;  %v6186_v41 = vld [vmem:[%s8210_s5 + $0x128] sm:$0xff]  }
 0x193   : > { %5632 = vmatpush3.bf16.msra.mxu1 %v6183_v47  ;;  %5619 = vmatprep.mubr.bf16.mxu1 %v6864_v15  ;;  %v1950_v15 = vld [vmem:[#allocation2 + $0x8] sm:$0xf0]  ;;  %v6196_v47 = vld [vmem:[%s8210_s5 + $0x178] sm:$0xff]  }
 0x194   : > { %5633 = vmatprep.subr.bf16.mxu1 %v6184_v53  ;;  %v1978_v45 = vrot.slane %v1950_v15, 4 }
 0x197   : > { %5634 = vmatpush3.bf16.msra.mxu1 %v6184_v53  ;;  %v6221_v53 = vld [vmem:[%s8212_s7] ss:$20 sps:$4 sm:$0xff]  }
 0x198   : > { %5635 = vmatprep.subr.bf16.mxu1 %v6185_v27  ;;  %5787 = vmatprep.subr.bf16.mxu0 %v6221_v53 }
 0x199   : > { %5788 = vmatpush3.bf16.msra.mxu0 %v6221_v53 }
 0x19a   : > { %5620 = vmatmul.mubr.bf16.gmra.mrb[8].mxu1 %v6889_v50  ;;  %v1780_v50 = vsel %vm1460_vm4, %v6904_v30, %v1779_v60  ;;  %v2187_v30 = vshll.u32 %v1950_v15, 16  ;;  %5789 = vmatprep.subr.bf16.mxu0 %v6222_v46 }
 0x19b   : > { %5636 = vmatpush3.bf16.msra.mxu1 %v6185_v27  ;;  %5623 = vmatprep.mubr.bf16.mxu1 %v6914_v37  ;;  %v1980_v37 = vsel %vm1977_vm5, %v1978_v45, %v1979_v61  ;;  %v6192_v61 = vld [vmem:[%s8210_s5 + $0x158] sm:$0xff]  }
 0x19c   : > { %5637 = vmatprep.subr.bf16.mxu1 %v6186_v41  ;;  %v6224_v27 = vld [vmem:[%s8212_s7 + $0x78] ss:$20 sps:$4 sm:$0xff]  }
 0x19d   : > { %5790 = vmatpush3.bf16.msra.mxu0 %v6222_v46 }
 0x19f   : > { %5638 = vmatpush3.bf16.msra.mxu1 %v6186_v41  ;;  %v6201_v41 = vld [vmem:[%s8210_s5 + $0x1a0] sm:$0xff]  }
 0x1a0   : > { %5639 = vmatprep.subr.bf16.mxu1 %v6187_v62 }
 0x1a2   : > { %5624 = vmatmul.mubr.bf16.gmra.mrb[12].mxu1 %v1780_v50  ;;  %v2437_v50 = vrot.slane %v2435_v23, 5 }
 0x1a3   : > { %5640 = vmatpush3.bf16.msra.mxu1 %v6187_v62  ;;  %5643 = vmatprep.mubr.bf16.mxu1 %v1980_v37  ;;  %v6203_v37 = vld [vmem:[%s8210_s5 + $0x1b0] sm:$0xff]  }
 0x1a4   : > { %5641 = vmatprep.subr.bf16.mxu1 %v6188_v54 }
 0x1a7   : > { %5642 = vmatpush3.bf16.msra.mxu1 %v6188_v54 }
 0x1a8   : > { %5659 = vmatprep.subr.bf16.mxu1 %v6189_v58 }
 0x1aa   : > { %5644 = vmatmul.mubr.bf16.vlgmr.msra.gmra.mrb[0].mxu1 %v6770_v7  ;;  %v6193_v7 = vld [vmem:[%s8210_s5 + $0x160] sm:$0xff]  }
 0x1ab   : > { %5660 = vmatpush3.bf16.msra.mxu1 %v6189_v58  ;;  %5647 = vmatprep.mubr.bf16.mxu1 %v6802_v48  ;;  %v2184_v48 = vshrl.u32 %v1950_v15, 16  ;;  %v2397_v15 = vld [vmem:[#allocation2 + $0x10] sm:$0xf0] }
 0x1ac   : > { %5661 = vmatprep.subr.bf16.mxu1 %v6190_v63  ;;  %v2424_v62 = vshrl.u32 %v2397_v15, 16  ;;  %v2427_v60 = vshll.u32 %v2397_v15, 16 }
 0x1ad   : > { %v2186_v2 = vrot.slane %v2184_v48, 4 }
 0x1ae   : > { %v2426_v58 = vrot.slane %v2424_v62, 4 }
 0x1af   : > { %5662 = vmatpush3.bf16.msra.mxu1 %v6190_v63  ;;  %v2429_v63 = vrot.slane %v2427_v60, 5 }
 0x1b0   : > { %5663 = vmatprep.subr.bf16.mxu1 %v6191_v18 }
 0x1b2   : > { %5648 = vmatmul.mubr.bf16.gmra.mrb[4].mxu1 %v6828_v20  ;;  %v2189_v20 = vrot.slane %v2187_v30, 5  ;;  %v2452_v30 = vrot.slane %v2450_v52, 4 }
 0x1b3   : > { %5664 = vmatpush3.bf16.msra.mxu1 %v6191_v18  ;;  %5651 = vmatprep.mubr.bf16.mxu1 %v6856_v0  ;;  %v6195_v0 = vld [vmem:[%s8210_s5 + $0x170] sm:$0xff]  }
 0x1b4   : > { %5665 = vmatprep.subr.bf16.mxu1 %v6192_v61  ;;  %v2190_v56 = vor.u32 %v2189_v20, %v2186_v2  ;;  %v2464_v20 = vrot.slane %v2462_v38, 5  ;;  %v6208_v38 = vld [vmem:[%s8210_s5 + $0x1d8] sm:$0xff]  }
 0x1b7   : > { %5666 = vmatpush3.bf16.msra.mxu1 %v6192_v61 }
 0x1b8   : > { %5667 = vmatprep.subr.bf16.mxu1 %v6193_v7 }
 0x1ba   : > { %5652 = vmatmul.mubr.bf16.gmra.mrb[8].mxu1 %v6879_v42  ;;  %v1994_v42 = vsel %vm1977_vm5, %v1991_v5, %v1993_v43  ;;  %v6198_v5 = vld [vmem:[%s8210_s5 + $0x188] sm:$0xff]   ;;  %v8231_v43 = vshrl.u32 %v6940_v25, 16 }
 0x1bb   : > { %5668 = vmatpush3.bf16.msra.mxu1 %v6193_v7  ;;  %5655 = vmatprep.mubr.bf16.mxu1 %v6902_v16  ;;  %v2194_v16 = vsel %vm2182_vm6, %v2190_v56, %v6780_v24  ;;  %v6223_v24 = vld [vmem:[%s8212_s7 + $0x50] ss:$20 sps:$4 sm:$0xff]   ;;  %v2446_v7 = vrot.slane %v2444_v19, 5  ;;  %v6206_v19 = vld [vmem:[%s8210_s5 + $0x1c8] sm:$0xff]  }
 0x1bc   : > { %5669 = vmatprep.subr.bf16.mxu1 %v6194_v33  ;;  %5791 = vmatprep.subr.bf16.mxu0 %v6223_v24  ;;  %v2470_v56 = vrot.slane %v8231_v43, 4  ;;  %v2707_v43 = vrot.slane %v6935_v8, 5  ;;  %v6217_v8 = vld [vmem:[%s8210_s5 + $0x220] sm:$0xff]  }
 0x1bd   : > { %5792 = vmatpush3.bf16.msra.mxu0 %v6223_v24 }
 0x1be   : > { %5793 = vmatprep.subr.bf16.mxu0 %v6224_v27 }
 0x1bf   : > { %5670 = vmatpush3.bf16.msra.mxu1 %v6194_v33  ;;  %v2455_v33 = vrot.slane %v2453_v26, 5  ;;  %v2461_v26 = vrot.slane %v2459_v40, 4 }
 0x1c0   : > { %5671 = vmatprep.subr.bf16.mxu1 %v6195_v0 }
 0x1c1   : > { %5794 = vmatpush3.bf16.msra.mxu0 %v6224_v27  ;;  %v2456_v2 = vor.u32 %v2455_v33, %v2452_v30  ;;  %v2465_v40 = vor.u32 %v2464_v20, %v2461_v26 }
 0x1c2   : > { %5656 = vmatmul.mubr.bf16.gmra.mrb[12].mxu1 %v1994_v42  ;;  %5795 = vmatprep.subr.bf16.mxu0 %v6225_v49 }
 0x1c3   : > { %5672 = vmatpush3.bf16.msra.mxu1 %v6195_v0  ;;  %5675 = vmatprep.mubr.bf16.mxu1 %v2194_v16  ;;  %v6207_v16 = vld [vmem:[%s8210_s5 + $0x1d0] sm:$0xff]   ;;  %v2466_v46 = vsel %vm2182_vm6, %v2456_v2, %v2465_v40 }
 0x1c4   : > { %5673 = vmatprep.subr.bf16.mxu1 %v6196_v47 }
 0x1c5   : > { %5796 = vmatpush3.bf16.msra.mxu0 %v6225_v49  ;;  %v8235_v49 = vshrl.u32 %v6908_v13, 16 }
 0x1c7   : > { %5674 = vmatpush3.bf16.msra.mxu1 %v6196_v47  ;;  %v8232_v47 = vshll.u32 %v6940_v25, 16 }
 0x1c8   : > { %5691 = vmatprep.subr.bf16.mxu1 %v6197_v55 }
 0x1c9   : > { %v2473_v42 = vrot.slane %v8232_v47, 5  ;;  %v6216_v47 = vld [vmem:[%s8210_s5 + $0x218] sm:$0xff]  }
 0x1ca   : > { %5676 = vmatmul.mubr.bf16.vlgmr.msra.gmra.mrb[0].mxu1 %v6795_v36  ;;  %v6200_v36 = vld [vmem:[%s8210_s5 + $0x198] sm:$0xff]  }
 0x1cb   : > { %5692 = vmatpush3.bf16.msra.mxu1 %v6197_v55  ;;  %5679 = vmatprep.mubr.bf16.mxu1 %v6821_v9  ;;  %v2164_v9 = vld [vmem:[#allocation2 + $0x48] sm:$0x1f]  ;;  %v2474_v53 = vor.u32 %v2473_v42, %v2470_v56  ;;  %v8233_v55 = vshrl.u32 %v6944_v31, 16  ;;  %v2709_v56 = vrot.slane %v6940_v25, 5  ;;  %v2711_v25 = vrot.slane %v6944_v31, 5 }
 0x1cc   : > { %5693 = vmatprep.subr.bf16.mxu1 %v6198_v5  ;;  %v2220_v57 = vshrl.u32 %v2164_v9, 16  ;;  %v2223_v35 = vshll.u32 %v2164_v9, 16  ;;  %v8236_v9 = vshll.u32 %v6908_v13, 16 }
 0x1cd   : > { %v2479_v24 = vrot.slane %v8233_v55, 4 }
 0x1ce   : > { %v2222_v45 = vrot.slane %v2220_v57, 4  ;;  %v2225_v54 = vrot.slane %v2223_v35, 5  ;;  %v7204_v57 = vld [vmem:[#allocation2 + $0x50] sm:$0x1f]  ;;  %v6209_v35 = vld [vmem:[%s8210_s5 + $0x1e0] sm:$0xff]  }
 0x1cf   : > { %5694 = vmatpush3.bf16.msra.mxu1 %v6198_v5  ;;  %v8234_v5 = vshll.u32 %v6944_v31, 16  ;;  %v2498_v62 = vshll.u32 %v7204_v57, 16 }
 0x1d0   : > { %5695 = vmatprep.subr.bf16.mxu1 %v6199_v1  ;;  %v2226_v18 = vor.u32 %v2225_v54, %v2222_v45  ;;  %v6210_v45 = vld [vmem:[%s8210_s5 + $0x1e8] sm:$0xff]  }
 0x1d1   : > { %v2482_v27 = vrot.slane %v8234_v5, 5 }
 0x1d2   : > { %5680 = vmatmul.mubr.bf16.gmra.mrb[4].mxu1 %v6847_v51  ;;  %v6202_v51 = vld [vmem:[%s8210_s5 + $0x1a8] sm:$0xff]   ;;  %v2227_v23 = vsel %vm2182_vm6, %v6906_v32, %v2226_v18  ;;  %v6205_v32 = vld [vmem:[%s8210_s5 + $0x1c0] sm:$0xff]  }
 0x1d3   : > { %5696 = vmatpush3.bf16.msra.mxu1 %v6199_v1  ;;  %5683 = vmatprep.mubr.bf16.mxu1 %v6873_v29  ;;  %v2434_v29 = vrot.slane %v2432_v10, 4  ;;  %v6204_v10 = vld [vmem:[%s8210_s5 + $0x1b8] sm:$0xff]   ;;  %v2475_v1 = vsel %vm2182_vm6, %v2465_v40, %v2474_v53  ;;  %v2483_v15 = vor.u32 %v2482_v27, %v2479_v24  ;;  %v2713_v40 = vrot.slane %v6908_v13, 5 }
 0x1d4   : > { %5697 = vmatprep.subr.bf16.mxu1 %v6200_v36  ;;  %v2712_v24 = vsel %vm2699_vm8, %v2709_v56, %v2711_v25 }
 0x1d5   : > { %v2438_v61 = vor.u32 %v2437_v50, %v2434_v29  ;;  %v2484_v29 = vsel %vm2182_vm6, %v2474_v53, %v2483_v15  ;;  %v6218_v53 = vld [vmem:[%s8210_s5 + $0x228] sm:$0xff]   ;;  %v2714_v27 = vsel %vm2699_vm8, %v2711_v25, %v2713_v40 }
 0x1d7   : > { %5698 = vmatpush3.bf16.msra.mxu1 %v6200_v36  ;;  %v2488_v36 = vrot.slane %v8235_v49, 4 }
 0x1d8   : > { %5699 = vmatprep.subr.bf16.mxu1 %v6201_v41 }
 0x1da   : > { %5684 = vmatmul.mubr.bf16.gmra.mrb[8].mxu1 %v6897_v11  ;;  %v2430_v11 = vor.u32 %v2429_v63, %v2426_v58  ;;  %v2500_v58 = vrot.slane %v2498_v62, 5 }
 0x1db   : > { %5700 = vmatpush3.bf16.msra.mxu1 %v6201_v41  ;;  %5687 = vmatprep.mubr.bf16.mxu1 %v6918_v39  ;;  %v2443_v39 = vrot.slane %v2441_v17, 4  ;;  %v2491_v41 = vrot.slane %v8236_v9, 5  ;;  %v2715_v9 = vrot.slane %v7204_v57, 5 }
 0x1dc   : > { %5701 = vmatprep.subr.bf16.mxu1 %v6202_v51  ;;  %v2439_v48 = vsel %vm2182_vm6, %v2430_v11, %v2438_v61  ;;  %v6211_v11 = vld [vmem:[%s8210_s5 + $0x1f0] sm:$0xff]  }
 0x1dd   : > { %v2447_v17 = vor.u32 %v2446_v7, %v2443_v39  ;;  %v2492_v60 = vor.u32 %v2491_v41, %v2488_v36  ;;  %v2701_v39 = vrot.slane %v6925_v12, 5  ;;  %v6213_v12 = vld [vmem:[%s8210_s5 + $0x200] sm:$0xff]  }
 0x1df   : > { %5702 = vmatpush3.bf16.msra.mxu1 %v6202_v51  ;;  %v2448_v52 = vsel %vm2182_vm6, %v2438_v61, %v2447_v17  ;;  %v2457_v0 = vsel %vm2182_vm6, %v2447_v17, %v2456_v2  ;;  %v2495_v51 = vshrl.u32 %v7204_v57, 16  ;;  %v2493_v63 = vsel %vm2182_vm6, %v2483_v15, %v2492_v60  ;;  %v6214_v2 = vld [vmem:[%s8210_s5 + $0x208] sm:$0xff]  }
 0x1e0   : > { %5703 = vmatprep.subr.bf16.mxu1 %v6203_v37  ;;  %v2705_v17 = vrot.slane %v6933_v14, 5  ;;  %v6215_v14 = vld [vmem:[%s8210_s5 + $0x210] sm:$0xff]   ;;  %v2716_v15 = vsel %vm2699_vm8, %v2713_v40, %v2715_v9  ;;  %v6230_v40 = vld [vmem:[%s8212_s7 + $0x2c] ss:$20 sps:$4 sm:$0xff]  }
 0x1e2   : > { %5688 = vmatmul.mubr.bf16.gmra.mrb[12].mxu1 %v2227_v23  ;;  %v2672_v23 = vld [vmem:[#allocation2 + $0x10] sm:$0xe0]  ;;  %v2708_v42 = vsel %vm2699_vm8, %v2705_v17, %v2707_v43 }
 0x1e3   : > { %5704 = vmatpush3.bf16.msra.mxu1 %v6203_v37  ;;  %5707 = vmatprep.mubr.bf16.mxu1 %v2439_v48  ;;  %v2497_v37 = vrot.slane %v2495_v51, 4  ;;  %v2700_v7 = vrot.slane %v2672_v23, 5  ;;  %v6212_v48 = vld [vmem:[%s8210_s5 + $0x1f8] sm:$0xff]   ;;  %v2909_v55 = vshll.u32 %v2672_v23, 16 }
 0x1e4   : > { %5705 = vmatprep.subr.bf16.mxu1 %v6204_v10 }
 0x1e5   : > { %v2702_v33 = vsel %vm2699_vm8, %v2700_v7, %v2701_v39  ;;  %v2911_v36 = vrot.slane %v2909_v55, 6 }
 0x1e7   : > { %5706 = vmatpush3.bf16.msra.mxu1 %v6204_v10  ;;  %v2501_v10 = vor.u32 %v2500_v58, %v2497_v37 }
 0x1e8   : > { %5723 = vmatprep.subr.bf16.mxu1 %v6205_v32 }
 0x1e9   : > { %v2502_v30 = vsel %vm2182_vm6, %v2492_v60, %v2501_v10 }
 0x1ea   : > { %5708 = vmatmul.mubr.bf16.vlgmr.msra.gmra.mrb[0].mxu1 %v2448_v52 }
 0x1eb   : > { %5724 = vmatpush3.bf16.msra.mxu1 %v6205_v32  ;;  %5711 = vmatprep.mubr.bf16.mxu1 %v2457_v0  ;;  %v2703_v32 = vrot.slane %v6928_v21, 5 }
 0x1ec   : > { %5725 = vmatprep.subr.bf16.mxu1 %v6206_v19 }
 0x1ed   : > { %v2704_v52 = vsel %vm2699_vm8, %v2701_v39, %v2703_v32  ;;  %v2706_v20 = vsel %vm2699_vm8, %v2703_v32, %v2705_v17 }
 0x1ef   : > { %5726 = vmatpush3.bf16.msra.mxu1 %v6206_v19 }
 0x1f0   : > { %5727 = vmatprep.subr.bf16.mxu1 %v6207_v16 }
 0x1f2   : > { %5712 = vmatmul.mubr.bf16.gmra.mrb[4].mxu1 %v2466_v46  ;;  %v2906_v46 = vshrl.u32 %v2672_v23, 16 }
 0x1f3   : > { %5728 = vmatpush3.bf16.msra.mxu1 %v6207_v16  ;;  %5715 = vmatprep.mubr.bf16.mxu1 %v2475_v1  ;;  %v2710_v16 = vsel %vm2699_vm8, %v2707_v43, %v2709_v56  ;;  %v6219_v1 = vld [vmem:[%s8210_s5 + $0x230] sm:$0xff]  }
 0x1f4   : > { %5729 = vmatprep.subr.bf16.mxu1 %v6208_v38  ;;  %v2908_v49 = vrot.slane %v2906_v46, 5 }
 0x1f6   : > { %v2912_v41 = vor.u32 %v2911_v36, %v2908_v49 }
 0x1f7   : > { %5730 = vmatpush3.bf16.msra.mxu1 %v6208_v38 }
 0x1f8   : > { %5731 = vmatprep.subr.bf16.mxu1 %v6209_v35  ;;  %v7214_v54 = vpop.f32.mrb[44].mxu0  ;;  %v2916_v51 = vsel %vm2904_vm7, %v2912_v41, %v6955_v44 }
 0x1f9   : > { %v7217_v50 = vpop.f32.mrb[45].mxu0 }
 0x1fa   : > { %5716 = vmatmul.mubr.bf16.gmra.mrb[8].mxu1 %v2484_v29  ;;  %v7220_v18 = vpop.f32.mrb[46].mxu0 }
 0x1fb   : > { %5732 = vmatpush3.bf16.msra.mxu1 %v6209_v35  ;;  %5719 = vmatprep.mubr.bf16.mxu1 %v2493_v63  ;;  %v7222_v61 = vpop.f32.mrb[47].mxu0  ;;  %v6220_v35 = vld [vmem:[%s8210_s5 + $0x238] sm:$0xff]  }
 0x1fc   : > { %5733 = vmatprep.subr.bf16.mxu1 %v6210_v45 }
 0x1ff   : > { %5734 = vmatpush3.bf16.msra.mxu1 %v6210_v45  ;;  %v2886_v45 = vld [vmem:[#allocation2 + $0x50] sm:$0x3f] }
 0x200   : > { %5735 = vmatprep.subr.bf16.mxu1 %v6211_v11  ;;  %v2942_v29 = vshrl.u32 %v2886_v45, 16  ;;  %v2945_v37 = vshll.u32 %v2886_v45, 16 }
 0x202   : > { %5720 = vmatmul.mubr.bf16.gmra.mrb[12].mxu1 %v2502_v30  ;;  %v2944_v58 = vrot.slane %v2942_v29, 5  ;;  %v2947_v63 = vrot.slane %v2945_v37, 6  ;;  %v6232_v37 = vld [vmem:[%s8212_s7 + $0x7c] ss:$20 sps:$4 sm:$0xff]  }
 0x203   : > { %5736 = vmatpush3.bf16.msra.mxu1 %v6211_v11  ;;  %5739 = vmatprep.mubr.bf16.mxu1 %v2702_v33  ;;  %v7320_v11 = vld [vmem:[%s8211_s6] ss:$0 sm:$0xff] }
 0x204   : > { %5737 = vmatprep.subr.bf16.mxu1 %v6212_v48 }
 0x207   : > { %5738 = vmatpush3.bf16.msra.mxu1 %v6212_v48 }
 0x208   : > { %5755 = vmatprep.subr.bf16.mxu1 %v6213_v12  ;;  %v7241_v19 = vpop.f32.mrb[48].mxu0 }
 0x209   : > { %v7244_v26 = vpop.f32.mrb[49].mxu0 }
 0x20a   : > { %5740 = vmatmul.mubr.bf16.vlgmr.msra.gmra.mrb[0].mxu1 %v2704_v52  ;;  %v7247_v0 = vpop.f32.mrb[50].mxu0 }
 0x20b   : > { %5756 = vmatpush3.bf16.msra.mxu1 %v6213_v12  ;;  %5743 = vmatprep.mubr.bf16.mxu1 %v2706_v20  ;;  %v7249_v21 = vpop.f32.mrb[51].mxu0 }
 0x20c   : > { %5757 = vmatprep.subr.bf16.mxu1 %v6214_v2 }
 0x20f   : > { %5758 = vmatpush3.bf16.msra.mxu1 %v6214_v2 }
 0x210   : > { %5759 = vmatprep.subr.bf16.mxu1 %v6215_v14 }
 0x212   : > { %5744 = vmatmul.mubr.bf16.gmra.mrb[4].mxu1 %v2708_v42 }
 0x213   : > { %5760 = vmatpush3.bf16.msra.mxu1 %v6215_v14  ;;  %5747 = vmatprep.mubr.bf16.mxu1 %v2710_v16 }
 0x214   : > { %5761 = vmatprep.subr.bf16.mxu1 %v6216_v47 }
 0x217   : > { %5762 = vmatpush3.bf16.msra.mxu1 %v6216_v47 }
 0x218   : > { %5763 = vmatprep.subr.bf16.mxu1 %v6217_v8  ;;  %v7269_v38 = vpop.f32.mrb[52].mxu0 }
 0x219   : > { %v7272_v5 = vpop.f32.mrb[53].mxu0 }
 0x21a   : > { %5748 = vmatmul.mubr.bf16.gmra.mrb[8].mxu1 %v2712_v24  ;;  %v7275_v31 = vpop.f32.mrb[54].mxu0  ;;  %v6231_v24 = vld [vmem:[%s8212_s7 + $0x54] ss:$20 sps:$4 sm:$0xff]  }
 0x21b   : > { %5764 = vmatpush3.bf16.msra.mxu1 %v6217_v8  ;;  %5751 = vmatprep.mubr.bf16.mxu1 %v2714_v27  ;;  %v7277_v13 = vpop.f32.mrb[55].mxu0 }
 0x21c   : > { %5765 = vmatprep.subr.bf16.mxu1 %v6218_v53 }
 0x21f   : > { %5766 = vmatpush3.bf16.msra.mxu1 %v6218_v53 }
 0x220   : > { %5767 = vmatprep.subr.bf16.mxu1 %v6219_v1 }
 0x222   : > { %5752 = vmatmul.mubr.bf16.gmra.mrb[12].mxu1 %v2716_v15 }
 0x223   : > { %5768 = vmatpush3.bf16.msra.mxu1 %v6219_v1  ;;  %5771 = vmatprep.mubr.bf16.mxu1 %v2916_v51 }
 0x224   : > { %5769 = vmatprep.subr.bf16.mxu1 %v6220_v35 }
 0x227   : > { %5770 = vmatpush3.bf16.msra.mxu1 %v6220_v35 }
 0x22a   : > { %5772 = vmatmul.mubr.bf16.vlgmr.msra.gmra.mrb[0].mxu1 %v6984_v6  ;;  %v2948_v6 = vor.u32 %v2947_v63, %v2944_v58 }
 0x22b   : > { %5775 = vmatprep.mubr.bf16.mxu1 %v6991_v34 }
 0x22c   : > { %v2949_v34 = vsel %vm2904_vm7, %v7009_v59, %v2948_v6  ;;  %v6229_v59 = vld [vmem:[%s8212_s7 + $0x4] ss:$20 sps:$4 sm:$0xff]  }
 0x230   : > { %v7291_v57 = vpop.f32.mrb[56].mxu0 }
 0x231   : > { %v7293_v62 = vpop.f32.mrb[57].mxu0 }
 0x232   : > { %5776 = vmatmul.mubr.bf16.gmra.mrb[4].mxu1 %v7003_v28  ;;  %v7296_v60 = vpop.f32.mrb[58].mxu0  ;;  %v6226_v28 = vld [vmem:[%s8212_s7 + $0xc8] ss:$20 sps:$4 sm:$0xff]  }
 0x233   : > { %5779 = vmatprep.mubr.bf16.mxu1 %v7007_v3  ;;  %v7299_v44 = vpop.f32.mrb[59].mxu0  ;;  %5797 = vmatprep.subr.bf16.mxu0 %v6226_v28  ;;  %v6227_v3 = vld [vmem:[%s8212_s7 + $0xf0] ss:$20 sps:$4 sm:$0xff]  }
 0x234   : > { %5798 = vmatpush3.bf16.msra.mxu0 %v6226_v28 }
 0x235   : > { %5799 = vmatprep.subr.bf16.mxu0 %v6227_v3 }
 0x238   : > { %5800 = vmatpush3.bf16.msra.mxu0 %v6227_v3 }
 0x23a   : > { %5780 = vmatmul.mubr.bf16.gmra.mrb[8].mxu1 %v7013_v4  ;;  %v6228_v4 = vld [vmem:[%s8212_s7 + $0x118] ss:$20 sps:$4 sm:$0xff]  }
 0x23b   : > { %5783 = vmatprep.mubr.bf16.mxu1 %v7020_v22  ;;  %5801 = vmatprep.subr.bf16.mxu0 %v6228_v4 }
 0x23c   : > { %5802 = vmatpush3.bf16.msra.mxu0 %v6228_v4 }
 0x23d   : > { %5819 = vmatprep.subr.bf16.mxu0 %v6229_v59 }
 0x242   : > { %5784 = vmatmul.mubr.bf16.gmra.mrb[12].mxu1 %v2949_v34  ;;  %v6233_v34 = vld [vmem:[%s8212_s7 + $0xa4] ss:$20 sps:$4 sm:$0xff]  }
 0x2fd   : > { %v5773_v22 = vpop.f32.mrb[0].mxu1 }
 0x2fe   : > { %v5947_v10 = vadd.f32 %v5773_v22, %v7214_v54  ;;  %v3040_v23 = vpop.f32.mrb[1].mxu1 }
 0x2ff   : > { %v5948_v39 = vadd.f32 %v3040_v23, %v7217_v50  ;;  %v5774_v7 = vpop.f32.mrb[2].mxu1 }
 0x300   : > { %v3128_v48 = vadd.f32 %v5947_v10, %v7320_v11  ;;  %v5949_v30 = vadd.f32 %v5774_v7, %v7220_v18  ;;  %v3043_v33 = vpop.f32.mrb[3].mxu1 }
 0x301   : > { %v3126_v12 = vadd.f32 %v5948_v39, %v7320_v11  ;;  %v5950_v32 = vadd.f32 %v3043_v33, %v7222_v61  ;;  %v6234_v33 = vld [vmem:[%s8212_s7 + $0xcc] ss:$20 sps:$4 sm:$0xff]  }
 0x302   : > { %v3129_v17 = vadd.f32 %v5949_v30, %v7320_v11  ;;  %v3144_v52 = vmax.f32 %v3128_v48, 0.0 }
 0x303   : > { %v3127_v2 = vadd.f32 %v5950_v32, %v7320_v11  ;;  %v3142_v54 = vmax.f32 %v3126_v12, 0.0 }
 0x304   : > { %v3145_v20 = vmax.f32 %v3129_v17, 0.0 }
 0x305   : > { %v3143_v14 = vmax.f32 %v3127_v2, 0.0  ;;  %v5777_v43 = vpop.f32.mrb[4].mxu1  ;;  %v6235_v2 = vld [vmem:[%s8212_s7 + $0xf4] ss:$20 sps:$4 sm:$0xff]  }
 0x306   : > { %v7330_v50 = vpack.c.bf16 %v3145_v20, %v3144_v52  ;;  %v5951_v56 = vadd.f32 %v5777_v43, %v7241_v19  ;;  %v3056_v47 = vpop.f32.mrb[5].mxu1  ;;  %v6238_v43 = vld [vmem:[%s8212_s7 + $0x34] ss:$20 sps:$4 sm:$0xff]  }
 0x307   : > { %v7333_v18 = vpack.c.bf16 %v3143_v14, %v3142_v54  ;;  %v5952_v42 = vadd.f32 %v3056_v47, %v7244_v26  ;;  %v5778_v16 = vpop.f32.mrb[6].mxu1  ;;  %v6237_v14 = vld [vmem:[%s8212_s7 + $0xc] ss:$20 sps:$4 sm:$0xff]   ;;  %v6240_v47 = vld [vmem:[%s8212_s7 + $0x84] ss:$20 sps:$4 sm:$0xff]  }
 0x308   : > { %v3132_v61 = vadd.f32 %v5951_v56, %v7320_v11  ;;  %v5953_v8 = vadd.f32 %v5778_v16, %v7247_v0  ;;  %v3059_v25 = vpop.f32.mrb[7].mxu1  ;;  %v6239_v56 = vld [vmem:[%s8212_s7 + $0x5c] ss:$20 sps:$4 sm:$0xff]   ;;  %v6242_v16 = vld [vmem:[%s8212_s7 + $0xd4] ss:$20 sps:$4 sm:$0xff]  }
 0x309   : > { %v3130_v53 = vadd.f32 %v5952_v42, %v7320_v11  ;;  %v5954_v46 = vadd.f32 %v3059_v25, %v7249_v21  ;;  %5803 = vmatprep.mubr.bf16.mxu0 %v7333_v18  ;;  %v6241_v42 = vld [vmem:[%s8212_s7 + $0xac] ss:$20 sps:$4 sm:$0xff]   ;;  %v6245_v25 = vld [vmem:[%s8212_s7 + $0x8] ss:$20 sps:$4 sm:$0xff]  }
 0x30a   : > { %v3133_v19 = vadd.f32 %v5953_v8, %v7320_v11  ;;  %5804 = vmatmul.mubr.bf16.vlgmr.msra.gmra.mrb[60].mxu0 %v7330_v50  ;;  %v3148_v55 = vmax.f32 %v3132_v61, 0.0  ;;  %v6243_v61 = vld [vmem:[%s8212_s7 + $0xfc] ss:$20 sps:$4 sm:$0xff]   ;;  %v6244_v8 = vld [vmem:[%s8212_s7 + $0x124] ss:$20 sps:$4 sm:$0xff]  }
 0x30b   : > { %v3131_v26 = vadd.f32 %v5954_v46, %v7320_v11  ;;  %5820 = vmatpush3.bf16.msra.mxu0 %v6229_v59  ;;  %v3146_v27 = vmax.f32 %v3130_v53, 0.0  ;;  %v6247_v53 = vld [vmem:[%s8212_s7 + $0x58] ss:$20 sps:$4 sm:$0xff]   ;;  %v6248_v46 = vld [vmem:[%s8212_s7 + $0x80] ss:$20 sps:$4 sm:$0xff]  }
 0x30c   : > { %v3149_v0 = vmax.f32 %v3133_v19, 0.0  ;;  %5821 = vmatprep.subr.bf16.mxu0 %v6230_v40  ;;  %v6249_v19 = vld [vmem:[%s8212_s7 + $0xa8] ss:$20 sps:$4 sm:$0xff]  }
 0x30d   : > { %v3147_v1 = vmax.f32 %v3131_v26, 0.0  ;;  %v5781_v49 = vpop.f32.mrb[8].mxu1  ;;  %v6250_v26 = vld [vmem:[%s8212_s7 + $0xd0] ss:$20 sps:$4 sm:$0xff]  }
 0x30e   : > { %v7350_v21 = vpack.c.bf16 %v3149_v0, %v3148_v55  ;;  %v5955_v36 = vadd.f32 %v5781_v49, %v7269_v38  ;;  %v3072_v9 = vpop.f32.mrb[9].mxu1  ;;  %v6251_v55 = vld [vmem:[%s8212_s7 + $0xf8] ss:$20 sps:$4 sm:$0xff]   ;;  %v6252_v0 = vld [vmem:[%s8212_s7 + $0x120] ss:$20 sps:$4 sm:$0xff]  }
 0x30f   : > { %v7353_v41 = vpack.c.bf16 %v3147_v1, %v3146_v27  ;;  %v5956_v35 = vadd.f32 %v3072_v9, %v7272_v5  ;;  %5822 = vmatpush3.bf16.msra.mxu0 %v6230_v40  ;;  %v5782_v15 = vpop.f32.mrb[10].mxu1  ;;  %v6246_v40 = vld [vmem:[%s8212_s7 + $0x30] ss:$20 sps:$4 sm:$0xff]   ;;  %v6254_v27 = vld [vmem:[%s8212_s7 + $0x38] ss:$20 sps:$4 sm:$0xff]  }
 0x310   : > { %v3136_v51 = vadd.f32 %v5955_v36, %v7320_v11  ;;  %v5957_v45 = vadd.f32 %v5782_v15, %v7275_v31  ;;  %v3075_v29 = vpop.f32.mrb[11].mxu1  ;;  %5823 = vmatprep.subr.bf16.mxu0 %v6231_v24  ;;  %v6255_v1 = vld [vmem:[%s8212_s7 + $0x60] ss:$20 sps:$4 sm:$0xff]   ;;  %v6256_v49 = vld [vmem:[%s8212_s7 + $0x88] ss:$20 sps:$4 sm:$0xff]  }
 0x311   : > { %v3134_v58 = vadd.f32 %v5956_v35, %v7320_v11  ;;  %v5958_v38 = vadd.f32 %v3075_v29, %v7277_v13  ;;  %5807 = vmatprep.mubr.bf16.mxu0 %v7353_v41  ;;  %v6257_v36 = vld [vmem:[%s8212_s7 + $0xb0] ss:$20 sps:$4 sm:$0xff]   ;;  %v6258_v9 = vld [vmem:[%s8212_s7 + $0xd8] ss:$20 sps:$4 sm:$0xff]   ;;  %v6259_v35 = vld [vmem:[%s8212_s7 + $0x100] ss:$20 sps:$4 sm:$0xff]  }
 0x312   : > { %v3137_v5 = vadd.f32 %v5957_v45, %v7320_v11  ;;  %5808 = vmatmul.mubr.bf16.gmra.mrb[64].mxu0 %v7350_v21  ;;  %v3152_v31 = vmax.f32 %v3136_v51, 0.0  ;;  %v6260_v15 = vld [vmem:[%s8212_s7 + $0x128] ss:$20 sps:$4 sm:$0xff]  }
 0x313   : > { %v3135_v63 = vadd.f32 %v5958_v38, %v7320_v11  ;;  %5824 = vmatpush3.bf16.msra.mxu0 %v6231_v24  ;;  %v3150_v28 = vmax.f32 %v3134_v58, 0.0  ;;  %v6253_v24 = vld [vmem:[%s8212_s7 + $0x10] ss:$20 sps:$4 sm:$0xff]  }
 0x314   : > { %v3153_v6 = vmax.f32 %v3137_v5, 0.0  ;;  %5825 = vmatprep.subr.bf16.mxu0 %v6232_v37 }
 0x315   : > { %v3151_v3 = vmax.f32 %v3135_v63, 0.0  ;;  %v5785_v4 = vpop.f32.mrb[12].mxu1 }
 0x316   : > { %v7370_v13 = vpack.c.bf16 %v3153_v6, %v3152_v31  ;;  %v5959_v59 = vadd.f32 %v5785_v4, %v7291_v57  ;;  %v3088_v22 = vpop.f32.mrb[13].mxu1 }
 0x317   : > { %v7373_v10 = vpack.c.bf16 %v3151_v3, %v3150_v28  ;;  %v5960_v23 = vadd.f32 %v3088_v22, %v7293_v62  ;;  %5826 = vmatpush3.bf16.msra.mxu0 %v6232_v37  ;;  %v5786_v39 = vpop.f32.mrb[14].mxu1 }
 0x318   : > { %v3140_v7 = vadd.f32 %v5959_v59, %v7320_v11  ;;  %v5961_v48 = vadd.f32 %v5786_v39, %v7296_v60  ;;  %v3091_v30 = vpop.f32.mrb[15].mxu1  ;;  %5827 = vmatprep.subr.bf16.mxu0 %v6233_v34 }
 0x319   : > { %v3138_v12 = vadd.f32 %v5960_v23, %v7320_v11  ;;  %v5962_v57 = vadd.f32 %v3091_v30, %v7299_v44  ;;  %5811 = vmatprep.mubr.bf16.mxu0 %v7373_v10 }
 0x31a   : > { %v3141_v62 = vadd.f32 %v5961_v48, %v7320_v11  ;;  %5812 = vmatmul.mubr.bf16.gmra.mrb[68].mxu0 %v7370_v13  ;;  %v3156_v60 = vmax.f32 %v3140_v7, 0.0 }
 0x31b   : > { %v3139_v32 = vadd.f32 %v5962_v57, %v7320_v11  ;;  %5828 = vmatpush3.bf16.msra.mxu0 %v6233_v34  ;;  %v3154_v52 = vmax.f32 %v3138_v12, 0.0  ;;  %v6236_v11 = vld [vmem:[%s8212_s7 + $0x11c] ss:$20 sps:$4 sm:$0xff]  }
 0x31c   : > { %v3157_v17 = vmax.f32 %v3141_v62, 0.0  ;;  %5829 = vmatprep.subr.bf16.mxu0 %v6234_v33 }
 0x31d   : > { %v3155_v20 = vmax.f32 %v3139_v32, 0.0 }
 0x31e   : > { %v7390_v54 = vpack.c.bf16 %v3157_v17, %v3156_v60 }
 0x31f   : > { %v7392_v44 = vpack.c.bf16 %v3155_v20, %v3154_v52  ;;  %5830 = vmatpush3.bf16.msra.mxu0 %v6234_v33 }
 0x320   : > { %5831 = vmatprep.subr.bf16.mxu0 %v6235_v2 }
 0x321   : > { %5815 = vmatprep.mubr.bf16.mxu0 %v7392_v44 }
 0x322   : > { %5816 = vmatmul.mubr.bf16.gmra.mrb[72].mxu0 %v7390_v54 }
 0x323   : > { %5832 = vmatpush3.bf16.msra.mxu0 %v6235_v2  ;;  %5835 = vmatprep.mubr.bf16.mxu0 %v7333_v18 }
 0x324   : > { %5833 = vmatprep.subr.bf16.mxu0 %v6236_v11 }
 0x327   : > { %5834 = vmatpush3.bf16.msra.mxu0 %v6236_v11 }
 0x328   : > { %5851 = vmatprep.subr.bf16.mxu0 %v6237_v14 }
 0x32a   : > { %5836 = vmatmul.mubr.bf16.vlgmr.msra.gmra.mrb[76].mxu0 %v7330_v50 }
 0x32b   : > { %5852 = vmatpush3.bf16.msra.mxu0 %v6237_v14  ;;  %5839 = vmatprep.mubr.bf16.mxu0 %v7353_v41 }
 0x32c   : > { %5853 = vmatprep.subr.bf16.mxu0 %v6238_v43 }
 0x32f   : > { %5854 = vmatpush3.bf16.msra.mxu0 %v6238_v43 }
 0x330   : > { %5855 = vmatprep.subr.bf16.mxu0 %v6239_v56 }
 0x332   : > { %5840 = vmatmul.mubr.bf16.gmra.mrb[80].mxu0 %v7350_v21 }
 0x333   : > { %5856 = vmatpush3.bf16.msra.mxu0 %v6239_v56  ;;  %5843 = vmatprep.mubr.bf16.mxu0 %v7373_v10  ;;  %v3584_v56 = vpop.permute.xlu0 %3583 }
 0x334   : > { %5857 = vmatprep.subr.bf16.mxu0 %v6240_v47 }
 0x337   : > { %5858 = vmatpush3.bf16.msra.mxu0 %v6240_v47 }
 0x338   : > { %5859 = vmatprep.subr.bf16.mxu0 %v6241_v42 }
 0x33a   : > { %5844 = vmatmul.mubr.bf16.gmra.mrb[84].mxu0 %v7370_v13 }
 0x33b   : > { %5860 = vmatpush3.bf16.msra.mxu0 %v6241_v42  ;;  %5847 = vmatprep.mubr.bf16.mxu0 %v7392_v44 }
 0x33c   : > { %5861 = vmatprep.subr.bf16.mxu0 %v6242_v16 }
 0x33f   : > { %5862 = vmatpush3.bf16.msra.mxu0 %v6242_v16 }
 0x340   : > { %5863 = vmatprep.subr.bf16.mxu0 %v6243_v61 }
 0x342   : > { %5848 = vmatmul.mubr.bf16.gmra.mrb[88].mxu0 %v7390_v54 }
 0x343   : > { %5864 = vmatpush3.bf16.msra.mxu0 %v6243_v61  ;;  %5867 = vmatprep.mubr.bf16.mxu0 %v7333_v18  ;;  %v3594_v61 = vpop.permute.xlu0 %3593 }
 0x344   : > { %5865 = vmatprep.subr.bf16.mxu0 %v6244_v8 }
 0x347   : > { %5866 = vmatpush3.bf16.msra.mxu0 %v6244_v8 }
 0x348   : > { %5883 = vmatprep.subr.bf16.mxu0 %v6245_v25 }
 0x34a   : > { %5868 = vmatmul.mubr.bf16.vlgmr.msra.gmra.mrb[92].mxu0 %v7330_v50 }
 0x34b   : > { %5884 = vmatpush3.bf16.msra.mxu0 %v6245_v25  ;;  %5871 = vmatprep.mubr.bf16.mxu0 %v7353_v41  ;;  %v7542_v25 = vld [vmem:[%s8213_s8 + $0x1] ss:$0 sm:$0xff] }
 0x34c   : > { %5885 = vmatprep.subr.bf16.mxu0 %v6246_v40 }
 0x34f   : > { %5886 = vmatpush3.bf16.msra.mxu0 %v6246_v40 }
 0x350   : > { %5887 = vmatprep.subr.bf16.mxu0 %v6247_v53 }
 0x352   : > { %5872 = vmatmul.mubr.bf16.gmra.mrb[96].mxu0 %v7350_v21 }
 0x353   : > { %5888 = vmatpush3.bf16.msra.mxu0 %v6247_v53  ;;  %5875 = vmatprep.mubr.bf16.mxu0 %v7373_v10 }
 0x354   : > { %5889 = vmatprep.subr.bf16.mxu0 %v6248_v46 }
 0x357   : > { %5890 = vmatpush3.bf16.msra.mxu0 %v6248_v46 }
 0x358   : > { %5891 = vmatprep.subr.bf16.mxu0 %v6249_v19 }
 0x35a   : > { %5876 = vmatmul.mubr.bf16.gmra.mrb[100].mxu0 %v7370_v13 }
 0x35b   : > { %5892 = vmatpush3.bf16.msra.mxu0 %v6249_v19  ;;  %5879 = vmatprep.mubr.bf16.mxu0 %v7392_v44  ;;  %v3589_v19 = vpop.permute.xlu1 %3588 }
 0x35c   : > { %5893 = vmatprep.subr.bf16.mxu0 %v6250_v26 }
 0x35f   : > { %5894 = vmatpush3.bf16.msra.mxu0 %v6250_v26 }
 0x360   : > { %5895 = vmatprep.subr.bf16.mxu0 %v6251_v55 }
 0x362   : > { %5880 = vmatmul.mubr.bf16.gmra.mrb[104].mxu0 %v7390_v54 }
 0x363   : > { %5896 = vmatpush3.bf16.msra.mxu0 %v6251_v55  ;;  %5899 = vmatprep.mubr.bf16.mxu0 %v7333_v18  ;;  %v7552_v55 = vpop.permute.xlu0 %3603 }
 0x364   : > { %5897 = vmatprep.subr.bf16.mxu0 %v6252_v0 }
 0x367   : > { %5898 = vmatpush3.bf16.msra.mxu0 %v6252_v0  ;;  %v7557_v0 = vld [vmem:[%s8214_s9] ss:$0 sm:$0xff] }
 0x368   : > { %5915 = vmatprep.subr.bf16.mxu0 %v6253_v24 }
 0x36a   : > { %5900 = vmatmul.mubr.bf16.vlgmr.msra.gmra.mrb[108].mxu0 %v7330_v50 }
 0x36b   : > { %5916 = vmatpush3.bf16.msra.mxu0 %v6253_v24  ;;  %5903 = vmatprep.mubr.bf16.mxu0 %v7353_v41 }
 0x36c   : > { %5917 = vmatprep.subr.bf16.mxu0 %v6254_v27 }
 0x36f   : > { %5918 = vmatpush3.bf16.msra.mxu0 %v6254_v27  ;;  %v7563_v27 = vld [vmem:[%s8213_s8 + $0x3] ss:$0 sm:$0xff] }
 0x370   : > { %5919 = vmatprep.subr.bf16.mxu0 %v6255_v1 }
 0x372   : > { %5904 = vmatmul.mubr.bf16.gmra.mrb[112].mxu0 %v7350_v21 }
 0x373   : > { %5920 = vmatpush3.bf16.msra.mxu0 %v6255_v1  ;;  %5907 = vmatprep.mubr.bf16.mxu0 %v7373_v10 }
 0x374   : > { %5921 = vmatprep.subr.bf16.mxu0 %v6256_v49 }
 0x377   : > { %5922 = vmatpush3.bf16.msra.mxu0 %v6256_v49 }
 0x378   : > { %5923 = vmatprep.subr.bf16.mxu0 %v6257_v36 }
 0x37a   : > { %5908 = vmatmul.mubr.bf16.gmra.mrb[116].mxu0 %v7370_v13 }
 0x37b   : > { %5924 = vmatpush3.bf16.msra.mxu0 %v6257_v36  ;;  %5911 = vmatprep.mubr.bf16.mxu0 %v7392_v44 }
 0x37c   : > { %5925 = vmatprep.subr.bf16.mxu0 %v6258_v9 }
 0x37f   : > { %5926 = vmatpush3.bf16.msra.mxu0 %v6258_v9 }
 0x380   : > { %5927 = vmatprep.subr.bf16.mxu0 %v6259_v35 }
 0x382   : > { %5912 = vmatmul.mubr.bf16.gmra.mrb[120].mxu0 %v7390_v54 }
 0x383   : > { %5928 = vmatpush3.bf16.msra.mxu0 %v6259_v35  ;;  %5931 = vmatprep.mubr.bf16.mxu0 %v7333_v18  ;;  %v5166_v18 = vld [vmem:[%s8213_s8] ss:$0 sm:$0xff] }
 0x384   : > { %5929 = vmatprep.subr.bf16.mxu0 %v6260_v15 }
 0x387   : > { %5930 = vmatpush3.bf16.msra.mxu0 %v6260_v15 }
 0x38a   : > { %5932 = vmatmul.mubr.bf16.vlgmr.msra.gmra.mrb[124].mxu0 %v7330_v50 }
 0x38b   : > { %5935 = vmatprep.mubr.bf16.mxu0 %v7353_v41 }
 0x392   : > { %5936 = vmatmul.mubr.bf16.gmra.mrb[128].mxu0 %v7350_v21 }
 0x393   : > { %5939 = vmatprep.mubr.bf16.mxu0 %v7373_v10 }
 0x39a   : > { %5940 = vmatmul.mubr.bf16.gmra.mrb[132].mxu0 %v7370_v13 }
 0x39b   : > { %5943 = vmatprep.mubr.bf16.mxu0 %v7392_v44 }
 0x3a2   : > { %5944 = vmatmul.mubr.bf16.gmra.mrb[136].mxu0 %v7390_v54 }
 0x3dd   : > { %v5805_v50 = vpop.f32.mrb[60].mxu0 }
 0x3de   : > { %v3321_v21 = vadd.f32 %v5805_v50, %v5166_v18  ;;  %v3312_v41 = vpop.f32.mrb[61].mxu0  ;;  %v3599_v50 = vpop.permute.xlu1 %3598 }
 0x3df   : > { %v3313_v51 = vadd.f32 %v5166_v18, %v3312_v41  ;;  %v5806_v45 = vpop.f32.mrb[62].mxu0 }
 0x3e0   : > { %3377 = vst [vmem:[%s7510_s15 + $0x50] sm:$0xff] %v3321_v21  ;;  %v3324_v29 = vadd.f32 %v5806_v45, %v5166_v18  ;;  %v3315_v37 = vpop.f32.mrb[63].mxu0  ;;  %v7570_v21 = vstv %s3167_s19  ;;  %v3614_v45 = vpop.permute.xlu0 %3613 }
 0x3e1   : > { %3375 = vst [vmem:[%s7510_s15] sm:$0xff] %v3313_v51  ;;  %v3316_v58 = vadd.f32 %v5166_v18, %v3315_v37  ;;  %v7573_v37 = vstv %s3171_s22 }
 0x3e2   : > { %3378 = vst [vmem:[%s7510_s15 + $0x78] sm:$0xff] %v3324_v29 }
 0x3e3   : > { %3376 = vst [vmem:[%s7510_s15 + $0x28] sm:$0xff] %v3316_v58 }
 0x3e5   : > { %v5809_v38 = vpop.f32.mrb[64].mxu0 }
 0x3e6   : > { %v3337_v5 = vadd.f32 %v5809_v38, %v5166_v18  ;;  %v3328_v63 = vpop.f32.mrb[65].mxu0 }
 0x3e7   : > { %v3329_v31 = vadd.f32 %v5166_v18, %v3328_v63  ;;  %v5810_v6 = vpop.f32.mrb[66].mxu0 }
 0x3e8   : > { %3381 = vst [vmem:[%s7510_s15 + $0xf0] sm:$0xff] %v3337_v5  ;;  %v3340_v34 = vadd.f32 %v5810_v6, %v5166_v18  ;;  %v3331_v28 = vpop.f32.mrb[67].mxu0  ;;  %v7576_v5 = vstv %s3169_s28 }
 0x3e9   : > { %3379 = vst [vmem:[%s7510_s15 + $0xa0] sm:$0xff] %v3329_v31  ;;  %v3332_v3 = vadd.f32 %v5166_v18, %v3331_v28 }
 0x3ea   : > { %3382 = vst [vmem:[%s7510_s15 + $0x118] sm:$0xff] %v3340_v34 }
 0x3eb   : > { %3380 = vst [vmem:[%s7510_s15 + $0xc8] sm:$0xff] %v3332_v3 }
 0x3ed   : > { %v5813_v4 = vpop.f32.mrb[68].mxu0 }
 0x3ee   : > { %v3353_v13 = vadd.f32 %v5813_v4, %v5166_v18  ;;  %v3344_v59 = vpop.f32.mrb[69].mxu0 }
 0x3ef   : > { %v3345_v22 = vadd.f32 %v5166_v18, %v3344_v59  ;;  %v5814_v10 = vpop.f32.mrb[70].mxu0 }
 0x3f0   : > { %3385 = vst [vmem:[%s7510_s15 + $0x190] sm:$0xff] %v3353_v13  ;;  %v3356_v23 = vadd.f32 %v5814_v10, %v5166_v18  ;;  %v3347_v39 = vpop.f32.mrb[71].mxu0 }
 0x3f1   : > { %3383 = vst [vmem:[%s7510_s15 + $0x140] sm:$0xff] %v3345_v22  ;;  %v3348_v7 = vadd.f32 %v5166_v18, %v3347_v39 }
 0x3f2   : > { %3386 = vst [vmem:[%s7510_s15 + $0x1b8] sm:$0xff] %v3356_v23 }
 0x3f3   : > { %3384 = vst [vmem:[%s7510_s15 + $0x168] sm:$0xff] %v3348_v7 }
 0x3f5   : > { %v5817_v48 = vpop.f32.mrb[72].mxu0 }
 0x3f6   : > { %v3369_v30 = vadd.f32 %v5817_v48, %v5166_v18  ;;  %v3360_v33 = vpop.f32.mrb[73].mxu0 }
 0x3f7   : > { %v3361_v12 = vadd.f32 %v5166_v18, %v3360_v33  ;;  %v5818_v57 = vpop.f32.mrb[74].mxu0 }
 0x3f8   : > { %3389 = vst [vmem:[%s7510_s15 + $0x230] sm:$0xff] %v3369_v30  ;;  %v3372_v62 = vadd.f32 %v5818_v57, %v5166_v18  ;;  %v3363_v32 = vpop.f32.mrb[75].mxu0  ;;  %v3609_v30 = vpop.permute.xlu1 %3608 }
 0x3f9   : > { %3387 = vst [vmem:[%s7510_s15 + $0x1e0] sm:$0xff] %v3361_v12  ;;  %v3364_v60 = vadd.f32 %v5166_v18, %v3363_v32  ;;  %v3624_v32 = vpop.permute.xlu0 %3623 }
 0x3fa   : > { %3390 = vst [vmem:[%s7510_s15 + $0x258] sm:$0xff] %v3372_v62 }
 0x3fb   : > { %3388 = vst [vmem:[%s7510_s15 + $0x208] sm:$0xff] %v3364_v60 }
 0x3fd   : > { %v5837_v17 = vpop.f32.mrb[76].mxu0 }
 0x3fe   : > { %v3496_v2 = vpop.f32.mrb[77].mxu0  ;;  %v3505_v26 = vadd.f32 %v5837_v17, %v7542_v25 }
 0x3ff   : > { %v5838_v52 = vpop.f32.mrb[78].mxu0  ;;  %v3497_v24 = vadd.f32 %v7542_v25, %v3496_v2 }
 0x400   : > { %v3499_v20 = vpop.f32.mrb[79].mxu0  ;;  %v3567_v1 = vmul.f32 %v7557_v0, %v3505_v26  ;;  %v3508_v49 = vadd.f32 %v5838_v52, %v7542_v25 }
 0x401   : > { %v3565_v9 = vmul.f32 %v7557_v0, %v3497_v24  ;;  %v3500_v35 = vadd.f32 %v7542_v25, %v3499_v20 }
 0x402   : > { %v7578_v63 = vadd.f32 %v3594_v61, %v3567_v1  ;;  %v3568_v31 = vmul.f32 %v7557_v0, %v3508_v49 }
 0x403   : > { %v7582_v28 = vadd.f32 %v3584_v56, %v3565_v9  ;;  %v3566_v3 = vmul.f32 %v7557_v0, %v3500_v35 }
 0x404   : > { %v7589_v33 = vadd.f32 %v3599_v50, %v3568_v31 }
 0x405   : > { %v5841_v54 = vpop.f32.mrb[80].mxu0  ;;  %v7592_v60 = vadd.f32 %v3589_v19, %v3566_v3 }
 0x406   : > { %v3512_v44 = vpop.f32.mrb[81].mxu0  ;;  %v3521_v59 = vadd.f32 %v5841_v54, %v7542_v25 }
 0x407   : > { %v5842_v11 = vpop.f32.mrb[82].mxu0  ;;  %v3513_v22 = vadd.f32 %v7542_v25, %v3512_v44 }
 0x408   : > { %v3515_v14 = vpop.f32.mrb[83].mxu0  ;;  %v3524_v39 = vadd.f32 %v5842_v11, %v7542_v25  ;;  %v3571_v20 = vmul.f32 %v7557_v0, %v3521_v59 }
 0x409   : > { %v3516_v7 = vadd.f32 %v7542_v25, %v3515_v14  ;;  %v3569_v54 = vmul.f32 %v7557_v0, %v3513_v22 }
 0x40a   : > { %v3572_v14 = vmul.f32 %v7557_v0, %v3524_v39 }
 0x40b   : > { %v7612_v50 = vadd.f32 %v7552_v55, %v3569_v54 }
 0x40d   : > { %v5845_v43 = vpop.f32.mrb[84].mxu0 }
 0x40e   : > { %v3528_v47 = vpop.f32.mrb[85].mxu0  ;;  %v3537_v12 = vadd.f32 %v5845_v43, %v7542_v25  ;;  %v3570_v43 = vmul.f32 %v7557_v0, %v3516_v7 }
 0x40f   : > { %v7528_v42 = vpop.f32.mrb[86].mxu0  ;;  %v3529_v17 = vadd.f32 %v7542_v25, %v3528_v47 }
 0x410   : > { %v7530_v16 = vpop.f32.mrb[87].mxu0  ;;  %v3575_v19 = vmul.f32 %v7557_v0, %v3537_v12  ;;  %v3540_v26 = vadd.f32 %v7528_v42, %v7542_v25 }
 0x411   : > { %v3573_v49 = vmul.f32 %v7557_v0, %v3529_v17 }
 0x413   : > { %v7623_v55 = vadd.f32 %v3624_v32, %v3573_v49 }
 0x415   : > { %v7535_v8 = vpop.f32.mrb[88].mxu0 }
 0x416   : > { %v7544_v40 = vpop.f32.mrb[89].mxu0  ;;  %v7631_v22 = vadd.f32 %v7535_v8, %v7542_v25 }
 0x417   : > { %v7546_v53 = vpop.f32.mrb[90].mxu0 }
 0x418   : > { %v7549_v46 = vpop.f32.mrb[91].mxu0 }
 0x41d   : > { %v5869_v36 = vpop.f32.mrb[92].mxu0 }
 0x41e   : > { %v3791_v15 = vadd.f32 %v5869_v36, %v7563_v27  ;;  %v3782_v18 = vpop.f32.mrb[93].mxu0  ;;  %v3532_v36 = vadd.f32 %v7542_v25, %v7530_v16  ;;  %v7621_v16 = vmul.f32 %v7557_v0, %v3540_v26 }
 0x41f   : > { %v3783_v41 = vadd.f32 %v7563_v27, %v3782_v18  ;;  %v5870_v51 = vpop.f32.mrb[94].mxu0  ;;  %v7609_v18 = vadd.f32 %v3614_v45, %v3571_v20 }
 0x420   : > { %v3847_v29 = vmin.f32 %v3791_v15, 4.1351666  ;;  %v3794_v58 = vadd.f32 %v5870_v51, %v7563_v27  ;;  %v3785_v38 = vpop.f32.mrb[95].mxu0  ;;  %v3619_v15 = vpop.permute.xlu1 %3618  ;;  %v7626_v3 = vmul.f32 %v7557_v0, %v3532_v36 }
 0x421   : > { %v3845_v6 = vmin.f32 %v3783_v41, 4.1351666  ;;  %v3786_v34 = vadd.f32 %v7563_v27, %v3785_v38  ;;  %v7614_v42 = vadd.f32 %v3619_v15, %v3572_v14 }
 0x422   : > { %v3865_v4 = vmul.f32 1.442695, %v3847_v29  ;;  %v3848_v13 = vmin.f32 %v3794_v58, 4.1351666  ;;  %v3634_v29 = vpop.permute.xlu0 %3633  ;;  %v7616_v58 = vadd.f32 %v3609_v30, %v3570_v43 }
 0x423   : > { %v3861_v10 = vmul.f32 1.442695, %v3845_v6  ;;  %v3846_v23 = vmin.f32 %v3786_v34, 4.1351666  ;;  %v7618_v31 = vadd.f32 %v3634_v29, %v3575_v19 }
 0x424   : > { %6261 = vpow2.f32 %v3865_v4  ;;  %v3867_v48 = vmul.f32 1.442695, %v3848_v13 }
 0x425   : > { %6263 = vpow2.f32 %v3861_v10  ;;  %v3863_v57 = vmul.f32 1.442695, %v3846_v23  ;;  %v5873_v62 = vpop.f32.mrb[96].mxu0 }
 0x426   : > { %6265 = vpow2.f32 %v3867_v48  ;;  %v3807_v2 = vadd.f32 %v5873_v62, %v7563_v27  ;;  %v3798_v52 = vpop.f32.mrb[97].mxu0  ;;  %v7637_v48 = vadd.f32 %v7542_v25, %v7544_v40 }
 0x427   : > { %6267 = vpow2.f32 %v3863_v57  ;;  %v3799_v44 = vadd.f32 %v7563_v27, %v3798_v52  ;;  %v5874_v11 = vpop.f32.mrb[98].mxu0 }
 0x428   : > { %v3851_v56 = vmin.f32 %v3807_v2, 4.1351666  ;;  %v3810_v61 = vadd.f32 %v5874_v11, %v7563_v27  ;;  %v3801_v47 = vpop.f32.mrb[99].mxu0 }
 0x429   : > { %v3849_v24 = vmin.f32 %v3799_v44, 4.1351666  ;;  %v3802_v1 = vadd.f32 %v7563_v27, %v3801_v47 }
 0x42a   : > { %v3873_v9 = vmul.f32 1.442695, %v3851_v56  ;;  %v3852_v35 = vmin.f32 %v3810_v61, 4.1351666 }
 0x42b   : > { %v3869_v41 = vmul.f32 1.442695, %v3849_v24  ;;  %v3850_v51 = vmin.f32 %v3802_v1, 4.1351666 }
 0x42c   : > { %6269 = vpow2.f32 %v3873_v9  ;;  %v3875_v38 = vmul.f32 1.442695, %v3852_v35 }
 0x42d   : > { %6271 = vpow2.f32 %v3869_v41  ;;  %v3871_v45 = vmul.f32 1.442695, %v3850_v51  ;;  %v5877_v6 = vpop.f32.mrb[100].mxu0 }
 0x42e   : > { %v6262_v34 = vpop.eup %6261  ;;  %6273 = vpow2.f32 %v3875_v38  ;;  %v3823_v4 = vadd.f32 %v5877_v6, %v7563_v27  ;;  %v3814_v13 = vpop.f32.mrb[101].mxu0 }
 0x42f   : > { %v6264_v59 = vpop.eup %6263  ;;  %v3895_v10 = vmul.f32 %v6262_v34, %v7557_v0  ;;  %6275 = vpow2.f32 %v3871_v45  ;;  %v3815_v23 = vadd.f32 %v7563_v27, %v3814_v13  ;;  %v5878_v39 = vpop.f32.mrb[102].mxu0 }
 0x430   : > { %v6266_v7 = vpop.eup %6265  ;;  %v3893_v30 = vmul.f32 %v6264_v59, %v7557_v0  ;;  %v3855_v12 = vmin.f32 %v3823_v4, 4.1351666  ;;  %v7641_v57 = vadd.f32 %v5878_v39, %v7563_v27  ;;  %v3817_v62 = vpop.f32.mrb[103].mxu0 }
 0x431   : > { %v6268_v8 = vpop.eup %6267  ;;  %v3911_v32 = vmul.f32 0.5, %v3895_v10  ;;  %v3896_v17 = vmul.f32 %v6266_v7, %v7557_v0  ;;  %v3853_v2 = vmin.f32 %v3815_v23, 4.1351666  ;;  %v7645_v52 = vadd.f32 %v7563_v27, %v3817_v62 }
 0x432   : > { %v3909_v20 = vmul.f32 0.5, %v3893_v30  ;;  %v3894_v54 = vmul.f32 %v6268_v8, %v7557_v0  ;;  %v3881_v40 = vmul.f32 1.442695, %v3855_v12  ;;  %v3856_v44 = vmin.f32 %v7641_v57, 4.1351666 }
 0x433   : > { %v3927_v11 = vsub.f32 %v7578_v63, %v3911_v32  ;;  %v4009_v14 = vadd.f32 %v3911_v32, %v7578_v63  ;;  %v3912_v43 = vmul.f32 0.5, %v3896_v17  ;;  %v3877_v56 = vmul.f32 1.442695, %v3853_v2 }
 0x434   : > { %v3925_v61 = vsub.f32 %v7582_v28, %v3909_v20  ;;  %v4007_v47 = vadd.f32 %v3909_v20, %v7582_v28  ;;  %v3910_v19 = vmul.f32 0.5, %v3894_v54  ;;  %6277 = vpow2.f32 %v3881_v40 }
 0x435   : > { %v3944_v26 = vmul.f32 %v7570_v21, %v3927_v11  ;;  %v4025_v24 = vmul.f32 %v4009_v14, %v7570_v21  ;;  %v3928_v1 = vsub.f32 %v7589_v33, %v3912_v43  ;;  %v4010_v49 = vadd.f32 %v3912_v43, %v7589_v33  ;;  %v5881_v36 = vpop.f32.mrb[104].mxu0 }
 0x436   : > { %v6270_v9 = vpop.eup %6269  ;;  %v3942_v63 = vmul.f32 %v7570_v21, %v3925_v61  ;;  %v4023_v35 = vmul.f32 %v4007_v47, %v7570_v21  ;;  %v3926_v15 = vsub.f32 %v7592_v60, %v3910_v19  ;;  %v4008_v28 = vadd.f32 %v3910_v19, %v7592_v60  ;;  %v7661_v41 = vpop.f32.mrb[105].mxu0 }
 0x437   : > { %v6272_v51 = vpop.eup %6271  ;;  %v3960_v29 = vmax.f32 %v3944_v26, 0.0  ;;  %v4041_v38 = vmax.f32 %v4025_v24, 0.0  ;;  %v3945_v45 = vmul.f32 %v7570_v21, %v3928_v1  ;;  %v4026_v6 = vmul.f32 %v4010_v49, %v7570_v21  ;;  %v7665_v33 = vpop.f32.mrb[106].mxu0 }
 0x438   : > { %v6274_v34 = vpop.eup %6273  ;;  %v3958_v4 = vmax.f32 %v3942_v63, 0.0  ;;  %v4039_v13 = vmax.f32 %v4023_v35, 0.0  ;;  %v3943_v59 = vmul.f32 %v7570_v21, %v3926_v15  ;;  %v4024_v60 = vmul.f32 %v4008_v28, %v7570_v21  ;;  %v7669_v10 = vpop.f32.mrb[107].mxu0 }
 0x439   : > { %v6276_v23 = vpop.eup %6275  ;;  %v3977_v39 = vmin.f32 %v7573_v37, %v3960_v29  ;;  %v4057_v7 = vmin.f32 %v7573_v37, %v4041_v38  ;;  %v3961_v30 = vmax.f32 %v3945_v45, 0.0  ;;  %v4042_v12 = vmax.f32 %v4026_v6, 0.0  ;;  %v7691_v1 = vpop.permute.xlu1 %3628 }
 0x43a   : > { %v3975_v57 = vmin.f32 %v7573_v37, %v3958_v4  ;;  %v4055_v62 = vmin.f32 %v7573_v37, %v4039_v13  ;;  %v3959_v8 = vmax.f32 %v3943_v59, 0.0  ;;  %v4040_v32 = vmax.f32 %v4024_v60, 0.0  ;;  %v7701_v28 = vpop.permute.xlu0 %3643 }
 0x43b   : > { %3993 = vst [vmem:[%s7510_s15 + $0x58] sm:$0xff] %v3977_v39  ;;  %4073 = vst [vmem:[%s7510_s15 + $0x68] sm:$0xff] %v4057_v7  ;;  %v3978_v17 = vmin.f32 %v7573_v37, %v3961_v30  ;;  %v4058_v2 = vmin.f32 %v7573_v37, %v4042_v12  ;;  %v3899_v20 = vmul.f32 %v6270_v9, %v7557_v0  ;;  %6279 = vpow2.f32 %v3877_v56 }
 0x43c   : > { %v3897_v54 = vmul.f32 %v6272_v51, %v7557_v0  ;;  %3991 = vst [vmem:[%s7510_s15 + $0x8] sm:$0xff] %v3975_v57  ;;  %4071 = vst [vmem:[%s7510_s15 + $0x18] sm:$0xff] %v4055_v62  ;;  %v3976_v40 = vmin.f32 %v7573_v37, %v3959_v8  ;;  %v4056_v11 = vmin.f32 %v7573_v37, %v4040_v32  ;;  %v3883_v19 = vmul.f32 1.442695, %v3856_v44 }
 0x43d   : > { %v3900_v14 = vmul.f32 %v6274_v34, %v7557_v0  ;;  %v3898_v43 = vmul.f32 %v6276_v23, %v7557_v0  ;;  %3994 = vst [vmem:[%s7510_s15 + $0x80] sm:$0xff] %v3978_v17  ;;  %4074 = vst [vmem:[%s7510_s15 + $0x90] sm:$0xff] %v4058_v2  ;;  %v3915_v61 = vmul.f32 0.5, %v3899_v20  ;;  %v7689_v26 = vpop.f32.mrb[108].mxu0  ;;  %v3854_v63 = vmin.f32 %v7645_v52, 4.1351666  ;;  %v7723_v12 = vpop.permute.xlu1 %3638 }
 0x43e   : > { %v3913_v47 = vmul.f32 0.5, %v3897_v54  ;;  %v6278_v24 = vpop.eup %6277  ;;  %3992 = vst [vmem:[%s7510_s15 + $0x30] sm:$0xff] %v3976_v40  ;;  %4072 = vst [vmem:[%s7510_s15 + $0x40] sm:$0xff] %v4056_v11  ;;  %v7697_v35 = vadd.f32 %v5881_v36, %v7563_v27  ;;  %v7699_v15 = vpop.f32.mrb[109].mxu0  ;;  %6281 = vpow2.f32 %v3883_v19  ;;  %v3834_v19 = vadd.f32 %v7563_v27, %v7669_v10 }
 0x43f   : > { %v3916_v49 = vmul.f32 0.5, %v3900_v14  ;;  %v3914_v9 = vmul.f32 0.5, %v3898_v43  ;;  %v3931_v44 = vsub.f32 %v7609_v18, %v3915_v61  ;;  %v4013_v56 = vadd.f32 %v3915_v61, %v7609_v18  ;;  %v7707_v38 = vpop.f32.mrb[110].mxu0  ;;  %v7725_v17 = vpop.permute.xlu0 %3653 }
 0x440   : > { %v3929_v51 = vsub.f32 %v7612_v50, %v3913_v47  ;;  %v4011_v29 = vadd.f32 %v3913_v47, %v7612_v50  ;;  %v7713_v34 = vpop.f32.mrb[111].mxu0 }
 0x441   : > { %v3932_v45 = vsub.f32 %v7614_v42, %v3916_v49  ;;  %v4014_v52 = vadd.f32 %v3916_v49, %v7614_v42  ;;  %v3930_v36 = vsub.f32 %v7616_v58, %v3914_v9  ;;  %v4012_v6 = vadd.f32 %v3914_v9, %v7616_v58 }
 0x442   : > { %v3948_v4 = vmul.f32 %v7570_v21, %v3931_v44  ;;  %v4029_v18 = vmul.f32 %v4013_v56, %v7570_v21  ;;  %v3946_v13 = vmul.f32 %v7570_v21, %v3929_v51  ;;  %v4027_v50 = vmul.f32 %v4011_v29, %v7570_v21 }
 0x443   : > { %v3949_v59 = vmul.f32 %v7570_v21, %v3932_v45  ;;  %v4030_v60 = vmul.f32 %v4014_v52, %v7570_v21  ;;  %v3947_v42 = vmul.f32 %v7570_v21, %v3930_v36  ;;  %v4028_v23 = vmul.f32 %v4012_v6, %v7570_v21 }
 0x444   : > { %v3964_v39 = vmax.f32 %v3948_v4, 0.0  ;;  %v4045_v58 = vmax.f32 %v4029_v18, 0.0  ;;  %v3962_v7 = vmax.f32 %v3946_v13, 0.0  ;;  %v4043_v30 = vmax.f32 %v4027_v50, 0.0  ;;  %v3649_v4 = vpop.permute.xlu1 %3648 }
 0x445   : > { %v3965_v57 = vmax.f32 %v3949_v59, 0.0  ;;  %v4046_v62 = vmax.f32 %v4030_v60, 0.0  ;;  %v3963_v8 = vmax.f32 %v3947_v42, 0.0  ;;  %v4044_v32 = vmax.f32 %v4028_v23, 0.0  ;;  %v7731_v11 = vpop.f32.mrb[112].mxu0  ;;  %v6280_v9 = vpop.eup %6279 }
 0x446   : > { %v3981_v2 = vmin.f32 %v7573_v37, %v3964_v39  ;;  %v4061_v20 = vmin.f32 %v7573_v37, %v4045_v58  ;;  %v3979_v54 = vmin.f32 %v7573_v37, %v3962_v7  ;;  %v4059_v40 = vmin.f32 %v7573_v37, %v4043_v30  ;;  %v7737_v49 = vpop.f32.mrb[113].mxu0 }
 0x447   : > { %v3982_v14 = vmin.f32 %v7573_v37, %v3965_v57  ;;  %v4062_v43 = vmin.f32 %v7573_v37, %v4046_v62  ;;  %v3980_v61 = vmin.f32 %v7573_v37, %v3963_v8  ;;  %v4060_v47 = vmin.f32 %v7573_v37, %v4044_v32  ;;  %v7745_v29 = vpop.f32.mrb[114].mxu0 }
 0x448   : > { %3997 = vst [vmem:[%s7510_s15 + $0xf8] sm:$0xff] %v3981_v2  ;;  %4077 = vst [vmem:[%s7510_s15 + $0x108] sm:$0xff] %v4061_v20  ;;  %v3903_v44 = vmul.f32 %v6278_v24, %v7557_v0  ;;  %v3879_v56 = vmul.f32 1.442695, %v3854_v63  ;;  %v3859_v51 = vmin.f32 %v7697_v35, 4.1351666  ;;  %v3901_v45 = vmul.f32 %v6280_v9, %v7557_v0  ;;  %v3659_v20 = vpop.permute.xlu1 %3658 }
 0x449   : > { %3995 = vst [vmem:[%s7510_s15 + $0xa8] sm:$0xff] %v3979_v54  ;;  %4075 = vst [vmem:[%s7510_s15 + $0xb8] sm:$0xff] %v4059_v40  ;;  %v3831_v52 = vadd.f32 %v7563_v27, %v7661_v41  ;;  %v3842_v36 = vadd.f32 %v7665_v33, %v7563_v27  ;;  %v7759_v24 = vpop.f32.mrb[115].mxu0  ;;  %v3556_v63 = vadd.f32 %v7546_v53, %v7542_v25  ;;  %v7767_v33 = vpop.permute.xlu0 %4273  ;;  %v3858_v53 = vmin.f32 %v3834_v19, 4.1351666 }
 0x44a   : > { %3998 = vst [vmem:[%s7510_s15 + $0x120] sm:$0xff] %v3982_v14  ;;  %4078 = vst [vmem:[%s7510_s15 + $0x130] sm:$0xff] %v4062_v43  ;;  %v3919_v35 = vmul.f32 0.5, %v3903_v44  ;;  %6283 = vpow2.f32 %v3879_v56  ;;  %v3889_v6 = vmul.f32 1.442695, %v3859_v51  ;;  %v3548_v18 = vadd.f32 %v7542_v25, %v7549_v46 }
 0x44b   : > { %3996 = vst [vmem:[%s7510_s15 + $0xd0] sm:$0xff] %v3980_v61  ;;  %4076 = vst [vmem:[%s7510_s15 + $0xe0] sm:$0xff] %v4060_v47  ;;  %v3917_v13 = vmul.f32 0.5, %v3901_v45  ;;  %v3857_v41 = vmin.f32 %v3831_v52, 4.1351666  ;;  %v3579_v25 = vmul.f32 %v7557_v0, %v7631_v22  ;;  %v3580_v62 = vmul.f32 %v7557_v0, %v3556_v63  ;;  %v6282_v61 = vpop.eup %6281 }
 0x44c   : > { %v3860_v50 = vmin.f32 %v3842_v36, 4.1351666  ;;  %v3935_v27 = vsub.f32 %v7618_v31, %v3919_v35  ;;  %v4017_v10 = vadd.f32 %v3919_v35, %v7618_v31  ;;  %6285 = vpow2.f32 %v3889_v6  ;;  %v7780_v31 = vld [vmem:[%s8213_s8 + $0x2] ss:$0 sm:$0xff] }
 0x44d   : > { %v3933_v59 = vsub.f32 %v7623_v55, %v3917_v13  ;;  %v4015_v60 = vadd.f32 %v3917_v13, %v7623_v55  ;;  %v3885_v42 = vmul.f32 1.442695, %v3857_v41  ;;  %v3887_v58 = vmul.f32 1.442695, %v3858_v53  ;;  %v7782_v7 = vpop.f32.mrb[116].mxu0  ;;  %v7798_v47 = vpop.permute.xlu0 %4283 }
 0x44e   : > { %v3891_v23 = vmul.f32 1.442695, %v3860_v50  ;;  %v3952_v46 = vmul.f32 %v7570_v21, %v3935_v27  ;;  %v4033_v39 = vmul.f32 %v4017_v10, %v7570_v21  ;;  %v3577_v55 = vmul.f32 %v7557_v0, %v7637_v48  ;;  %v7788_v22 = vpop.f32.mrb[117].mxu0 }
 0x44f   : > { %v3950_v30 = vmul.f32 %v7570_v21, %v3933_v59  ;;  %v4031_v57 = vmul.f32 %v4015_v60, %v7570_v21  ;;  %6287 = vpow2.f32 %v3885_v42  ;;  %v7791_v2 = vpop.f32.mrb[118].mxu0  ;;  %v3578_v54 = vmul.f32 %v7557_v0, %v3548_v18 }
 0x450   : > { %v3968_v8 = vmax.f32 %v3952_v46, 0.0  ;;  %v4049_v32 = vmax.f32 %v4033_v39, 0.0  ;;  %6289 = vpow2.f32 %v3891_v23  ;;  %v4201_v14 = vadd.f32 %v7689_v26, %v7780_v31  ;;  %v7796_v43 = vpop.f32.mrb[119].mxu0 }
 0x451   : > { %v3966_v40 = vmax.f32 %v3950_v30, 0.0  ;;  %v4047_v48 = vmax.f32 %v4031_v57, 0.0  ;;  %6291 = vpow2.f32 %v3887_v58  ;;  %v4193_v56 = vadd.f32 %v7780_v31, %v7699_v15  ;;  %v7844_v59 = vpop.permute.xlu0 %4293 }
 0x452   : > { %v3985_v9 = vmin.f32 %v7573_v37, %v3968_v8  ;;  %v4065_v44 = vmin.f32 %v7573_v37, %v4049_v32  ;;  %v3904_v45 = vmul.f32 %v6282_v61, %v7557_v0  ;;  %v7808_v52 = vstv %s7765_s30 }
 0x453   : > { %v3983_v51 = vmin.f32 %v7573_v37, %v3966_v40  ;;  %v4063_v26 = vmin.f32 %v7573_v37, %v4047_v48  ;;  %v3672_v19 = vadd.f32 %v7723_v12, %v7621_v16  ;;  %v3670_v63 = vadd.f32 %v7691_v1, %v7626_v3 }
 0x454   : > { %v6284_v36 = vpop.eup %6283  ;;  %4001 = vst [vmem:[%s7510_s15 + $0x198] sm:$0xff] %v3985_v9  ;;  %4081 = vst [vmem:[%s7510_s15 + $0x1a8] sm:$0xff] %v4065_v44  ;;  %v4204_v15 = vadd.f32 %v7707_v38, %v7780_v31  ;;  %v4196_v35 = vadd.f32 %v7780_v31, %v7713_v34  ;;  %v3675_v6 = vadd.f32 %v7725_v17, %v3579_v25  ;;  %v3920_v13 = vmul.f32 0.5, %v3904_v45 }
 0x455   : > { %v7822_v18 = vadd.f32 %v7701_v28, %v3577_v55  ;;  %3999 = vst [vmem:[%s7510_s15 + $0x148] sm:$0xff] %v3983_v51  ;;  %4079 = vst [vmem:[%s7510_s15 + $0x158] sm:$0xff] %v4063_v26  ;;  %v3902_v16 = vmul.f32 %v6284_v36, %v7557_v0  ;;  %v7827_v3 = vadd.f32 %v3659_v20, %v3580_v62  ;;  %v7837_v17 = vpop.f32.mrb[120].mxu0  ;;  %v7839_v28 = vpop.permute.xlu1 %4278 }
 0x456   : > { %v6286_v12 = vpop.eup %6285  ;;  %v7829_v1 = vadd.f32 %v3649_v4, %v3578_v54  ;;  %v7832_v38 = vmul.f32 %v7557_v0, %v4201_v14  ;;  %v7835_v34 = vmul.f32 %v7557_v0, %v4193_v56  ;;  %v3936_v41 = vsub.f32 %v3672_v19, %v3920_v13  ;;  %v7842_v53 = vpop.f32.mrb[121].mxu0 }
 0x457   : > { %v4018_v50 = vadd.f32 %v3920_v13, %v3672_v19  ;;  %v3918_v27 = vmul.f32 0.5, %v3902_v16  ;;  %v3907_v10 = vmul.f32 %v6286_v12, %v7557_v0  ;;  %v7847_v4 = vmul.f32 %v7557_v0, %v4204_v15  ;;  %v7860_v25 = vpop.f32.mrb[122].mxu0  ;;  %v7882_v36 = vpop.permute.xlu0 %4303 }
 0x458   : > { %v7850_v60 = vmul.f32 %v7557_v0, %v4196_v35  ;;  %v7854_v42 = vadd.f32 %v7731_v11, %v7780_v31  ;;  %v7858_v23 = vadd.f32 %v7780_v31, %v7737_v49  ;;  %v3953_v39 = vmul.f32 %v7570_v21, %v3936_v41  ;;  %v7864_v57 = vpop.f32.mrb[123].mxu0 }
 0x459   : > { %v6288_v46 = vpop.eup %6287  ;;  %v4034_v58 = vmul.f32 %v4018_v50, %v7570_v21  ;;  %v3934_v55 = vsub.f32 %v3670_v63, %v3918_v27  ;;  %v4016_v30 = vadd.f32 %v3918_v27, %v3670_v63  ;;  %v3923_v8 = vmul.f32 0.5, %v3907_v10 }
 0x45a   : > { %v6290_v62 = vpop.eup %6289  ;;  %v3905_v11 = vmul.f32 %v6288_v46, %v7557_v0  ;;  %v7869_v32 = vadd.f32 %v7745_v29, %v7780_v31  ;;  %v7873_v49 = vadd.f32 %v7780_v31, %v7759_v24  ;;  %v3969_v20 = vmax.f32 %v3953_v39, 0.0  ;;  %v7878_v29 = vpop.permute.xlu1 %4288 }
 0x45b   : > { %v4050_v54 = vmax.f32 %v4034_v58, 0.0  ;;  %v3951_v40 = vmul.f32 %v7570_v21, %v3934_v55  ;;  %v4032_v48 = vmul.f32 %v4016_v30, %v7570_v21  ;;  %v6292_v14 = vpop.eup %6291  ;;  %v3939_v61 = vsub.f32 %v3675_v6, %v3923_v8 }
 0x45c   : > { %v4021_v9 = vadd.f32 %v3923_v8, %v3675_v6  ;;  %v3921_v44 = vmul.f32 0.5, %v3905_v11  ;;  %v3908_v56 = vmul.f32 %v6290_v62, %v7557_v0  ;;  %v3986_v51 = vmin.f32 %v7573_v37, %v3969_v20 }
 0x45d   : > { %v4066_v24 = vmin.f32 %v7573_v37, %v4050_v54  ;;  %v3967_v26 = vmax.f32 %v3951_v40, 0.0  ;;  %v4048_v45 = vmax.f32 %v4032_v48, 0.0  ;;  %v3956_v19 = vmul.f32 %v7570_v21, %v3939_v61  ;;  %v7888_v6 = vpop.f32.mrb[124].mxu0 }
 0x45e   : > { %v4037_v63 = vmul.f32 %v4021_v9, %v7570_v21  ;;  %v3937_v15 = vsub.f32 %v7822_v18, %v3921_v44  ;;  %v4019_v35 = vadd.f32 %v3921_v44, %v7822_v18  ;;  %4002 = vst [vmem:[%s7510_s15 + $0x1c0] sm:$0xff] %v3986_v51  ;;  %v3924_v12 = vmul.f32 0.5, %v3908_v56  ;;  %v7895_v50 = vpop.f32.mrb[125].mxu0  ;;  %v4299_v48 = vpop.permute.xlu1 %4298 }
 0x45f   : > { %4082 = vst [vmem:[%s7510_s15 + $0x1d0] sm:$0xff] %v4066_v24  ;;  %v3984_v13 = vmin.f32 %v7573_v37, %v3967_v26  ;;  %v4064_v16 = vmin.f32 %v7573_v37, %v4048_v45  ;;  %v3906_v41 = vmul.f32 %v6292_v14, %v7557_v0  ;;  %v3972_v27 = vmax.f32 %v3956_v19, 0.0  ;;  %v7899_v18 = vpop.f32.mrb[126].mxu0  ;;  %v4314_v44 = vpop.permute.xlu0 %4313 }
 0x460   : > { %v4053_v10 = vmax.f32 %v4037_v63, 0.0  ;;  %v3954_v46 = vmul.f32 %v7570_v21, %v3937_v15  ;;  %v4035_v39 = vmul.f32 %v4019_v35, %v7570_v21  ;;  %v3940_v58 = vsub.f32 %v7827_v3, %v3924_v12  ;;  %v4475_v8 = vpop.f32.mrb[127].mxu0 }
 0x461   : > { %4000 = vst [vmem:[%s7510_s15 + $0x170] sm:$0xff] %v3984_v13  ;;  %4080 = vst [vmem:[%s7510_s15 + $0x180] sm:$0xff] %v4064_v16  ;;  %v4022_v55 = vadd.f32 %v3924_v12, %v7827_v3  ;;  %v3922_v30 = vmul.f32 0.5, %v3906_v41  ;;  %v4233_v62 = vadd.f32 %v7782_v7, %v7780_v31  ;;  %v3989_v11 = vmin.f32 %v7573_v37, %v3972_v27 }
 0x462   : > { %v4069_v20 = vmin.f32 %v7573_v37, %v4053_v10  ;;  %v3970_v54 = vmax.f32 %v3954_v46, 0.0  ;;  %v4051_v40 = vmax.f32 %v4035_v39, 0.0  ;;  %v3957_v14 = vmul.f32 %v7570_v21, %v3940_v58  ;;  %v7953_v10 = vld [vmem:[%s8213_s8 + $0x4] ss:$0 sm:$0xff] }
 0x463   : > { %v4038_v61 = vmul.f32 %v4022_v55, %v7570_v21  ;;  %v3938_v3 = vsub.f32 %v7829_v1, %v3922_v30  ;;  %v4020_v9 = vadd.f32 %v3922_v30, %v7829_v1  ;;  %4005 = vst [vmem:[%s7510_s15 + $0x238] sm:$0xff] %v3989_v11  ;;  %v4261_v51 = vmul.f32 %v7557_v0, %v7854_v42 }
 0x464   : > { %4085 = vst [vmem:[%s7510_s15 + $0x248] sm:$0xff] %v4069_v20  ;;  %v3987_v7 = vmin.f32 %v7573_v37, %v3970_v54  ;;  %v4067_v56 = vmin.f32 %v7573_v37, %v4051_v40  ;;  %v4225_v24 = vadd.f32 %v7780_v31, %v7788_v22  ;;  %v3973_v26 = vmax.f32 %v3957_v14, 0.0 }
 0x465   : > { %v4054_v45 = vmax.f32 %v4038_v61, 0.0  ;;  %v3955_v19 = vmul.f32 %v7570_v21, %v3938_v3  ;;  %v4036_v63 = vmul.f32 %v4020_v9, %v7570_v21  ;;  %v4259_v1 = vmul.f32 %v7557_v0, %v7858_v23  ;;  %v5937_v35 = vpop.f32.mrb[128].mxu0 }
 0x466   : > { %4003 = vst [vmem:[%s7510_s15 + $0x1e8] sm:$0xff] %v3987_v7  ;;  %4083 = vst [vmem:[%s7510_s15 + $0x1f8] sm:$0xff] %v4067_v56  ;;  %v4262_v15 = vmul.f32 %v7557_v0, %v7869_v32  ;;  %v4260_v42 = vmul.f32 %v7557_v0, %v7873_v49  ;;  %v4265_v22 = vmul.f32 %v7557_v0, %v4233_v62  ;;  %v4488_v41 = vpop.f32.mrb[129].mxu0 }
 0x467   : > { %v3990_v13 = vmin.f32 %v7573_v37, %v3973_v26  ;;  %v4070_v21 = vmin.f32 %v7573_v37, %v4054_v45  ;;  %v3971_v16 = vmax.f32 %v3955_v19, 0.0  ;;  %v4052_v12 = vmax.f32 %v4036_v63, 0.0 }
 0x468   : > { %v7936_v23 = vadd.f32 %v7798_v47, %v7832_v38  ;;  %v7940_v32 = vadd.f32 %v7767_v33, %v7835_v34  ;;  %v7944_v49 = vadd.f32 %v7878_v29, %v7847_v4  ;;  %v7948_v27 = vadd.f32 %v7839_v28, %v7850_v60  ;;  %v5938_v47 = vpop.f32.mrb[130].mxu0  ;;  %v4309_v38 = vpop.permute.xlu1 %4308 }
 0x469   : > { %4006 = vst [vmem:[%s7510_s15 + $0x260] sm:$0xff] %v3990_v13  ;;  %4086 = vst [vmem:[%s7510_s15 + $0x270] sm:$0xff] %v4070_v21  ;;  %v3988_v33 = vmin.f32 %v7573_v37, %v3971_v16  ;;  %v4068_v34 = vmin.f32 %v7573_v37, %v4052_v12  ;;  %v4263_v4 = vmul.f32 %v7557_v0, %v4225_v24  ;;  %v4491_v60 = vpop.f32.mrb[131].mxu0  ;;  %v4324_v29 = vpop.permute.xlu0 %4323 }
 0x46a   : > { %v4236_v28 = vadd.f32 %v7791_v2, %v7780_v31  ;;  %v7963_v46 = vadd.f32 %v7882_v36, %v4261_v51  ;;  %v7966_v39 = vadd.f32 %v7844_v59, %v4259_v1  ;;  %v7968_v58 = vadd.f32 %v4309_v38, %v4262_v15 }
 0x46b   : > { %v4228_v55 = vadd.f32 %v7780_v31, %v7796_v43  ;;  %4004 = vst [vmem:[%s7510_s15 + $0x210] sm:$0xff] %v3988_v33  ;;  %4084 = vst [vmem:[%s7510_s15 + $0x220] sm:$0xff] %v4068_v34  ;;  %v7974_v37 = vadd.f32 %v4299_v48, %v4260_v42  ;;  %v7976_v30 = vadd.f32 %v4324_v29, %v4265_v22 }
 0x46c   : > { %v4481_v2 = vadd.f32 %v7888_v6, %v7953_v10  ;;  %v4473_v36 = vadd.f32 %v7953_v10, %v7895_v50  ;;  %v4249_v59 = vadd.f32 %v7837_v17, %v7780_v31  ;;  %v4484_v62 = vadd.f32 %v7899_v18, %v7953_v10  ;;  %v4319_v7 = vpop.permute.xlu1 %4318 }
 0x46d   : > { %v4476_v43 = vadd.f32 %v7953_v10, %v4475_v8  ;;  %v4497_v11 = vadd.f32 %v5937_v35, %v7953_v10  ;;  %v7988_v20 = vadd.f32 %v4314_v44, %v4263_v4  ;;  %v4266_v54 = vmul.f32 %v7557_v0, %v4236_v28  ;;  %v5941_v8 = vpop.f32.mrb[132].mxu0  ;;  %v4334_v16 = vpop.permute.xlu0 %4333 }
 0x46e   : > { %v4537_v40 = vmin.f32 %v4481_v2, 4.1351666  ;;  %v4535_v48 = vmin.f32 %v4473_v36, 4.1351666  ;;  %v4264_v6 = vmul.f32 %v7557_v0, %v4228_v55  ;;  %v4538_v14 = vmin.f32 %v4484_v62, 4.1351666 }
 0x46f   : > { %v4536_v50 = vmin.f32 %v4476_v43, 4.1351666  ;;  %v4541_v61 = vmin.f32 %v4497_v11, 4.1351666  ;;  %v4489_v9 = vadd.f32 %v7953_v10, %v4488_v41  ;;  %v4500_v18 = vadd.f32 %v5938_v47, %v7953_v10  ;;  %v4504_v63 = vpop.f32.mrb[133].mxu0 }
 0x470   : > { %v4555_v3 = vmul.f32 1.442695, %v4537_v40  ;;  %v4551_v17 = vmul.f32 1.442695, %v4535_v48  ;;  %v4557_v56 = vmul.f32 1.442695, %v4538_v14  ;;  %v4492_v24 = vadd.f32 %v7953_v10, %v4491_v60  ;;  %v4329_v28 = vpop.permute.xlu1 %4328 }
 0x471   : > { %v4553_v44 = vmul.f32 1.442695, %v4536_v50  ;;  %v4563_v51 = vmul.f32 1.442695, %v4541_v61  ;;  %v4539_v26 = vmin.f32 %v4489_v9, 4.1351666  ;;  %v4513_v19 = vadd.f32 %v5941_v8, %v7953_v10 }
 0x472   : > { %6293 = vpow2.f32 %v4555_v3  ;;  %v4542_v45 = vmin.f32 %v4500_v18, 4.1351666  ;;  %v4269_v1 = vmul.f32 %v7557_v0, %v4249_v59  ;;  %v4540_v15 = vmin.f32 %v4492_v24, 4.1351666  ;;  %v5942_v22 = vpop.f32.mrb[134].mxu0 }
 0x473   : > { %6295 = vpow2.f32 %v4551_v17  ;;  %v4505_v42 = vadd.f32 %v7953_v10, %v4504_v63  ;;  %v4559_v35 = vmul.f32 1.442695, %v4539_v26  ;;  %v4545_v21 = vmin.f32 %v4513_v19, 4.1351666  ;;  %v4507_v38 = vpop.f32.mrb[135].mxu0 }
 0x474   : > { %6297 = vpow2.f32 %v4557_v56  ;;  %v4565_v13 = vmul.f32 1.442695, %v4542_v45  ;;  %v4561_v12 = vmul.f32 1.442695, %v4540_v15  ;;  %v4516_v47 = vadd.f32 %v5942_v22, %v7953_v10 }
 0x475   : > { %6299 = vpow2.f32 %v4553_v44  ;;  %v4543_v41 = vmin.f32 %v4505_v42, 4.1351666  ;;  %v4241_v33 = vadd.f32 %v7780_v31, %v7842_v53  ;;  %v4571_v34 = vmul.f32 1.442695, %v4545_v21  ;;  %v5945_v2 = vpop.f32.mrb[136].mxu0 }
 0x476   : > { %6301 = vpow2.f32 %v4563_v51  ;;  %v4508_v4 = vadd.f32 %v7953_v10, %v4507_v38  ;;  %v4252_v60 = vadd.f32 %v7860_v25, %v7780_v31  ;;  %v4546_v55 = vmin.f32 %v4516_v47, 4.1351666  ;;  %v4520_v43 = vpop.f32.mrb[137].mxu0  ;;  %v8025_v42 = vld [vmem:[%s8214_s9] ss:$0 sm:$0xff] }
 0x477   : > { %6303 = vpow2.f32 %v4559_v35  ;;  %v4567_v29 = vmul.f32 1.442695, %v4543_v41  ;;  %v8004_v36 = vadd.f32 %v4329_v28, %v4266_v54  ;;  %v4529_v62 = vadd.f32 %v5945_v2, %v7953_v10  ;;  %v5946_v48 = vpop.f32.mrb[138].mxu0  ;;  %v4344_v54 = vpop.permute.xlu0 %4343 }
 0x478   : > { %6305 = vpow2.f32 %v4565_v13  ;;  %v4544_v59 = vmin.f32 %v4508_v4, 4.1351666  ;;  %v8007_v53 = vadd.f32 %v4319_v7, %v4264_v6  ;;  %v4573_v11 = vmul.f32 1.442695, %v4546_v55  ;;  %v4523_v61 = vpop.f32.mrb[139].mxu0 }
 0x479   : > { %6307 = vpow2.f32 %v4561_v12  ;;  %v4521_v40 = vadd.f32 %v7953_v10, %v4520_v43  ;;  %v4549_v14 = vmin.f32 %v4529_v62, 4.1351666  ;;  %v4532_v50 = vadd.f32 %v5946_v48, %v7953_v10 }
 0x47a   : > { %6309 = vpow2.f32 %v4571_v34  ;;  %v4569_v25 = vmul.f32 1.442695, %v4544_v59  ;;  %v4267_v3 = vmul.f32 %v7557_v0, %v4241_v33  ;;  %v4524_v9 = vadd.f32 %v7953_v10, %v4523_v61 }
 0x47b   : > { %6311 = vpow2.f32 %v4567_v29  ;;  %v4547_v17 = vmin.f32 %v4521_v40, 4.1351666  ;;  %v8013_v18 = vadd.f32 %v4344_v54, %v4269_v1  ;;  %v4579_v8 = vmul.f32 1.442695, %v4549_v14 }
 0x47c   : > { %v6294_v6 = vpop.eup %6293  ;;  %6313 = vpow2.f32 %v4573_v11  ;;  %v4550_v7 = vmin.f32 %v4532_v50, 4.1351666  ;;  %v4548_v24 = vmin.f32 %v4524_v9, 4.1351666  ;;  %v8017_v45 = vmul.f32 %v7557_v0, %v4252_v60 }
 0x47d   : > { %v6296_v56 = vpop.eup %6295  ;;  %v4585_v44 = vmul.f32 %v6294_v6, %v7557_v0  ;;  %6315 = vpow2.f32 %v4569_v25  ;;  %v4575_v51 = vmul.f32 1.442695, %v4547_v17  ;;  %v8020_v1 = vadd.f32 %v4334_v16, %v4267_v3 }
 0x47e   : > { %v6298_v26 = vpop.eup %6297  ;;  %v4583_v19 = vmul.f32 %v6296_v56, %v7557_v0  ;;  %6317 = vpow2.f32 %v4579_v8  ;;  %v4581_v10 = vmul.f32 1.442695, %v4550_v7  ;;  %v8029_v0 = vmul.f32 1.442695, %v4548_v24 }
 0x47f   : > { %v6300_v63 = vpop.eup %6299  ;;  %v4601_v15 = vmul.f32 0.5, %v4585_v44  ;;  %v4586_v22 = vmul.f32 %v8025_v42, %v6298_v26  ;;  %6319 = vpow2.f32 %v4575_v51 }
 0x480   : > { %v6302_v35 = vpop.eup %6301  ;;  %v4599_v13 = vmul.f32 0.5, %v4583_v19  ;;  %v4584_v21 = vmul.f32 %v8025_v42, %v6300_v63  ;;  %6321 = vpow2.f32 %v4581_v10 }
 0x481   : > { %v6304_v12 = vpop.eup %6303  ;;  %v4617_v16 = vsub.f32 %v7936_v23, %v4601_v15  ;;  %v4699_v41 = vadd.f32 %v4601_v15, %v7936_v23  ;;  %v4602_v47 = vmul.f32 0.5, %v4586_v22  ;;  %v4589_v38 = vmul.f32 %v8025_v42, %v6302_v35 }
 0x482   : > { %v6306_v33 = vpop.eup %6305  ;;  %v4615_v34 = vsub.f32 %v7940_v32, %v4599_v13  ;;  %v4697_v4 = vadd.f32 %v4599_v13, %v7940_v32  ;;  %v4600_v28 = vmul.f32 0.5, %v4584_v21  ;;  %v4587_v60 = vmul.f32 %v8025_v42, %v6304_v12 }
 0x483   : > { %v6308_v29 = vpop.eup %6307  ;;  %v4634_v55 = vmul.f32 %v7576_v5, %v4617_v16  ;;  %v4715_v2 = vmul.f32 %v4699_v41, %v7576_v5  ;;  %v4618_v59 = vsub.f32 %v7944_v49, %v4602_v47  ;;  %v4700_v23 = vadd.f32 %v4602_v47, %v7944_v49 }
 0x484   : > { %v6310_v62 = vpop.eup %6309  ;;  %v4632_v43 = vmul.f32 %v7576_v5, %v4615_v34  ;;  %v4713_v11 = vmul.f32 %v4697_v4, %v7576_v5  ;;  %v4616_v40 = vsub.f32 %v7948_v27, %v4600_v28  ;;  %v4698_v32 = vadd.f32 %v4600_v28, %v7948_v27 }
 0x485   : > { %v6312_v48 = vpop.eup %6311  ;;  %v4650_v25 = vmax.f32 %v4634_v55, 0.0  ;;  %v4731_v14 = vmax.f32 %v4715_v2, 0.0  ;;  %v4635_v50 = vmul.f32 %v7576_v5, %v4618_v59  ;;  %v4716_v61 = vmul.f32 %v4700_v23, %v7576_v5 }
 0x486   : > { %v8047_v54 = vpop.eup %6313  ;;  %v4648_v49 = vmax.f32 %v4632_v43, 0.0  ;;  %v4729_v3 = vmax.f32 %v4713_v11, 0.0  ;;  %v4633_v17 = vmul.f32 %v7576_v5, %v4616_v40  ;;  %v4714_v9 = vmul.f32 %v4698_v32, %v7576_v5 }
 0x487   : > { %v8051_v6 = vpop.eup %6315  ;;  %v4667_v27 = vmin.f32 %v7808_v52, %v4650_v25  ;;  %v4747_v8 = vmin.f32 %v7808_v52, %v4731_v14  ;;  %v4651_v7 = vmax.f32 %v4635_v50, 0.0  ;;  %v4732_v56 = vmax.f32 %v4716_v61, 0.0 }
 0x488   : > { %v8055_v44 = vpop.eup %6317  ;;  %v4665_v51 = vmin.f32 %v7808_v52, %v4648_v49  ;;  %v4745_v24 = vmin.f32 %v7808_v52, %v4729_v3  ;;  %v4649_v26 = vmax.f32 %v4633_v17, 0.0  ;;  %v4730_v19 = vmax.f32 %v4714_v9, 0.0 }
 0x489   : > { %v8059_v10 = vpop.eup %6319  ;;  %4683 = vst [vmem:[%s7510_s15 + $0x60] sm:$0xff] %v4667_v27  ;;  %4763 = vst [vmem:[%s7510_s15 + $0x70] sm:$0xff] %v4747_v8  ;;  %v4668_v63 = vmin.f32 %v7808_v52, %v4651_v7  ;;  %v4748_v15 = vmin.f32 %v7808_v52, %v4732_v56  ;;  %v4605_v22 = vmul.f32 0.5, %v4589_v38  ;;  %v4603_v35 = vmul.f32 0.5, %v4587_v60 }
 0x48a   : > { %v8065_v13 = vpop.eup %6321  ;;  %4681 = vst [vmem:[%s7510_s15 + $0x10] sm:$0xff] %v4665_v51  ;;  %4761 = vst [vmem:[%s7510_s15 + $0x20] sm:$0xff] %v4745_v24  ;;  %v4666_v21 = vmin.f32 %v7808_v52, %v4649_v26  ;;  %v4746_v12 = vmin.f32 %v7808_v52, %v4730_v19  ;;  %v4590_v16 = vmul.f32 %v8025_v42, %v6306_v33  ;;  %6323 = vpow2.f32 %v8029_v0 }
 0x48b   : > { %v4588_v41 = vmul.f32 %v8025_v42, %v6308_v29  ;;  %4684 = vst [vmem:[%s7510_s15 + $0x88] sm:$0xff] %v4668_v63  ;;  %4764 = vst [vmem:[%s7510_s15 + $0x98] sm:$0xff] %v4748_v15  ;;  %v4621_v47 = vsub.f32 %v7963_v46, %v4605_v22  ;;  %v4703_v38 = vadd.f32 %v4605_v22, %v7963_v46 }
 0x48c   : > { %v4619_v34 = vsub.f32 %v7966_v39, %v4603_v35  ;;  %v4701_v4 = vadd.f32 %v4603_v35, %v7966_v39  ;;  %4682 = vst [vmem:[%s7510_s15 + $0x38] sm:$0xff] %v4666_v21  ;;  %4762 = vst [vmem:[%s7510_s15 + $0x48] sm:$0xff] %v4746_v12  ;;  %v4606_v28 = vmul.f32 0.5, %v4590_v16  ;;  %v4593_v55 = vmul.f32 %v8025_v42, %v6310_v62 }
 0x48d   : > { %v4604_v60 = vmul.f32 0.5, %v4588_v41  ;;  %v4591_v33 = vmul.f32 %v8025_v42, %v6312_v48  ;;  %v4638_v29 = vmul.f32 %v7576_v5, %v4621_v47  ;;  %v4719_v2 = vmul.f32 %v4703_v38, %v7576_v5 }
 0x48e   : > { %v4636_v59 = vmul.f32 %v7576_v5, %v4619_v34  ;;  %v4717_v46 = vmul.f32 %v4701_v4, %v7576_v5  ;;  %v4622_v23 = vsub.f32 %v7968_v58, %v4606_v28  ;;  %v4704_v39 = vadd.f32 %v4606_v28, %v7968_v58 }
 0x48f   : > { %v4620_v43 = vsub.f32 %v7974_v37, %v4604_v60  ;;  %v4702_v11 = vadd.f32 %v4604_v60, %v7974_v37  ;;  %v4654_v40 = vmax.f32 %v4638_v29, 0.0  ;;  %v4735_v62 = vmax.f32 %v4719_v2, 0.0 }
 0x490   : > { %v4652_v32 = vmax.f32 %v4636_v59, 0.0  ;;  %v4733_v48 = vmax.f32 %v4717_v46, 0.0  ;;  %v4639_v25 = vmul.f32 %v7576_v5, %v4622_v23  ;;  %v4720_v14 = vmul.f32 %v4704_v39, %v7576_v5 }
 0x491   : > { %v4637_v50 = vmul.f32 %v7576_v5, %v4620_v43  ;;  %v4718_v58 = vmul.f32 %v4702_v11, %v7576_v5  ;;  %v4671_v61 = vmin.f32 %v7808_v52, %v4654_v40  ;;  %v4751_v37 = vmin.f32 %v7808_v52, %v4735_v62 }
 0x492   : > { %v4669_v49 = vmin.f32 %v7808_v52, %v4652_v32  ;;  %v4749_v3 = vmin.f32 %v7808_v52, %v4733_v48  ;;  %v4655_v17 = vmax.f32 %v4639_v25, 0.0  ;;  %v4736_v9 = vmax.f32 %v4720_v14, 0.0 }
 0x493   : > { %v4653_v27 = vmax.f32 %v4637_v50, 0.0  ;;  %v4734_v8 = vmax.f32 %v4718_v58, 0.0  ;;  %4687 = vst [vmem:[%s7510_s15 + $0x100] sm:$0xff] %v4671_v61  ;;  %4767 = vst [vmem:[%s7510_s15 + $0x110] sm:$0xff] %v4751_v37  ;;  %v4609_v7 = vmul.f32 0.5, %v4593_v55  ;;  %v4607_v56 = vmul.f32 0.5, %v4591_v33 }
 0x494   : > { %4685 = vst [vmem:[%s7510_s15 + $0xb0] sm:$0xff] %v4669_v49  ;;  %4765 = vst [vmem:[%s7510_s15 + $0xc0] sm:$0xff] %v4749_v3  ;;  %v4594_v51 = vmul.f32 %v8025_v42, %v8047_v54  ;;  %v4592_v24 = vmul.f32 %v8025_v42, %v8051_v6  ;;  %v4672_v26 = vmin.f32 %v7808_v52, %v4655_v17 }
 0x495   : > { %v4752_v19 = vmin.f32 %v7808_v52, %v4736_v9  ;;  %v4670_v63 = vmin.f32 %v7808_v52, %v4653_v27  ;;  %v4750_v15 = vmin.f32 %v7808_v52, %v4734_v8  ;;  %v4625_v22 = vsub.f32 %v7976_v30, %v4609_v7 }
 0x496   : > { %v4707_v35 = vadd.f32 %v4609_v7, %v7976_v30  ;;  %v4623_v21 = vsub.f32 %v7988_v20, %v4607_v56  ;;  %v4705_v12 = vadd.f32 %v4607_v56, %v7988_v20  ;;  %4688 = vst [vmem:[%s7510_s15 + $0x128] sm:$0xff] %v4672_v26  ;;  %v4610_v54 = vmul.f32 0.5, %v4594_v51 }
 0x497   : > { %4768 = vst [vmem:[%s7510_s15 + $0x138] sm:$0xff] %v4752_v19  ;;  %4686 = vst [vmem:[%s7510_s15 + $0xd8] sm:$0xff] %v4670_v63  ;;  %v4608_v6 = vmul.f32 0.5, %v4592_v24  ;;  %v4597_v16 = vmul.f32 %v8025_v42, %v8055_v44  ;;  %v4595_v41 = vmul.f32 %v8025_v42, %v8059_v10  ;;  %v4642_v47 = vmul.f32 %v7576_v5, %v4625_v22  ;;  %v8131_v44 = vpop.permute.xlu1 %4338 }
 0x498   : > { %4766 = vst [vmem:[%s7510_s15 + $0xe8] sm:$0xff] %v4750_v15  ;;  %v4723_v30 = vmul.f32 %v4707_v35, %v7576_v5  ;;  %v4640_v38 = vmul.f32 %v7576_v5, %v4623_v21  ;;  %v4721_v20 = vmul.f32 %v4705_v12, %v7576_v5  ;;  %v4626_v34 = vsub.f32 %v8004_v36, %v4610_v54 }
 0x499   : > { %v4708_v4 = vadd.f32 %v4610_v54, %v8004_v36  ;;  %v4624_v28 = vsub.f32 %v8007_v53, %v4608_v6  ;;  %v4706_v60 = vadd.f32 %v4608_v6, %v8007_v53  ;;  %v4658_v55 = vmax.f32 %v4642_v47, 0.0 }
 0x49a   : > { %v4739_v10 = vmax.f32 %v4723_v30, 0.0  ;;  %v4656_v33 = vmax.f32 %v4640_v38, 0.0  ;;  %v4737_v29 = vmax.f32 %v4721_v20, 0.0  ;;  %v4643_v2 = vmul.f32 %v7576_v5, %v4626_v34 }
 0x49b   : > { %v4724_v59 = vmul.f32 %v4708_v4, %v7576_v5  ;;  %v4641_v36 = vmul.f32 %v7576_v5, %v4624_v28  ;;  %v4722_v46 = vmul.f32 %v4706_v60, %v7576_v5  ;;  %v4675_v53 = vmin.f32 %v7808_v52, %v4658_v55  ;;  %v4349_v49 = vpop.permute.xlu1 %4348 }
 0x49c   : > { %v4755_v23 = vmin.f32 %v7808_v52, %v4739_v10  ;;  %v4673_v39 = vmin.f32 %v7808_v52, %v4656_v33  ;;  %v4753_v43 = vmin.f32 %v7808_v52, %v4737_v29  ;;  %v4659_v11 = vmax.f32 %v4643_v2, 0.0 }
 0x49d   : > { %v4740_v40 = vmax.f32 %v4724_v59, 0.0  ;;  %v4657_v62 = vmax.f32 %v4641_v36, 0.0  ;;  %v4738_v32 = vmax.f32 %v4722_v46, 0.0  ;;  %4691 = vst [vmem:[%s7510_s15 + $0x1a0] sm:$0xff] %v4675_v53  ;;  %v4613_v48 = vmul.f32 0.5, %v4597_v16  ;;  %v6324_v16 = vpop.eup %6323 }
 0x49e   : > { %4771 = vst [vmem:[%s7510_s15 + $0x1b0] sm:$0xff] %v4755_v23  ;;  %4689 = vst [vmem:[%s7510_s15 + $0x150] sm:$0xff] %v4673_v39  ;;  %v4611_v25 = vmul.f32 0.5, %v4595_v41  ;;  %v4598_v14 = vmul.f32 %v8025_v42, %v8065_v13  ;;  %v4676_v50 = vmin.f32 %v7808_v52, %v4659_v11  ;;  %v4366_v13 = vadd.f32 %v4349_v49, %v8017_v45 }
 0x49f   : > { %4769 = vst [vmem:[%s7510_s15 + $0x160] sm:$0xff] %v4753_v43  ;;  %v4756_v58 = vmin.f32 %v7808_v52, %v4740_v40  ;;  %v4674_v61 = vmin.f32 %v7808_v52, %v4657_v62  ;;  %v4754_v37 = vmin.f32 %v7808_v52, %v4738_v32  ;;  %v4629_v3 = vsub.f32 %v8013_v18, %v4613_v48 }
 0x4a0   : > { %v4711_v17 = vadd.f32 %v4613_v48, %v8013_v18  ;;  %v4627_v9 = vsub.f32 %v8020_v1, %v4611_v25  ;;  %v4709_v27 = vadd.f32 %v4611_v25, %v8020_v1  ;;  %4692 = vst [vmem:[%s7510_s15 + $0x1c8] sm:$0xff] %v4676_v50  ;;  %v4614_v0 = vmul.f32 0.5, %v4598_v14 }
 0x4a1   : > { %4772 = vst [vmem:[%s7510_s15 + $0x1d8] sm:$0xff] %v4756_v58  ;;  %4690 = vst [vmem:[%s7510_s15 + $0x178] sm:$0xff] %v4674_v61  ;;  %v4646_v8 = vmul.f32 %v7576_v5, %v4629_v3  ;;  %v4244_v18 = vadd.f32 %v7780_v31, %v7864_v57  ;;  %v4596_v30 = vmul.f32 %v8025_v42, %v6324_v16 }
 0x4a2   : > { %4770 = vst [vmem:[%s7510_s15 + $0x188] sm:$0xff] %v4754_v37  ;;  %v4727_v7 = vmul.f32 %v4711_v17, %v7576_v5  ;;  %v4644_v56 = vmul.f32 %v7576_v5, %v4627_v9  ;;  %v4725_v51 = vmul.f32 %v4709_v27, %v7576_v5  ;;  %v4630_v24 = vsub.f32 %v4366_v13, %v4614_v0 }
 0x4a3   : > { %v4712_v1 = vadd.f32 %v4614_v0, %v4366_v13  ;;  %v4662_v45 = vmax.f32 %v4646_v8, 0.0  ;;  %v4268_v12 = vmul.f32 %v8025_v42, %v4244_v18  ;;  %v4612_v20 = vmul.f32 0.5, %v4596_v30 }
 0x4a4   : > { %v4743_v26 = vmax.f32 %v4727_v7, 0.0  ;;  %v4660_v19 = vmax.f32 %v4644_v56, 0.0  ;;  %v4741_v63 = vmax.f32 %v4725_v51, 0.0  ;;  %v4647_v15 = vmul.f32 %v7576_v5, %v4630_v24 }
 0x4a5   : > { %v4728_v22 = vmul.f32 %v4712_v1, %v7576_v5  ;;  %v4679_v35 = vmin.f32 %v7808_v52, %v4662_v45  ;;  %v4364_v38 = vadd.f32 %v8131_v44, %v4268_v12 }
 0x4a6   : > { %v4759_v21 = vmin.f32 %v7808_v52, %v4743_v26  ;;  %v4677_v31 = vmin.f32 %v7808_v52, %v4660_v19  ;;  %v4757_v57 = vmin.f32 %v7808_v52, %v4741_v63  ;;  %v4663_v54 = vmax.f32 %v4647_v15, 0.0 }
 0x4a7   : > { %v4744_v6 = vmax.f32 %v4728_v22, 0.0  ;;  %4695 = vst [vmem:[%s7510_s15 + $0x240] sm:$0xff] %v4679_v35  ;;  %v4628_v34 = vsub.f32 %v4364_v38, %v4612_v20  ;;  %v4710_v4 = vadd.f32 %v4612_v20, %v4364_v38 }
 0x4a8   : > { %4775 = vst [vmem:[%s7510_s15 + $0x250] sm:$0xff] %v4759_v21  ;;  %4693 = vst [vmem:[%s7510_s15 + $0x1f0] sm:$0xff] %v4677_v31  ;;  %v4680_v41 = vmin.f32 %v7808_v52, %v4663_v54 }
 0x4a9   : > { %4773 = vst [vmem:[%s7510_s15 + $0x200] sm:$0xff] %v4757_v57  ;;  %v4760_v47 = vmin.f32 %v7808_v52, %v4744_v6  ;;  %v4645_v28 = vmul.f32 %v7576_v5, %v4628_v34  ;;  %v4726_v60 = vmul.f32 %v4710_v4, %v7576_v5 }
 0x4aa   : > { %4696 = vst [vmem:[%s7510_s15 + $0x268] sm:$0xff] %v4680_v41 }
 0x4ab   : > { %4776 = vst [vmem:[%s7510_s15 + $0x278] sm:$0xff] %v4760_v47  ;;  %v4661_v55 = vmax.f32 %v4645_v28, 0.0  ;;  %v4742_v10 = vmax.f32 %v4726_v60, 0.0 }
 0x4ad   : > { %v4678_v33 = vmin.f32 %v7808_v52, %v4661_v55  ;;  %v4758_v29 = vmin.f32 %v7808_v52, %v4742_v10 }
 0x4af   : > { %4694 = vst [vmem:[%s7510_s15 + $0x218] sm:$0xff] %v4678_v33  ;;  %4774 = vst [vmem:[%s7510_s15 + $0x228] sm:$0xff] %v4758_v29 }
 0x4b0 PF: > { %s23_s25 = sadd.s32 1, %s6383_s25   ;;  %s8237_s19 = sld [smem:[#allocation6_spill]] }
 0x4b1   : > { %p20_p5 = scmp.ge.s32.totalorder %s23_s25, 8   ;;  %s8238_s21 = smov %s6375_s23 }
 0x4b2   : > { %s8239_s22 = smov %s6379_s24  ;;  %s8240_s23 = smov %s8243_s27 }
 0x4b3   :  { %22 = sbr.rel (!%p20_p5) target bundleno = 6 (0x6), region = 120 }
 0x4b6   : > { %s8241_s24 = smov %s8237_s19 }
 0x4ba   :  { %4809 = vsyncpa [#allocation4], 1 }
 0x4bb   :  { %4811 = vsyncpa [#allocation4 + $0x1], 1 }

</bundles_post_ra>
